<compile_context>
chip_gen: v7x
topology: tpu7x:2x2x1
jax: 0.10.0
libtpu: 0.0.40
codegen_flags: <defaults>
</compile_context>

<pallas_src>
import functools
import math

import jax
import jax.numpy as jnp
from jax import lax
from jax.experimental import pallas as pl
from jax.experimental.pallas import tpu as pltpu

# Matmul operand dtype. Set to jnp.bfloat16 for several-x MXU throughput on
# v6e/v7x (accumulation stays f32 via preferred_element_type); keep f32 here so
# the tight accuracy check below holds (bf16 needs ~2e-2 tolerance).
MATMUL_DTYPE = jnp.float32


# ----------------------------- fused Pallas kernel -----------------------------

def _gst_fused_kernel(
    x_ref,                     # (1, Cin, T)   NCT slice for this batch element
    pw_ref, pb_ref,            # (Cin, C), (1, C)
    wqkv_ref, bqkv_ref,        # (1, C, 3C), (1, 1, 3C)   -- this layer's slice
    wo_ref, bo_ref,            # (1, C, C),  (1, 1, C)
    ln1g_ref, ln1b_ref,        # (1, 1, C) x2
    w1_ref, b1_ref,            # (1, C, F),  (1, 1, F)
    w2_ref, b2_ref,            # (1, F, C),  (1, 1, C)
    ln2g_ref, ln2b_ref,        # (1, 1, C) x2
    stkv_ref,                  # (n_tokens, 2C)  precomputed style-token K|V
    stwq_ref, stbq_ref,        # (C, C), (1, C)
    stwo_ref, stbo_ref,        # (C, C), (1, C)
    o_ref,                     # (1, C, T)
    h_ref,                     # VMEM scratch (T, C): activation carried across layers
    *, n_heads, eps):

  C = pw_ref.shape[1]
  dk = C // n_heads
  scale = 1.0 / math.sqrt(dk)
  l = pl.program_id(1)

  def mm(a, b):
    return jnp.dot(a.astype(MATMUL_DTYPE), b.astype(MATMUL_DTYPE),
                   preferred_element_type=jnp.float32)

  def layer_norm(y, g, b):
    mu = jnp.mean(y, axis=-1, keepdims=True)
    d = y - mu
    var = jnp.mean(d * d, axis=-1, keepdims=True)
    return d * lax.rsqrt(var + eps) * g + b

  def multi_head_attn(q, k, v, wo, bo):
    # q: (Tq, C); k, v: (Tk, C). Heads looped in-kernel (static unroll); the
    # output projection is folded into the loop (sum of per-head partial
    # matmuls == concat(heads) @ wo), avoiding any lane concatenation.
    out = jnp.zeros((q.shape[0], C), jnp.float32)
    for hh in range(n_heads):
      lo, hi = hh * dk, (hh + 1) * dk
      qh, kh, vh = q[:, lo:hi], k[:, lo:hi], v[:, lo:hi]
      # q @ k^T via dot_general contracting the last dims (no explicit .T).
      s = lax.dot_general(qh.astype(MATMUL_DTYPE), kh.astype(MATMUL_DTYPE),
                          (((1,), (1,)), ((), ())),
                          preferred_element_type=jnp.float32) * scale
      m = jnp.max(s, axis=-1, keepdims=True)
      e = jnp.exp(s - m)
      p = e * pl.reciprocal(jnp.sum(e, axis=-1, keepdims=True), approx=False)
      out = out + mm(mm(p, vh), wo[lo:hi, :])
    return out + bo

  # --- first layer step: preproj (Conv1d k=1 == x_nct^T @ W + b) -> scratch ---
  @pl.when(l == 0)
  def _():
    h_ref[...] = mm(x_ref[0].T, pw_ref[...]) + pb_ref[...]        # (T, C)

  # --- one transformer-encoder layer (post-norm; dropout p=0.0 is identity) ---
  h = h_ref[...]
  qkv = mm(h, wqkv_ref[0]) + bqkv_ref[0]                          # fused QKV, (T, 3C)
  a = multi_head_attn(qkv[:, 0:C], qkv[:, C:2 * C], qkv[:, 2 * C:3 * C],
                      wo_ref[0], bo_ref[0])
  h = layer_norm(h + a, ln1g_ref[0], ln1b_ref[0])
  f = jnp.maximum(mm(h, w1_ref[0]) + b1_ref[0], 0.0)
  f = mm(f, w2_ref[0]) + b2_ref[0]
  h = layer_norm(h + f, ln2g_ref[0], ln2b_ref[0])
  h_ref[...] = h

  # --- last layer step: style-token cross-attention, write (C, T) output ---
  @pl.when(l == pl.num_programs(1) - 1)
  def _():
    q = mm(h, stwq_ref[...]) + stbq_ref[...]
    a2 = multi_head_attn(q, stkv_ref[:, 0:C], stkv_ref[:, C:2 * C],
                         stwo_ref[...], stbo_ref[...])
    o_ref[0] = a2.T.astype(o_ref.dtype)                           # back to (C, T)


def style_token_encoder_forward(params, x_nct, n_heads):
  """x_nct: (B, in_channels, T) -> (B, d_model, T), matching the PyTorch module."""
  B, Cin, T = x_nct.shape
  C = params["preproj_w"].shape[1]
  L = len(params["layers"])
  F = params["layers"][0]["ffn_w1"].shape[1]

  def stack(fn):
    return jnp.stack([fn(lp) for lp in params["layers"]])

  # weight packing (fused QKV, biases as (1, N) rows, layers stacked)
  wqkv = stack(lambda lp: jnp.concatenate(
      [lp["attn"]["wq"], lp["attn"]["wk"], lp["attn"]["wv"]], axis=1))
  bqkv = stack(lambda lp: jnp.concatenate(
      [lp["attn"]["bq"], lp["attn"]["bk"], lp["attn"]["bv"]])[None, :])
  wo = stack(lambda lp: lp["attn"]["wo"])
  bo = stack(lambda lp: lp["attn"]["bo"][None, :])
  ln1g = stack(lambda lp: lp["ln1_g"][None, :])
  ln1b = stack(lambda lp: lp["ln1_b"][None, :])
  w1 = stack(lambda lp: lp["ffn_w1"])
  b1 = stack(lambda lp: lp["ffn_b1"][None, :])
  w2 = stack(lambda lp: lp["ffn_w2"])
  b2 = stack(lambda lp: lp["ffn_b2"][None, :])
  ln2g = stack(lambda lp: lp["ln2_g"][None, :])
  ln2b = stack(lambda lp: lp["ln2_b"][None, :])

  # Style-token K/V are batch- and layer-invariant: precompute once (tiny)
  # instead of recomputing on every grid step.
  sp = params["style"]
  tok = jnp.tanh(sp["embeddings"]).T                               # (n_tokens, C)
  st_kv = (tok @ jnp.concatenate([sp["attn"]["wk"], sp["attn"]["wv"]], axis=1)
           + jnp.concatenate([sp["attn"]["bk"], sp["attn"]["bv"]])[None, :])
  n_tokens = st_kv.shape[0]
  st_wq = sp["attn"]["wq"]
  st_bq = sp["attn"]["bq"][None, :]
  st_wo = sp["attn"]["wo"]
  st_bo = sp["attn"]["bo"][None, :]

  kernel = functools.partial(_gst_fused_kernel, n_heads=n_heads, eps=1e-5)

  def cspec(shape):              # constant (always-resident) weight, full array
    n = len(shape)
    return pl.BlockSpec(shape, lambda b, l, n=n: (0,) * n)

  def lspec(shape):              # per-layer slice along the leading (layer) axis
    n = len(shape)
    return pl.BlockSpec((1,) + shape[1:], lambda b, l, n=n: (l,) + (0,) * (n - 1))

  return pl.pallas_call(
      kernel,
      out_shape=jax.ShapeDtypeStruct((B, C, T), jnp.float32),
      grid=(B, L),
      in_specs=[
          pl.BlockSpec((1, Cin, T), lambda b, l: (b, 0, 0)),       # x (per-batch)
          cspec((Cin, C)), cspec((1, C)),                          # preproj
          lspec((L, C, 3 * C)), lspec((L, 1, 3 * C)),              # fused QKV
          lspec((L, C, C)), lspec((L, 1, C)),                      # attn out proj
          lspec((L, 1, C)), lspec((L, 1, C)),                      # ln1
          lspec((L, C, F)), lspec((L, 1, F)),                      # ffn w1
          lspec((L, F, C)), lspec((L, 1, C)),                      # ffn w2
          lspec((L, 1, C)), lspec((L, 1, C)),                      # ln2
          cspec((n_tokens, 2 * C)),                                # style K|V
          cspec((C, C)), cspec((1, C)),                            # style Q proj
          cspec((C, C)), cspec((1, C)),                            # style out proj
      ],
      out_specs=pl.BlockSpec((1, C, T), lambda b, l: (b, 0, 0)),
      scratch_shapes=[pltpu.VMEM((T, C), jnp.float32)],            # activation carry
      compiler_params=pltpu.CompilerParams(
          dimension_semantics=("parallel", "arbitrary"),
          vmem_limit_bytes=64 * 1024 * 1024),
  )(x_nct, params["preproj_w"], params["preproj_b"][None, :],
    wqkv, bqkv, wo, bo, ln1g, ln1b, w1, b1, w2, b2, ln2g, ln2b,
    st_kv, st_wq, st_bq, st_wo, st_bo)


# ------------------------------- parameters --------------------------------

def init_params(key, in_channels, d_model, n_layers, n_heads, n_tokens):
  keys = iter(jax.random.split(key, 128))

  def dense(fan_in, fan_out):
    return jax.random.normal(next(keys), (fan_in, fan_out), jnp.float32) / math.sqrt(fan_in)

  def mha(channels):
    return {"wq": dense(channels, channels), "bq": jnp.zeros((channels,), jnp.float32),
            "wk": dense(channels, channels), "bk": jnp.zeros((channels,), jnp.float32),
            "wv": dense(channels, channels), "bv": jnp.zeros((channels,), jnp.float32),
            "wo": dense(channels, channels), "bo": jnp.zeros((channels,), jnp.float32)}

  ffn = 4 * d_model  # TODO(synk): filter_channels of attentions.FFN unknown; assuming 4*d_model.
  layers = []
  for _ in range(n_layers):
    layers.append({
        "attn": mha(d_model),
        "ffn_w1": dense(d_model, ffn), "ffn_b1": jnp.zeros((ffn,), jnp.float32),
        "ffn_w2": dense(ffn, d_model), "ffn_b2": jnp.zeros((d_model,), jnp.float32),
        "ln1_g": jnp.ones((d_model,), jnp.float32), "ln1_b": jnp.zeros((d_model,), jnp.float32),
        "ln2_g": jnp.ones((d_model,), jnp.float32), "ln2_b": jnp.zeros((d_model,), jnp.float32),
    })
  return {
      "preproj_w": dense(in_channels, d_model),
      "preproj_b": jnp.zeros((d_model,), jnp.float32),
      "layers": layers,
      "style": {
          "embeddings": 0.5 * jax.random.normal(next(keys), (d_model, n_tokens), jnp.float32),
          "attn": mha(d_model),
      },
  }


# --------------------------- pure-JAX reference -----------------------------

def reference_forward(params, x_nct, n_heads):
  def lin(x, w, b, act=None):
    y = x @ w + b
    return jnp.maximum(y, 0.0) if act == "relu" else y

  def mha(x, ctx, p):
    B, Tq, C = x.shape
    Tk = ctx.shape[1]
    dk = C // n_heads
    q = lin(x, p["wq"], p["bq"]).reshape(B, Tq, n_heads, dk).transpose(0, 2, 1, 3)
    k = lin(ctx, p["wk"], p["bk"]).reshape(B, Tk, n_heads, dk).transpose(0, 2, 1, 3)
    v = lin(ctx, p["wv"], p["bv"]).reshape(B, Tk, n_heads, dk).transpose(0, 2, 1, 3)
    s = jnp.einsum("bhqd,bhkd->bhqk", q, k) / math.sqrt(dk)
    a = jax.nn.softmax(s, axis=-1)
    o = jnp.einsum("bhqk,bhkd->bhqd", a, v).transpose(0, 2, 1, 3).reshape(B, Tq, C)
    return lin(o, p["wo"], p["bo"])

  def ln(x, g, b, eps=1e-5):
    mu = x.mean(-1, keepdims=True)
    var = ((x - mu) ** 2).mean(-1, keepdims=True)
    return (x - mu) / jnp.sqrt(var + eps) * g + b

  x = jnp.transpose(x_nct, (0, 2, 1))
  x = lin(x, params["preproj_w"], params["preproj_b"])
  for lp in params["layers"]:
    x = ln(x + mha(x, x, lp["attn"]), lp["ln1_g"], lp["ln1_b"])
    h = lin(lin(x, lp["ffn_w1"], lp["ffn_b1"], "relu"), lp["ffn_w2"], lp["ffn_b2"])
    x = ln(x + h, lp["ln2_g"], lp["ln2_b"])
  sp = params["style"]
  emb = jnp.tanh(sp["embeddings"]).T[None]
  ctx = jnp.broadcast_to(emb, (x.shape[0],) + emb.shape[1:])
  x = mha(x, ctx, sp["attn"])
  return jnp.transpose(x, (0, 2, 1))


# ---------------------------------- main ------------------------------------

if __name__ == "__main__":
  B, Cin, T = 2, 16, 16
  d_model, n_layers, n_heads, n_tokens = 64, 2, 4, 16

  key = jax.random.PRNGKey(0)
  pkey, xkey = jax.random.split(key)
  params = init_params(pkey, Cin, d_model, n_layers, n_heads, n_tokens)
  x = jax.random.normal(xkey, (B, Cin, T), jnp.float32)   # NCT, like the PyTorch module

  fwd = jax.jit(functools.partial(style_token_encoder_forward, n_heads=n_heads))
  out = jax.block_until_ready(fwd(params, x))
  assert out.shape == (B, d_model, T), out.shape

  ref = reference_forward(params, x, n_heads)
  err = float(jnp.max(jnp.abs(out - ref)))
  assert err < 2e-3, f"mismatch vs pure-JAX reference: {err}"

  print("KERNEL_OK")
</pallas_src>

<mosaic_0001>
module attributes {stable_mosaic.version = 11 : i64} {
  func.func @_gst_fused_kernel(%arg0: i32, %arg1: i32, %arg2: memref<1x16x16xf32, #tpu.memory_space<vmem>>, %arg3: memref<16x64xf32, #tpu.memory_space<vmem>>, %arg4: memref<1x64xf32, #tpu.memory_space<vmem>>, %arg5: memref<1x64x192xf32, #tpu.memory_space<vmem>>, %arg6: memref<1x1x192xf32, #tpu.memory_space<vmem>>, %arg7: memref<1x64x64xf32, #tpu.memory_space<vmem>>, %arg8: memref<1x1x64xf32, #tpu.memory_space<vmem>>, %arg9: memref<1x1x64xf32, #tpu.memory_space<vmem>>, %arg10: memref<1x1x64xf32, #tpu.memory_space<vmem>>, %arg11: memref<1x64x256xf32, #tpu.memory_space<vmem>>, %arg12: memref<1x1x256xf32, #tpu.memory_space<vmem>>, %arg13: memref<1x256x64xf32, #tpu.memory_space<vmem>>, %arg14: memref<1x1x64xf32, #tpu.memory_space<vmem>>, %arg15: memref<1x1x64xf32, #tpu.memory_space<vmem>>, %arg16: memref<1x1x64xf32, #tpu.memory_space<vmem>>, %arg17: memref<16x128xf32, #tpu.memory_space<vmem>>, %arg18: memref<64x64xf32, #tpu.memory_space<vmem>>, %arg19: memref<1x64xf32, #tpu.memory_space<vmem>>, %arg20: memref<64x64xf32, #tpu.memory_space<vmem>>, %arg21: memref<1x64xf32, #tpu.memory_space<vmem>>, %arg22: memref<1x64x16xf32, #tpu.memory_space<vmem>>, %arg23: memref<16x64xf32, #tpu.memory_space<vmem>>) attributes {dimension_semantics = [#tpu.dimension_semantics<parallel>, #tpu.dimension_semantics<arbitrary>], iteration_bounds = array<i64: 2, 2>, scalar_prefetch = 0 : i64, scratch_operands = 1 : i64, tpu.core_type = #tpu.core_type<tc>, window_params = [{transform_indices = @transform_0, window_bounds = array<i64: 1, 16, 16>}, {pipeline_mode = #tpu.pipeline_mode<synchronous>, transform_indices = @transform_1, window_bounds = array<i64: 16, 64>}, {pipeline_mode = #tpu.pipeline_mode<synchronous>, transform_indices = @transform_2, window_bounds = array<i64: 1, 64>}, {transform_indices = @transform_3, window_bounds = array<i64: 1, 64, 192>}, {transform_indices = @transform_4, window_bounds = array<i64: 1, 1, 192>}, {transform_indices = @transform_5, window_bounds = array<i64: 1, 64, 64>}, {transform_indices = @transform_6, window_bounds = array<i64: 1, 1, 64>}, {transform_indices = @transform_7, window_bounds = array<i64: 1, 1, 64>}, {transform_indices = @transform_8, window_bounds = array<i64: 1, 1, 64>}, {transform_indices = @transform_9, window_bounds = array<i64: 1, 64, 256>}, {transform_indices = @transform_10, window_bounds = array<i64: 1, 1, 256>}, {transform_indices = @transform_11, window_bounds = array<i64: 1, 256, 64>}, {transform_indices = @transform_12, window_bounds = array<i64: 1, 1, 64>}, {transform_indices = @transform_13, window_bounds = array<i64: 1, 1, 64>}, {transform_indices = @transform_14, window_bounds = array<i64: 1, 1, 64>}, {pipeline_mode = #tpu.pipeline_mode<synchronous>, transform_indices = @transform_15, window_bounds = array<i64: 16, 128>}, {pipeline_mode = #tpu.pipeline_mode<synchronous>, transform_indices = @transform_16, window_bounds = array<i64: 64, 64>}, {pipeline_mode = #tpu.pipeline_mode<synchronous>, transform_indices = @transform_17, window_bounds = array<i64: 1, 64>}, {pipeline_mode = #tpu.pipeline_mode<synchronous>, transform_indices = @transform_18, window_bounds = array<i64: 64, 64>}, {pipeline_mode = #tpu.pipeline_mode<synchronous>, transform_indices = @transform_19, window_bounds = array<i64: 1, 64>}, {transform_indices = @transform_20, window_bounds = array<i64: 1, 64, 16>}]} {
    %c0_i32 = arith.constant 0 : i32
    %0 = arith.cmpi eq, %arg1, %c0_i32 : i32
    %1 = arith.extui %0 : i1 to i32
    %c0_i32_0 = arith.constant 0 : i32
    %2 = arith.cmpi ne, %1, %c0_i32_0 : i32
    scf.if %2 {
      %c0_79 = arith.constant 0 : index
      %c0_80 = arith.constant 0 : index
      %c0_81 = arith.constant 0 : index
      %171 = vector.load %arg2[%c0_79, %c0_80, %c0_81] : memref<1x16x16xf32, #tpu.memory_space<vmem>>, vector<1x16x16xf32>
      %172 = vector.shape_cast %171 : vector<1x16x16xf32> to vector<16x16xf32>
      %173 = tpu.transpose %172, [1, 0] : vector<16x16xf32> -> vector<16x16xf32>
      %c0_82 = arith.constant 0 : index
      %c0_83 = arith.constant 0 : index
      %174 = vector.load %arg3[%c0_82, %c0_83] : memref<16x64xf32, #tpu.memory_space<vmem>>, vector<16x64xf32>
      %cst_84 = arith.constant dense<0.000000e+00> : vector<16x64xf32>
      %175 = tpu.matmul %173, %174, %cst_84 {dimension_numbers = #tpu.dot_dimension_numbers<[1], [0], [0], [1], [0, 0, 1, 1], [], []>} : vector<16x16xf32>, vector<16x64xf32>, vector<16x64xf32> -> vector<16x64xf32>
      %c0_85 = arith.constant 0 : index
      %c0_86 = arith.constant 0 : index
      %176 = vector.load %arg4[%c0_85, %c0_86] : memref<1x64xf32, #tpu.memory_space<vmem>>, vector<1x64xf32>
      %177 = vector.broadcast %176 : vector<1x64xf32> to vector<16x64xf32>
      %178 = arith.addf %175, %177 : vector<16x64xf32>
      %c0_87 = arith.constant 0 : index
      %c0_88 = arith.constant 0 : index
      %179 = vector.load %arg23[%c0_87, %c0_88] : memref<16x64xf32, #tpu.memory_space<vmem>>, vector<16x64xf32>
      tpu.vector_store %arg23[%c0_87, %c0_88], %178 {strides = array<i32>} : memref<16x64xf32, #tpu.memory_space<vmem>>, vector<16x64xf32>,
    } else {
    }
    %c0 = arith.constant 0 : index
    %c0_1 = arith.constant 0 : index
    %3 = vector.load %arg23[%c0, %c0_1] : memref<16x64xf32, #tpu.memory_space<vmem>>, vector<16x64xf32>
    %c0_2 = arith.constant 0 : index
    %c0_3 = arith.constant 0 : index
    %c0_4 = arith.constant 0 : index
    %4 = vector.load %arg5[%c0_2, %c0_3, %c0_4] : memref<1x64x192xf32, #tpu.memory_space<vmem>>, vector<1x64x192xf32>
    %5 = vector.shape_cast %4 : vector<1x64x192xf32> to vector<64x192xf32>
    %cst = arith.constant dense<0.000000e+00> : vector<16x192xf32>
    %6 = tpu.matmul %3, %5, %cst {dimension_numbers = #tpu.dot_dimension_numbers<[1], [0], [0], [1], [0, 0, 1, 1], [], []>} : vector<16x64xf32>, vector<64x192xf32>, vector<16x192xf32> -> vector<16x192xf32>
    %c0_5 = arith.constant 0 : index
    %c0_6 = arith.constant 0 : index
    %c0_7 = arith.constant 0 : index
    %7 = vector.load %arg6[%c0_5, %c0_6, %c0_7] : memref<1x1x192xf32, #tpu.memory_space<vmem>>, vector<1x1x192xf32>
    %8 = vector.shape_cast %7 : vector<1x1x192xf32> to vector<1x192xf32>
    %9 = vector.broadcast %8 : vector<1x192xf32> to vector<16x192xf32>
    %10 = arith.addf %6, %9 : vector<16x192xf32>
    %11 = vector.extract_strided_slice %10 {offsets = [0, 0], sizes = [16, 64], strides = [1, 1]} : vector<16x192xf32> to vector<16x64xf32>
    %12 = vector.extract_strided_slice %10 {offsets = [0, 64], sizes = [16, 64], strides = [1, 1]} : vector<16x192xf32> to vector<16x64xf32>
    %13 = vector.extract_strided_slice %10 {offsets = [0, 128], sizes = [16, 64], strides = [1, 1]} : vector<16x192xf32> to vector<16x64xf32>
    %c0_8 = arith.constant 0 : index
    %c0_9 = arith.constant 0 : index
    %c0_10 = arith.constant 0 : index
    %14 = vector.load %arg7[%c0_8, %c0_9, %c0_10] : memref<1x64x64xf32, #tpu.memory_space<vmem>>, vector<1x64x64xf32>
    %15 = vector.shape_cast %14 : vector<1x64x64xf32> to vector<64x64xf32>
    %c0_11 = arith.constant 0 : index
    %c0_12 = arith.constant 0 : index
    %c0_13 = arith.constant 0 : index
    %16 = vector.load %arg8[%c0_11, %c0_12, %c0_13] : memref<1x1x64xf32, #tpu.memory_space<vmem>>, vector<1x1x64xf32>
    %17 = vector.shape_cast %16 : vector<1x1x64xf32> to vector<1x64xf32>
    %cst_14 = arith.constant 0.000000e+00 : f32
    %18 = vector.broadcast %cst_14 : f32 to vector<16x64xf32>
    %19 = vector.extract_strided_slice %11 {offsets = [0, 0], sizes = [16, 16], strides = [1, 1]} : vector<16x64xf32> to vector<16x16xf32>
    %20 = vector.extract_strided_slice %12 {offsets = [0, 0], sizes = [16, 16], strides = [1, 1]} : vector<16x64xf32> to vector<16x16xf32>
    %21 = vector.extract_strided_slice %13 {offsets = [0, 0], sizes = [16, 16], strides = [1, 1]} : vector<16x64xf32> to vector<16x16xf32>
    %cst_15 = arith.constant dense<0.000000e+00> : vector<16x16xf32>
    %22 = tpu.matmul %19, %20, %cst_15 {dimension_numbers = #tpu.dot_dimension_numbers<[1], [1], [0], [0], [0, 0, 1, 0], [], []>} : vector<16x16xf32>, vector<16x16xf32>, vector<16x16xf32> -> vector<16x16xf32>
    %cst_16 = arith.constant 2.500000e-01 : f32
    %23 = vector.broadcast %cst_16 : f32 to vector<16x16xf32>
    %24 = arith.mulf %22, %23 : vector<16x16xf32>
    %cst_17 = arith.constant dense<0xFF800000> : vector<16xf32>
    %25 = vector.multi_reduction <maximumf>, %24, %cst_17 [1] : vector<16x16xf32> to vector<16xf32>
    %26 = vector.shape_cast %25 : vector<16xf32> to vector<16x1xf32>
    %27 = vector.broadcast %26 : vector<16x1xf32> to vector<16x16xf32>
    %28 = arith.subf %24, %27 : vector<16x16xf32>
    %29 = math.exp %28 : vector<16x16xf32>
    %cst_18 = arith.constant dense<0.000000e+00> : vector<16xf32>
    %30 = vector.multi_reduction <add>, %29, %cst_18 [1] : vector<16x16xf32> to vector<16xf32>
    %31 = vector.shape_cast %30 : vector<16xf32> to vector<16x1xf32>
    %32 = tpu.reciprocal %31 : vector<16x1xf32> -> vector<16x1xf32>
    %33 = vector.broadcast %32 : vector<16x1xf32> to vector<16x16xf32>
    %34 = arith.mulf %29, %33 : vector<16x16xf32>
    %cst_19 = arith.constant dense<0.000000e+00> : vector<16x16xf32>
    %35 = tpu.matmul %34, %21, %cst_19 {dimension_numbers = #tpu.dot_dimension_numbers<[1], [0], [0], [1], [0, 0, 1, 1], [], []>} : vector<16x16xf32>, vector<16x16xf32>, vector<16x16xf32> -> vector<16x16xf32>
    %36 = vector.extract_strided_slice %15 {offsets = [0, 0], sizes = [16, 64], strides = [1, 1]} : vector<64x64xf32> to vector<16x64xf32>
    %cst_20 = arith.constant dense<0.000000e+00> : vector<16x64xf32>
    %37 = tpu.matmul %35, %36, %cst_20 {dimension_numbers = #tpu.dot_dimension_numbers<[1], [0], [0], [1], [0, 0, 1, 1], [], []>} : vector<16x16xf32>, vector<16x64xf32>, vector<16x64xf32> -> vector<16x64xf32>
    %38 = arith.addf %18, %37 : vector<16x64xf32>
    %39 = vector.extract_strided_slice %11 {offsets = [0, 16], sizes = [16, 16], strides = [1, 1]} : vector<16x64xf32> to vector<16x16xf32>
    %40 = vector.extract_strided_slice %12 {offsets = [0, 16], sizes = [16, 16], strides = [1, 1]} : vector<16x64xf32> to vector<16x16xf32>
    %41 = vector.extract_strided_slice %13 {offsets = [0, 16], sizes = [16, 16], strides = [1, 1]} : vector<16x64xf32> to vector<16x16xf32>
    %cst_21 = arith.constant dense<0.000000e+00> : vector<16x16xf32>
    %42 = tpu.matmul %39, %40, %cst_21 {dimension_numbers = #tpu.dot_dimension_numbers<[1], [1], [0], [0], [0, 0, 1, 0], [], []>} : vector<16x16xf32>, vector<16x16xf32>, vector<16x16xf32> -> vector<16x16xf32>
    %cst_22 = arith.constant 2.500000e-01 : f32
    %43 = vector.broadcast %cst_22 : f32 to vector<16x16xf32>
    %44 = arith.mulf %42, %43 : vector<16x16xf32>
    %cst_23 = arith.constant dense<0xFF800000> : vector<16xf32>
    %45 = vector.multi_reduction <maximumf>, %44, %cst_23 [1] : vector<16x16xf32> to vector<16xf32>
    %46 = vector.shape_cast %45 : vector<16xf32> to vector<16x1xf32>
    %47 = vector.broadcast %46 : vector<16x1xf32> to vector<16x16xf32>
    %48 = arith.subf %44, %47 : vector<16x16xf32>
    %49 = math.exp %48 : vector<16x16xf32>
    %cst_24 = arith.constant dense<0.000000e+00> : vector<16xf32>
    %50 = vector.multi_reduction <add>, %49, %cst_24 [1] : vector<16x16xf32> to vector<16xf32>
    %51 = vector.shape_cast %50 : vector<16xf32> to vector<16x1xf32>
    %52 = tpu.reciprocal %51 : vector<16x1xf32> -> vector<16x1xf32>
    %53 = vector.broadcast %52 : vector<16x1xf32> to vector<16x16xf32>
    %54 = arith.mulf %49, %53 : vector<16x16xf32>
    %cst_25 = arith.constant dense<0.000000e+00> : vector<16x16xf32>
    %55 = tpu.matmul %54, %41, %cst_25 {dimension_numbers = #tpu.dot_dimension_numbers<[1], [0], [0], [1], [0, 0, 1, 1], [], []>} : vector<16x16xf32>, vector<16x16xf32>, vector<16x16xf32> -> vector<16x16xf32>
    %56 = vector.extract_strided_slice %15 {offsets = [16, 0], sizes = [16, 64], strides = [1, 1]} : vector<64x64xf32> to vector<16x64xf32>
    %cst_26 = arith.constant dense<0.000000e+00> : vector<16x64xf32>
    %57 = tpu.matmul %55, %56, %cst_26 {dimension_numbers = #tpu.dot_dimension_numbers<[1], [0], [0], [1], [0, 0, 1, 1], [], []>} : vector<16x16xf32>, vector<16x64xf32>, vector<16x64xf32> -> vector<16x64xf32>
    %58 = arith.addf %38, %57 : vector<16x64xf32>
    %59 = vector.extract_strided_slice %11 {offsets = [0, 32], sizes = [16, 16], strides = [1, 1]} : vector<16x64xf32> to vector<16x16xf32>
    %60 = vector.extract_strided_slice %12 {offsets = [0, 32], sizes = [16, 16], strides = [1, 1]} : vector<16x64xf32> to vector<16x16xf32>
    %61 = vector.extract_strided_slice %13 {offsets = [0, 32], sizes = [16, 16], strides = [1, 1]} : vector<16x64xf32> to vector<16x16xf32>
    %cst_27 = arith.constant dense<0.000000e+00> : vector<16x16xf32>
    %62 = tpu.matmul %59, %60, %cst_27 {dimension_numbers = #tpu.dot_dimension_numbers<[1], [1], [0], [0], [0, 0, 1, 0], [], []>} : vector<16x16xf32>, vector<16x16xf32>, vector<16x16xf32> -> vector<16x16xf32>
    %cst_28 = arith.constant 2.500000e-01 : f32
    %63 = vector.broadcast %cst_28 : f32 to vector<16x16xf32>
    %64 = arith.mulf %62, %63 : vector<16x16xf32>
    %cst_29 = arith.constant dense<0xFF800000> : vector<16xf32>
    %65 = vector.multi_reduction <maximumf>, %64, %cst_29 [1] : vector<16x16xf32> to vector<16xf32>
    %66 = vector.shape_cast %65 : vector<16xf32> to vector<16x1xf32>
    %67 = vector.broadcast %66 : vector<16x1xf32> to vector<16x16xf32>
    %68 = arith.subf %64, %67 : vector<16x16xf32>
    %69 = math.exp %68 : vector<16x16xf32>
    %cst_30 = arith.constant dense<0.000000e+00> : vector<16xf32>
    %70 = vector.multi_reduction <add>, %69, %cst_30 [1] : vector<16x16xf32> to vector<16xf32>
    %71 = vector.shape_cast %70 : vector<16xf32> to vector<16x1xf32>
    %72 = tpu.reciprocal %71 : vector<16x1xf32> -> vector<16x1xf32>
    %73 = vector.broadcast %72 : vector<16x1xf32> to vector<16x16xf32>
    %74 = arith.mulf %69, %73 : vector<16x16xf32>
    %cst_31 = arith.constant dense<0.000000e+00> : vector<16x16xf32>
    %75 = tpu.matmul %74, %61, %cst_31 {dimension_numbers = #tpu.dot_dimension_numbers<[1], [0], [0], [1], [0, 0, 1, 1], [], []>} : vector<16x16xf32>, vector<16x16xf32>, vector<16x16xf32> -> vector<16x16xf32>
    %76 = vector.extract_strided_slice %15 {offsets = [32, 0], sizes = [16, 64], strides = [1, 1]} : vector<64x64xf32> to vector<16x64xf32>
    %cst_32 = arith.constant dense<0.000000e+00> : vector<16x64xf32>
    %77 = tpu.matmul %75, %76, %cst_32 {dimension_numbers = #tpu.dot_dimension_numbers<[1], [0], [0], [1], [0, 0, 1, 1], [], []>} : vector<16x16xf32>, vector<16x64xf32>, vector<16x64xf32> -> vector<16x64xf32>
    %78 = arith.addf %58, %77 : vector<16x64xf32>
    %79 = vector.extract_strided_slice %11 {offsets = [0, 48], sizes = [16, 16], strides = [1, 1]} : vector<16x64xf32> to vector<16x16xf32>
    %80 = vector.extract_strided_slice %12 {offsets = [0, 48], sizes = [16, 16], strides = [1, 1]} : vector<16x64xf32> to vector<16x16xf32>
    %81 = vector.extract_strided_slice %13 {offsets = [0, 48], sizes = [16, 16], strides = [1, 1]} : vector<16x64xf32> to vector<16x16xf32>
    %cst_33 = arith.constant dense<0.000000e+00> : vector<16x16xf32>
    %82 = tpu.matmul %79, %80, %cst_33 {dimension_numbers = #tpu.dot_dimension_numbers<[1], [1], [0], [0], [0, 0, 1, 0], [], []>} : vector<16x16xf32>, vector<16x16xf32>, vector<16x16xf32> -> vector<16x16xf32>
    %cst_34 = arith.constant 2.500000e-01 : f32
    %83 = vector.broadcast %cst_34 : f32 to vector<16x16xf32>
    %84 = arith.mulf %82, %83 : vector<16x16xf32>
    %cst_35 = arith.constant dense<0xFF800000> : vector<16xf32>
    %85 = vector.multi_reduction <maximumf>, %84, %cst_35 [1] : vector<16x16xf32> to vector<16xf32>
    %86 = vector.shape_cast %85 : vector<16xf32> to vector<16x1xf32>
    %87 = vector.broadcast %86 : vector<16x1xf32> to vector<16x16xf32>
    %88 = arith.subf %84, %87 : vector<16x16xf32>
    %89 = math.exp %88 : vector<16x16xf32>
    %cst_36 = arith.constant dense<0.000000e+00> : vector<16xf32>
    %90 = vector.multi_reduction <add>, %89, %cst_36 [1] : vector<16x16xf32> to vector<16xf32>
    %91 = vector.shape_cast %90 : vector<16xf32> to vector<16x1xf32>
    %92 = tpu.reciprocal %91 : vector<16x1xf32> -> vector<16x1xf32>
    %93 = vector.broadcast %92 : vector<16x1xf32> to vector<16x16xf32>
    %94 = arith.mulf %89, %93 : vector<16x16xf32>
    %cst_37 = arith.constant dense<0.000000e+00> : vector<16x16xf32>
    %95 = tpu.matmul %94, %81, %cst_37 {dimension_numbers = #tpu.dot_dimension_numbers<[1], [0], [0], [1], [0, 0, 1, 1], [], []>} : vector<16x16xf32>, vector<16x16xf32>, vector<16x16xf32> -> vector<16x16xf32>
    %96 = vector.extract_strided_slice %15 {offsets = [48, 0], sizes = [16, 64], strides = [1, 1]} : vector<64x64xf32> to vector<16x64xf32>
    %cst_38 = arith.constant dense<0.000000e+00> : vector<16x64xf32>
    %97 = tpu.matmul %95, %96, %cst_38 {dimension_numbers = #tpu.dot_dimension_numbers<[1], [0], [0], [1], [0, 0, 1, 1], [], []>} : vector<16x16xf32>, vector<16x64xf32>, vector<16x64xf32> -> vector<16x64xf32>
    %98 = arith.addf %78, %97 : vector<16x64xf32>
    %99 = vector.broadcast %17 : vector<1x64xf32> to vector<16x64xf32>
    %100 = arith.addf %98, %99 : vector<16x64xf32>
    %101 = arith.addf %3, %100 : vector<16x64xf32>
    %c0_39 = arith.constant 0 : index
    %c0_40 = arith.constant 0 : index
    %c0_41 = arith.constant 0 : index
    %102 = vector.load %arg9[%c0_39, %c0_40, %c0_41] : memref<1x1x64xf32, #tpu.memory_space<vmem>>, vector<1x1x64xf32>
    %103 = vector.shape_cast %102 : vector<1x1x64xf32> to vector<1x64xf32>
    %c0_42 = arith.constant 0 : index
    %c0_43 = arith.constant 0 : index
    %c0_44 = arith.constant 0 : index
    %104 = vector.load %arg10[%c0_42, %c0_43, %c0_44] : memref<1x1x64xf32, #tpu.memory_space<vmem>>, vector<1x1x64xf32>
    %105 = vector.shape_cast %104 : vector<1x1x64xf32> to vector<1x64xf32>
    %cst_45 = arith.constant dense<0.000000e+00> : vector<16xf32>
    %106 = vector.multi_reduction <add>, %101, %cst_45 [1] : vector<16x64xf32> to vector<16xf32>
    %107 = vector.shape_cast %106 : vector<16xf32> to vector<16x1xf32>
    %cst_46 = arith.constant 6.400000e+01 : f32
    %108 = vector.broadcast %cst_46 : f32 to vector<16x1xf32>
    %109 = arith.divf %107, %108 : vector<16x1xf32>
    %110 = vector.broadcast %109 : vector<16x1xf32> to vector<16x64xf32>
    %111 = arith.subf %101, %110 : vector<16x64xf32>
    %112 = arith.mulf %111, %111 : vector<16x64xf32>
    %cst_47 = arith.constant dense<0.000000e+00> : vector<16xf32>
    %113 = vector.multi_reduction <add>, %112, %cst_47 [1] : vector<16x64xf32> to vector<16xf32>
    %114 = vector.shape_cast %113 : vector<16xf32> to vector<16x1xf32>
    %cst_48 = arith.constant 6.400000e+01 : f32
    %115 = vector.broadcast %cst_48 : f32 to vector<16x1xf32>
    %116 = arith.divf %114, %115 : vector<16x1xf32>
    %cst_49 = arith.constant 9.99999974E-6 : f32
    %117 = vector.broadcast %cst_49 : f32 to vector<16x1xf32>
    %118 = arith.addf %116, %117 : vector<16x1xf32>
    %119 = math.rsqrt %118 : vector<16x1xf32>
    %120 = vector.broadcast %119 : vector<16x1xf32> to vector<16x64xf32>
    %121 = arith.mulf %111, %120 : vector<16x64xf32>
    %122 = vector.broadcast %103 : vector<1x64xf32> to vector<16x64xf32>
    %123 = arith.mulf %121, %122 : vector<16x64xf32>
    %124 = vector.broadcast %105 : vector<1x64xf32> to vector<16x64xf32>
    %125 = arith.addf %123, %124 : vector<16x64xf32>
    %c0_50 = arith.constant 0 : index
    %c0_51 = arith.constant 0 : index
    %c0_52 = arith.constant 0 : index
    %126 = vector.load %arg11[%c0_50, %c0_51, %c0_52] : memref<1x64x256xf32, #tpu.memory_space<vmem>>, vector<1x64x256xf32>
    %127 = vector.shape_cast %126 : vector<1x64x256xf32> to vector<64x256xf32>
    %cst_53 = arith.constant dense<0.000000e+00> : vector<16x256xf32>
    %128 = tpu.matmul %125, %127, %cst_53 {dimension_numbers = #tpu.dot_dimension_numbers<[1], [0], [0], [1], [0, 0, 1, 1], [], []>} : vector<16x64xf32>, vector<64x256xf32>, vector<16x256xf32> -> vector<16x256xf32>
    %c0_54 = arith.constant 0 : index
    %c0_55 = arith.constant 0 : index
    %c0_56 = arith.constant 0 : index
    %129 = vector.load %arg12[%c0_54, %c0_55, %c0_56] : memref<1x1x256xf32, #tpu.memory_space<vmem>>, vector<1x1x256xf32>
    %130 = vector.shape_cast %129 : vector<1x1x256xf32> to vector<1x256xf32>
    %131 = vector.broadcast %130 : vector<1x256xf32> to vector<16x256xf32>
    %132 = arith.addf %128, %131 : vector<16x256xf32>
    %cst_57 = arith.constant 0.000000e+00 : f32
    %133 = vector.broadcast %cst_57 : f32 to vector<16x256xf32>
    %134 = arith.maximumf %132, %133 : vector<16x256xf32>
    %c0_58 = arith.constant 0 : index
    %c0_59 = arith.constant 0 : index
    %c0_60 = arith.constant 0 : index
    %135 = vector.load %arg13[%c0_58, %c0_59, %c0_60] : memref<1x256x64xf32, #tpu.memory_space<vmem>>, vector<1x256x64xf32>
    %136 = vector.shape_cast %135 : vector<1x256x64xf32> to vector<256x64xf32>
    %cst_61 = arith.constant dense<0.000000e+00> : vector<16x64xf32>
    %137 = tpu.matmul %134, %136, %cst_61 {dimension_numbers = #tpu.dot_dimension_numbers<[1], [0], [0], [1], [0, 0, 1, 1], [], []>} : vector<16x256xf32>, vector<256x64xf32>, vector<16x64xf32> -> vector<16x64xf32>
    %c0_62 = arith.constant 0 : index
    %c0_63 = arith.constant 0 : index
    %c0_64 = arith.constant 0 : index
    %138 = vector.load %arg14[%c0_62, %c0_63, %c0_64] : memref<1x1x64xf32, #tpu.memory_space<vmem>>, vector<1x1x64xf32>
    %139 = vector.shape_cast %138 : vector<1x1x64xf32> to vector<1x64xf32>
    %140 = vector.broadcast %139 : vector<1x64xf32> to vector<16x64xf32>
    %141 = arith.addf %137, %140 : vector<16x64xf32>
    %142 = arith.addf %125, %141 : vector<16x64xf32>
    %c0_65 = arith.constant 0 : index
    %c0_66 = arith.constant 0 : index
    %c0_67 = arith.constant 0 : index
    %143 = vector.load %arg15[%c0_65, %c0_66, %c0_67] : memref<1x1x64xf32, #tpu.memory_space<vmem>>, vector<1x1x64xf32>
    %144 = vector.shape_cast %143 : vector<1x1x64xf32> to vector<1x64xf32>
    %c0_68 = arith.constant 0 : index
    %c0_69 = arith.constant 0 : index
    %c0_70 = arith.constant 0 : index
    %145 = vector.load %arg16[%c0_68, %c0_69, %c0_70] : memref<1x1x64xf32, #tpu.memory_space<vmem>>, vector<1x1x64xf32>
    %146 = vector.shape_cast %145 : vector<1x1x64xf32> to vector<1x64xf32>
    %cst_71 = arith.constant dense<0.000000e+00> : vector<16xf32>
    %147 = vector.multi_reduction <add>, %142, %cst_71 [1] : vector<16x64xf32> to vector<16xf32>
    %148 = vector.shape_cast %147 : vector<16xf32> to vector<16x1xf32>
    %cst_72 = arith.constant 6.400000e+01 : f32
    %149 = vector.broadcast %cst_72 : f32 to vector<16x1xf32>
    %150 = arith.divf %148, %149 : vector<16x1xf32>
    %151 = vector.broadcast %150 : vector<16x1xf32> to vector<16x64xf32>
    %152 = arith.subf %142, %151 : vector<16x64xf32>
    %153 = arith.mulf %152, %152 : vector<16x64xf32>
    %cst_73 = arith.constant dense<0.000000e+00> : vector<16xf32>
    %154 = vector.multi_reduction <add>, %153, %cst_73 [1] : vector<16x64xf32> to vector<16xf32>
    %155 = vector.shape_cast %154 : vector<16xf32> to vector<16x1xf32>
    %cst_74 = arith.constant 6.400000e+01 : f32
    %156 = vector.broadcast %cst_74 : f32 to vector<16x1xf32>
    %157 = arith.divf %155, %156 : vector<16x1xf32>
    %cst_75 = arith.constant 9.99999974E-6 : f32
    %158 = vector.broadcast %cst_75 : f32 to vector<16x1xf32>
    %159 = arith.addf %157, %158 : vector<16x1xf32>
    %160 = math.rsqrt %159 : vector<16x1xf32>
    %161 = vector.broadcast %160 : vector<16x1xf32> to vector<16x64xf32>
    %162 = arith.mulf %152, %161 : vector<16x64xf32>
    %163 = vector.broadcast %144 : vector<1x64xf32> to vector<16x64xf32>
    %164 = arith.mulf %162, %163 : vector<16x64xf32>
    %165 = vector.broadcast %146 : vector<1x64xf32> to vector<16x64xf32>
    %166 = arith.addf %164, %165 : vector<16x64xf32>
    %c0_76 = arith.constant 0 : index
    %c0_77 = arith.constant 0 : index
    %167 = vector.load %arg23[%c0_76, %c0_77] : memref<16x64xf32, #tpu.memory_space<vmem>>, vector<16x64xf32>
    tpu.vector_store %arg23[%c0_76, %c0_77], %166 {strides = array<i32>} : memref<16x64xf32, #tpu.memory_space<vmem>>, vector<16x64xf32>,
    %c1_i32 = arith.constant 1 : i32
    %168 = arith.cmpi eq, %arg1, %c1_i32 : i32
    %169 = arith.extui %168 : i1 to i32
    %c0_i32_78 = arith.constant 0 : i32
    %170 = arith.cmpi ne, %169, %c0_i32_78 : i32
    scf.if %170 {
      %c0_79 = arith.constant 0 : index
      %c0_80 = arith.constant 0 : index
      %171 = vector.load %arg18[%c0_79, %c0_80] : memref<64x64xf32, #tpu.memory_space<vmem>>, vector<64x64xf32>
      %cst_81 = arith.constant dense<0.000000e+00> : vector<16x64xf32>
      %172 = tpu.matmul %166, %171, %cst_81 {dimension_numbers = #tpu.dot_dimension_numbers<[1], [0], [0], [1], [0, 0, 1, 1], [], []>} : vector<16x64xf32>, vector<64x64xf32>, vector<16x64xf32> -> vector<16x64xf32>
      %c0_82 = arith.constant 0 : index
      %c0_83 = arith.constant 0 : index
      %173 = vector.load %arg19[%c0_82, %c0_83] : memref<1x64xf32, #tpu.memory_space<vmem>>, vector<1x64xf32>
      %174 = vector.broadcast %173 : vector<1x64xf32> to vector<16x64xf32>
      %175 = arith.addf %172, %174 : vector<16x64xf32>
      %c0_84 = arith.constant 0 : index
      %c0_85 = arith.constant 0 : index
      %176 = vector.load %arg17[%c0_84, %c0_85] : memref<16x128xf32, #tpu.memory_space<vmem>>, vector<16x64xf32>
      %c0_86 = arith.constant 0 : index
      %c64 = arith.constant 64 : index
      %177 = vector.load %arg17[%c0_86, %c64] : memref<16x128xf32, #tpu.memory_space<vmem>>, vector<16x64xf32>
      %c0_87 = arith.constant 0 : index
      %c0_88 = arith.constant 0 : index
      %178 = vector.load %arg20[%c0_87, %c0_88] : memref<64x64xf32, #tpu.memory_space<vmem>>, vector<64x64xf32>
      %c0_89 = arith.constant 0 : index
      %c0_90 = arith.constant 0 : index
      %179 = vector.load %arg21[%c0_89, %c0_90] : memref<1x64xf32, #tpu.memory_space<vmem>>, vector<1x64xf32>
      %cst_91 = arith.constant 0.000000e+00 : f32
      %180 = vector.broadcast %cst_91 : f32 to vector<16x64xf32>
      %181 = vector.extract_strided_slice %175 {offsets = [0, 0], sizes = [16, 16], strides = [1, 1]} : vector<16x64xf32> to vector<16x16xf32>
      %182 = vector.extract_strided_slice %176 {offsets = [0, 0], sizes = [16, 16], strides = [1, 1]} : vector<16x64xf32> to vector<16x16xf32>
      %183 = vector.extract_strided_slice %177 {offsets = [0, 0], sizes = [16, 16], strides = [1, 1]} : vector<16x64xf32> to vector<16x16xf32>
      %cst_92 = arith.constant dense<0.000000e+00> : vector<16x16xf32>
      %184 = tpu.matmul %181, %182, %cst_92 {dimension_numbers = #tpu.dot_dimension_numbers<[1], [1], [0], [0], [0, 0, 1, 0], [], []>} : vector<16x16xf32>, vector<16x16xf32>, vector<16x16xf32> -> vector<16x16xf32>
      %cst_93 = arith.constant 2.500000e-01 : f32
      %185 = vector.broadcast %cst_93 : f32 to vector<16x16xf32>
      %186 = arith.mulf %184, %185 : vector<16x16xf32>
      %cst_94 = arith.constant dense<0xFF800000> : vector<16xf32>
      %187 = vector.multi_reduction <maximumf>, %186, %cst_94 [1] : vector<16x16xf32> to vector<16xf32>
      %188 = vector.shape_cast %187 : vector<16xf32> to vector<16x1xf32>
      %189 = vector.broadcast %188 : vector<16x1xf32> to vector<16x16xf32>
      %190 = arith.subf %186, %189 : vector<16x16xf32>
      %191 = math.exp %190 : vector<16x16xf32>
      %cst_95 = arith.constant dense<0.000000e+00> : vector<16xf32>
      %192 = vector.multi_reduction <add>, %191, %cst_95 [1] : vector<16x16xf32> to vector<16xf32>
      %193 = vector.shape_cast %192 : vector<16xf32> to vector<16x1xf32>
      %194 = tpu.reciprocal %193 : vector<16x1xf32> -> vector<16x1xf32>
      %195 = vector.broadcast %194 : vector<16x1xf32> to vector<16x16xf32>
      %196 = arith.mulf %191, %195 : vector<16x16xf32>
      %cst_96 = arith.constant dense<0.000000e+00> : vector<16x16xf32>
      %197 = tpu.matmul %196, %183, %cst_96 {dimension_numbers = #tpu.dot_dimension_numbers<[1], [0], [0], [1], [0, 0, 1, 1], [], []>} : vector<16x16xf32>, vector<16x16xf32>, vector<16x16xf32> -> vector<16x16xf32>
      %198 = vector.extract_strided_slice %178 {offsets = [0, 0], sizes = [16, 64], strides = [1, 1]} : vector<64x64xf32> to vector<16x64xf32>
      %cst_97 = arith.constant dense<0.000000e+00> : vector<16x64xf32>
      %199 = tpu.matmul %197, %198, %cst_97 {dimension_numbers = #tpu.dot_dimension_numbers<[1], [0], [0], [1], [0, 0, 1, 1], [], []>} : vector<16x16xf32>, vector<16x64xf32>, vector<16x64xf32> -> vector<16x64xf32>
      %200 = arith.addf %180, %199 : vector<16x64xf32>
      %201 = vector.extract_strided_slice %175 {offsets = [0, 16], sizes = [16, 16], strides = [1, 1]} : vector<16x64xf32> to vector<16x16xf32>
      %202 = vector.extract_strided_slice %176 {offsets = [0, 16], sizes = [16, 16], strides = [1, 1]} : vector<16x64xf32> to vector<16x16xf32>
      %203 = vector.extract_strided_slice %177 {offsets = [0, 16], sizes = [16, 16], strides = [1, 1]} : vector<16x64xf32> to vector<16x16xf32>
      %cst_98 = arith.constant dense<0.000000e+00> : vector<16x16xf32>
      %204 = tpu.matmul %201, %202, %cst_98 {dimension_numbers = #tpu.dot_dimension_numbers<[1], [1], [0], [0], [0, 0, 1, 0], [], []>} : vector<16x16xf32>, vector<16x16xf32>, vector<16x16xf32> -> vector<16x16xf32>
      %cst_99 = arith.constant 2.500000e-01 : f32
      %205 = vector.broadcast %cst_99 : f32 to vector<16x16xf32>
      %206 = arith.mulf %204, %205 : vector<16x16xf32>
      %cst_100 = arith.constant dense<0xFF800000> : vector<16xf32>
      %207 = vector.multi_reduction <maximumf>, %206, %cst_100 [1] : vector<16x16xf32> to vector<16xf32>
      %208 = vector.shape_cast %207 : vector<16xf32> to vector<16x1xf32>
      %209 = vector.broadcast %208 : vector<16x1xf32> to vector<16x16xf32>
      %210 = arith.subf %206, %209 : vector<16x16xf32>
      %211 = math.exp %210 : vector<16x16xf32>
      %cst_101 = arith.constant dense<0.000000e+00> : vector<16xf32>
      %212 = vector.multi_reduction <add>, %211, %cst_101 [1] : vector<16x16xf32> to vector<16xf32>
      %213 = vector.shape_cast %212 : vector<16xf32> to vector<16x1xf32>
      %214 = tpu.reciprocal %213 : vector<16x1xf32> -> vector<16x1xf32>
      %215 = vector.broadcast %214 : vector<16x1xf32> to vector<16x16xf32>
      %216 = arith.mulf %211, %215 : vector<16x16xf32>
      %cst_102 = arith.constant dense<0.000000e+00> : vector<16x16xf32>
      %217 = tpu.matmul %216, %203, %cst_102 {dimension_numbers = #tpu.dot_dimension_numbers<[1], [0], [0], [1], [0, 0, 1, 1], [], []>} : vector<16x16xf32>, vector<16x16xf32>, vector<16x16xf32> -> vector<16x16xf32>
      %218 = vector.extract_strided_slice %178 {offsets = [16, 0], sizes = [16, 64], strides = [1, 1]} : vector<64x64xf32> to vector<16x64xf32>
      %cst_103 = arith.constant dense<0.000000e+00> : vector<16x64xf32>
      %219 = tpu.matmul %217, %218, %cst_103 {dimension_numbers = #tpu.dot_dimension_numbers<[1], [0], [0], [1], [0, 0, 1, 1], [], []>} : vector<16x16xf32>, vector<16x64xf32>, vector<16x64xf32> -> vector<16x64xf32>
      %220 = arith.addf %200, %219 : vector<16x64xf32>
      %221 = vector.extract_strided_slice %175 {offsets = [0, 32], sizes = [16, 16], strides = [1, 1]} : vector<16x64xf32> to vector<16x16xf32>
      %222 = vector.extract_strided_slice %176 {offsets = [0, 32], sizes = [16, 16], strides = [1, 1]} : vector<16x64xf32> to vector<16x16xf32>
      %223 = vector.extract_strided_slice %177 {offsets = [0, 32], sizes = [16, 16], strides = [1, 1]} : vector<16x64xf32> to vector<16x16xf32>
      %cst_104 = arith.constant dense<0.000000e+00> : vector<16x16xf32>
      %224 = tpu.matmul %221, %222, %cst_104 {dimension_numbers = #tpu.dot_dimension_numbers<[1], [1], [0], [0], [0, 0, 1, 0], [], []>} : vector<16x16xf32>, vector<16x16xf32>, vector<16x16xf32> -> vector<16x16xf32>
      %cst_105 = arith.constant 2.500000e-01 : f32
      %225 = vector.broadcast %cst_105 : f32 to vector<16x16xf32>
      %226 = arith.mulf %224, %225 : vector<16x16xf32>
      %cst_106 = arith.constant dense<0xFF800000> : vector<16xf32>
      %227 = vector.multi_reduction <maximumf>, %226, %cst_106 [1] : vector<16x16xf32> to vector<16xf32>
      %228 = vector.shape_cast %227 : vector<16xf32> to vector<16x1xf32>
      %229 = vector.broadcast %228 : vector<16x1xf32> to vector<16x16xf32>
      %230 = arith.subf %226, %229 : vector<16x16xf32>
      %231 = math.exp %230 : vector<16x16xf32>
      %cst_107 = arith.constant dense<0.000000e+00> : vector<16xf32>
      %232 = vector.multi_reduction <add>, %231, %cst_107 [1] : vector<16x16xf32> to vector<16xf32>
      %233 = vector.shape_cast %232 : vector<16xf32> to vector<16x1xf32>
      %234 = tpu.reciprocal %233 : vector<16x1xf32> -> vector<16x1xf32>
      %235 = vector.broadcast %234 : vector<16x1xf32> to vector<16x16xf32>
      %236 = arith.mulf %231, %235 : vector<16x16xf32>
      %cst_108 = arith.constant dense<0.000000e+00> : vector<16x16xf32>
      %237 = tpu.matmul %236, %223, %cst_108 {dimension_numbers = #tpu.dot_dimension_numbers<[1], [0], [0], [1], [0, 0, 1, 1], [], []>} : vector<16x16xf32>, vector<16x16xf32>, vector<16x16xf32> -> vector<16x16xf32>
      %238 = vector.extract_strided_slice %178 {offsets = [32, 0], sizes = [16, 64], strides = [1, 1]} : vector<64x64xf32> to vector<16x64xf32>
      %cst_109 = arith.constant dense<0.000000e+00> : vector<16x64xf32>
      %239 = tpu.matmul %237, %238, %cst_109 {dimension_numbers = #tpu.dot_dimension_numbers<[1], [0], [0], [1], [0, 0, 1, 1], [], []>} : vector<16x16xf32>, vector<16x64xf32>, vector<16x64xf32> -> vector<16x64xf32>
      %240 = arith.addf %220, %239 : vector<16x64xf32>
      %241 = vector.extract_strided_slice %175 {offsets = [0, 48], sizes = [16, 16], strides = [1, 1]} : vector<16x64xf32> to vector<16x16xf32>
      %242 = vector.extract_strided_slice %176 {offsets = [0, 48], sizes = [16, 16], strides = [1, 1]} : vector<16x64xf32> to vector<16x16xf32>
      %243 = vector.extract_strided_slice %177 {offsets = [0, 48], sizes = [16, 16], strides = [1, 1]} : vector<16x64xf32> to vector<16x16xf32>
      %cst_110 = arith.constant dense<0.000000e+00> : vector<16x16xf32>
      %244 = tpu.matmul %241, %242, %cst_110 {dimension_numbers = #tpu.dot_dimension_numbers<[1], [1], [0], [0], [0, 0, 1, 0], [], []>} : vector<16x16xf32>, vector<16x16xf32>, vector<16x16xf32> -> vector<16x16xf32>
      %cst_111 = arith.constant 2.500000e-01 : f32
      %245 = vector.broadcast %cst_111 : f32 to vector<16x16xf32>
      %246 = arith.mulf %244, %245 : vector<16x16xf32>
      %cst_112 = arith.constant dense<0xFF800000> : vector<16xf32>
      %247 = vector.multi_reduction <maximumf>, %246, %cst_112 [1] : vector<16x16xf32> to vector<16xf32>
      %248 = vector.shape_cast %247 : vector<16xf32> to vector<16x1xf32>
      %249 = vector.broadcast %248 : vector<16x1xf32> to vector<16x16xf32>
      %250 = arith.subf %246, %249 : vector<16x16xf32>
      %251 = math.exp %250 : vector<16x16xf32>
      %cst_113 = arith.constant dense<0.000000e+00> : vector<16xf32>
      %252 = vector.multi_reduction <add>, %251, %cst_113 [1] : vector<16x16xf32> to vector<16xf32>
      %253 = vector.shape_cast %252 : vector<16xf32> to vector<16x1xf32>
      %254 = tpu.reciprocal %253 : vector<16x1xf32> -> vector<16x1xf32>
      %255 = vector.broadcast %254 : vector<16x1xf32> to vector<16x16xf32>
      %256 = arith.mulf %251, %255 : vector<16x16xf32>
      %cst_114 = arith.constant dense<0.000000e+00> : vector<16x16xf32>
      %257 = tpu.matmul %256, %243, %cst_114 {dimension_numbers = #tpu.dot_dimension_numbers<[1], [0], [0], [1], [0, 0, 1, 1], [], []>} : vector<16x16xf32>, vector<16x16xf32>, vector<16x16xf32> -> vector<16x16xf32>
      %258 = vector.extract_strided_slice %178 {offsets = [48, 0], sizes = [16, 64], strides = [1, 1]} : vector<64x64xf32> to vector<16x64xf32>
      %cst_115 = arith.constant dense<0.000000e+00> : vector<16x64xf32>
      %259 = tpu.matmul %257, %258, %cst_115 {dimension_numbers = #tpu.dot_dimension_numbers<[1], [0], [0], [1], [0, 0, 1, 1], [], []>} : vector<16x16xf32>, vector<16x64xf32>, vector<16x64xf32> -> vector<16x64xf32>
      %260 = arith.addf %240, %259 : vector<16x64xf32>
      %261 = vector.broadcast %179 : vector<1x64xf32> to vector<16x64xf32>
      %262 = arith.addf %260, %261 : vector<16x64xf32>
      %263 = tpu.transpose %262, [1, 0] : vector<16x64xf32> -> vector<64x16xf32>
      %c0_116 = arith.constant 0 : index
      %c0_117 = arith.constant 0 : index
      %c0_118 = arith.constant 0 : index
      %264 = vector.load %arg22[%c0_116, %c0_117, %c0_118] : memref<1x64x16xf32, #tpu.memory_space<vmem>>, vector<1x64x16xf32>
      %265 = vector.shape_cast %264 : vector<1x64x16xf32> to vector<64x16xf32>
      %266 = vector.shape_cast %263 : vector<64x16xf32> to vector<1x64x16xf32>
      tpu.vector_store %arg22[%c0_116, %c0_117, %c0_118], %266 {strides = array<i32>} : memref<1x64x16xf32, #tpu.memory_space<vmem>>, vector<1x64x16xf32>,
    } else {
    }
    return
  }
  func.func @transform_0(%arg0: i32, %arg1: i32) -> (i32, i32, i32) {
    %c0_i32 = arith.constant 0 : i32
    %c0_i32_0 = arith.constant 0 : i32
    %c0_i32_1 = arith.constant 0 : i32
    return %arg0, %c0_i32, %c0_i32_0 : i32, i32, i32
  }
  func.func @transform_1(%arg0: i32, %arg1: i32) -> (i32, i32) {
    %c0_i32 = arith.constant 0 : i32
    %c0_i32_0 = arith.constant 0 : i32
    %c0_i32_1 = arith.constant 0 : i32
    return %c0_i32, %c0_i32_0 : i32, i32
  }
  func.func @transform_2(%arg0: i32, %arg1: i32) -> (i32, i32) {
    %c0_i32 = arith.constant 0 : i32
    %c0_i32_0 = arith.constant 0 : i32
    %c0_i32_1 = arith.constant 0 : i32
    return %c0_i32, %c0_i32_0 : i32, i32
  }
  func.func @transform_3(%arg0: i32, %arg1: i32) -> (i32, i32, i32) {
    %c0_i32 = arith.constant 0 : i32
    %c0_i32_0 = arith.constant 0 : i32
    %c0_i32_1 = arith.constant 0 : i32
    return %arg1, %c0_i32, %c0_i32_0 : i32, i32, i32
  }
  func.func @transform_4(%arg0: i32, %arg1: i32) -> (i32, i32, i32) {
    %c0_i32 = arith.constant 0 : i32
    %c0_i32_0 = arith.constant 0 : i32
    %c0_i32_1 = arith.constant 0 : i32
    return %arg1, %c0_i32, %c0_i32_0 : i32, i32, i32
  }
  func.func @transform_5(%arg0: i32, %arg1: i32) -> (i32, i32, i32) {
    %c0_i32 = arith.constant 0 : i32
    %c0_i32_0 = arith.constant 0 : i32
    %c0_i32_1 = arith.constant 0 : i32
    return %arg1, %c0_i32, %c0_i32_0 : i32, i32, i32
  }
  func.func @transform_6(%arg0: i32, %arg1: i32) -> (i32, i32, i32) {
    %c0_i32 = arith.constant 0 : i32
    %c0_i32_0 = arith.constant 0 : i32
    %c0_i32_1 = arith.constant 0 : i32
    return %arg1, %c0_i32, %c0_i32_0 : i32, i32, i32
  }
  func.func @transform_7(%arg0: i32, %arg1: i32) -> (i32, i32, i32) {
    %c0_i32 = arith.constant 0 : i32
    %c0_i32_0 = arith.constant 0 : i32
    %c0_i32_1 = arith.constant 0 : i32
    return %arg1, %c0_i32, %c0_i32_0 : i32, i32, i32
  }
  func.func @transform_8(%arg0: i32, %arg1: i32) -> (i32, i32, i32) {
    %c0_i32 = arith.constant 0 : i32
    %c0_i32_0 = arith.constant 0 : i32
    %c0_i32_1 = arith.constant 0 : i32
    return %arg1, %c0_i32, %c0_i32_0 : i32, i32, i32
  }
  func.func @transform_9(%arg0: i32, %arg1: i32) -> (i32, i32, i32) {
    %c0_i32 = arith.constant 0 : i32
    %c0_i32_0 = arith.constant 0 : i32
    %c0_i32_1 = arith.constant 0 : i32
    return %arg1, %c0_i32, %c0_i32_0 : i32, i32, i32
  }
  func.func @transform_10(%arg0: i32, %arg1: i32) -> (i32, i32, i32) {
    %c0_i32 = arith.constant 0 : i32
    %c0_i32_0 = arith.constant 0 : i32
    %c0_i32_1 = arith.constant 0 : i32
    return %arg1, %c0_i32, %c0_i32_0 : i32, i32, i32
  }
  func.func @transform_11(%arg0: i32, %arg1: i32) -> (i32, i32, i32) {
    %c0_i32 = arith.constant 0 : i32
    %c0_i32_0 = arith.constant 0 : i32
    %c0_i32_1 = arith.constant 0 : i32
    return %arg1, %c0_i32, %c0_i32_0 : i32, i32, i32
  }
  func.func @transform_12(%arg0: i32, %arg1: i32) -> (i32, i32, i32) {
    %c0_i32 = arith.constant 0 : i32
    %c0_i32_0 = arith.constant 0 : i32
    %c0_i32_1 = arith.constant 0 : i32
    return %arg1, %c0_i32, %c0_i32_0 : i32, i32, i32
  }
  func.func @transform_13(%arg0: i32, %arg1: i32) -> (i32, i32, i32) {
    %c0_i32 = arith.constant 0 : i32
    %c0_i32_0 = arith.constant 0 : i32
    %c0_i32_1 = arith.constant 0 : i32
    return %arg1, %c0_i32, %c0_i32_0 : i32, i32, i32
  }
  func.func @transform_14(%arg0: i32, %arg1: i32) -> (i32, i32, i32) {
    %c0_i32 = arith.constant 0 : i32
    %c0_i32_0 = arith.constant 0 : i32
    %c0_i32_1 = arith.constant 0 : i32
    return %arg1, %c0_i32, %c0_i32_0 : i32, i32, i32
  }
  func.func @transform_15(%arg0: i32, %arg1: i32) -> (i32, i32) {
    %c0_i32 = arith.constant 0 : i32
    %c0_i32_0 = arith.constant 0 : i32
    %c0_i32_1 = arith.constant 0 : i32
    return %c0_i32, %c0_i32_0 : i32, i32
  }
  func.func @transform_16(%arg0: i32, %arg1: i32) -> (i32, i32) {
    %c0_i32 = arith.constant 0 : i32
    %c0_i32_0 = arith.constant 0 : i32
    %c0_i32_1 = arith.constant 0 : i32
    return %c0_i32, %c0_i32_0 : i32, i32
  }
  func.func @transform_17(%arg0: i32, %arg1: i32) -> (i32, i32) {
    %c0_i32 = arith.constant 0 : i32
    %c0_i32_0 = arith.constant 0 : i32
    %c0_i32_1 = arith.constant 0 : i32
    return %c0_i32, %c0_i32_0 : i32, i32
  }
  func.func @transform_18(%arg0: i32, %arg1: i32) -> (i32, i32) {
    %c0_i32 = arith.constant 0 : i32
    %c0_i32_0 = arith.constant 0 : i32
    %c0_i32_1 = arith.constant 0 : i32
    return %c0_i32, %c0_i32_0 : i32, i32
  }
  func.func @transform_19(%arg0: i32, %arg1: i32) -> (i32, i32) {
    %c0_i32 = arith.constant 0 : i32
    %c0_i32_0 = arith.constant 0 : i32
    %c0_i32_1 = arith.constant 0 : i32
    return %c0_i32, %c0_i32_0 : i32, i32
  }
  func.func @transform_20(%arg0: i32, %arg1: i32) -> (i32, i32, i32) {
    %c0_i32 = arith.constant 0 : i32
    %c0_i32_0 = arith.constant 0 : i32
    %c0_i32_1 = arith.constant 0 : i32
    return %arg0, %c0_i32, %c0_i32_0 : i32, i32, i32
  }
}

</mosaic_0001>

<bundles_post_ra>
// kernel: style_token_encoder_forward.1
= control target key start
LH: loop header
LB: loop body
LE: loop exit
PB: predicated region body
PF: predicated region fallthrough
CT: control target
= control target key end

     0   :  { %s7833_s0 = inlined_call_operand.hbm [shape: f32[2,16,16], index: 0, kind: input, shape index: {}]   ;;  %s7834_s1 = inlined_call_operand.hbm [shape: f32[16,64], index: 1, kind: input, shape index: {}]   ;;  %s7835_s2 = inlined_call_operand.hbm [shape: f32[1,64], index: 2, kind: input, shape index: {}]   ;;  %s7836_s3 = inlined_call_operand.hbm [shape: f32[2,64,192], index: 3, kind: input, shape index: {}]   ;;  %s7837_s4 = inlined_call_operand.hbm [shape: f32[2,1,192], index: 4, kind: input, shape index: {}]   ;;  %s7838_s5 = inlined_call_operand.hbm [shape: f32[2,64,64], index: 5, kind: input, shape index: {}]   ;;  %s7839_s6 = inlined_call_operand.hbm [shape: f32[2,1,64], index: 6, kind: input, shape index: {}]   ;;  %s7840_s7 = inlined_call_operand.hbm [shape: f32[2,1,64], index: 7, kind: input, shape index: {}]   ;;  %s7841_s8 = inlined_call_operand.hbm [shape: f32[2,1,64], index: 8, kind: input, shape index: {}]   ;;  %s7842_s9 = inlined_call_operand.hbm [shape: f32[2,64,256], index: 9, kind: input, shape index: {}]   ;;  %s7843_s10 = inlined_call_operand.hbm [shape: f32[2,1,256], index: 10, kind: input, shape index: {}]   ;;  %s7844_s11 = inlined_call_operand.hbm [shape: f32[2,256,64], index: 11, kind: input, shape index: {}]   ;;  %s7845_s12 = inlined_call_operand.hbm [shape: f32[2,1,64], index: 12, kind: input, shape index: {}]   ;;  %s7846_s13 = inlined_call_operand.hbm [shape: f32[2,1,64], index: 13, kind: input, shape index: {}]   ;;  %s7847_s14 = inlined_call_operand.hbm [shape: f32[2,1,64], index: 14, kind: input, shape index: {}]   ;;  %s7848_s15 = inlined_call_operand.hbm [shape: f32[16,128], index: 15, kind: input, shape index: {}]   ;;  %s7849_s16 = inlined_call_operand.hbm [shape: f32[64,64], index: 16, kind: input, shape index: {}]   ;;  %s7850_s17 = inlined_call_operand.hbm [shape: f32[1,64], index: 17, kind: input, shape index: {}]   ;;  %s7851_s18 = inlined_call_operand.hbm [shape: f32[64,64], index: 18, kind: input, shape index: {}]   ;;  %s7852_s19 = inlined_call_operand.hbm [shape: f32[1,64], index: 19, kind: input, shape index: {}]   ;;  %s7853_s20 = inlined_call_operand.hbm [shape: f32[2,64,16], index: 20, kind: output, shape index: {}]  }
   0x1   :  { %7915 = sst [smem:[#allocation59_spill]] %s7833_s0 }
   0x2   :  { %7916 = sst [smem:[#allocation60_spill]] %s7834_s1 }
   0x3   :  { %7917 = sst [smem:[#allocation61_spill]] %s7835_s2 }
   0x4   :  { %7918 = sst [smem:[#allocation62_spill]] %s7836_s3 }
   0x5   :  { %7919 = sst [smem:[#allocation63_spill]] %s7837_s4 }
   0x6   :  { %7920 = sst [smem:[#allocation64_spill]] %s7838_s5 }
   0x7   :  { %7921 = sst [smem:[#allocation65_spill]] %s7839_s6 }
   0x8   :  { %7922 = sst [smem:[#allocation66_spill]] %s7840_s7 }
   0x9   :  { %7923 = sst [smem:[#allocation67_spill]] %s7841_s8 }
   0xa   :  { %7924 = sst [smem:[#allocation68_spill]] %s7842_s9 }
   0xb   :  { %7925 = sst [smem:[#allocation69_spill]] %s7843_s10 }
   0xc   :  { %7926 = sst [smem:[#allocation70_spill]] %s7844_s11 }
   0xd   :  { %7927 = sst [smem:[#allocation71_spill]] %s7845_s12 }
   0xe   :  { %7928 = sst [smem:[#allocation72_spill]] %s7846_s13 }
   0xf   :  { %7929 = sst [smem:[#allocation73_spill]] %s7847_s14 }
  0x10   :  { %7930 = sst [smem:[#allocation74_spill]] %s7848_s15 }
  0x11   :  { %7931 = sst [smem:[#allocation75_spill]] %s7849_s16 }
  0x12   :  { %7932 = sst [smem:[#allocation76_spill]] %s7850_s17 }
  0x13   :  { %7933 = sst [smem:[#allocation77_spill]] %s7851_s18 }
  0x14   :  { %7934 = sst [smem:[#allocation78_spill]] %s7853_s20 }
  0x15   :  { %25 = vsyncpa [#allocation4], 0 }
  0x16   :  { %27 = vsyncpa [#allocation4 + $0x1], 0 }
  0x17   :  { %28 = vsyncpa [#allocation7], 0 }
  0x18   :  { %29 = vsyncpa [#allocation10], 0 }
  0x19   :  { %31 = vsyncpa [#allocation10 + $0x1], 0 }
  0x1a   :  { %32 = vsyncpa [#allocation13], 0 }
  0x1b   :  { %34 = vsyncpa [#allocation13 + $0x1], 0 }
  0x1c   :  { %35 = vsyncpa [#allocation16], 0 }
  0x1d   :  { %37 = vsyncpa [#allocation16 + $0x1], 0 }
  0x1e   :  { %38 = vsyncpa [#allocation19], 0 }
  0x1f   :  { %40 = vsyncpa [#allocation19 + $0x1], 0 }
  0x20   :  { %41 = vsyncpa [#allocation22], 0 }
  0x21   :  { %43 = vsyncpa [#allocation22 + $0x1], 0 }
  0x22   :  { %44 = vsyncpa [#allocation25], 0 }
  0x23   :  { %46 = vsyncpa [#allocation25 + $0x1], 0 }
  0x24   :  { %47 = vsyncpa [#allocation28], 0 }
  0x25   :  { %48 = vsyncpa [#allocation31], 0 }
  0x26   :  { %49 = vsyncpa [#allocation34], 0 }
  0x27   :  { %50 = vsyncpa [#allocation5], 0 }
  0x28   :  { %52 = vsyncpa [#allocation5 + $0x1], 0  ;;  %s6587_s1 = smov 0   ;;  %s6589_s22 = smov 0  }
  0x29   :  { %s6591_s23 = smov 0   ;;  %s6593_s24 = smov 0  }
  0x2a   :  { %s6595_s2 = smov 0   ;;  %s6597_s25 = smov 0  }
  0x2b   :  { %s6599_s3 = smov 0   ;;  %s6601_s26 = smov 0  }
  0x2c   :  { %s6603_s27 = smov 0   ;;  %s6605_s28 = smov 0  }
  0x2d   :  { %s6607_s4 = smov 0  }
  0x2e LB: > { %7935 = sst [smem:[#allocation48_spill]] %s6402_s22  ;;  %s6641_s29 = sadd.s32 4294967295, %s6438_s4   ;;  %s6438_s4 = sphi %s6607_s4, %s58_s4   ;;  %s6434_s28 = sphi %s6605_s28, %s8054_s28   ;;  %s6430_s27 = sphi %s6603_s27, %s8053_s27   ;;  %s6426_s26 = sphi %s6601_s26, %s8046_s26   ;;  %s6422_s3 = sphi %s6599_s3, %s8052_s3   ;;  %s6418_s25 = sphi %s6597_s25, %s8051_s25   ;;  %s6414_s2 = sphi %s6595_s2, %s8050_s2   ;;  %s6410_s24 = sphi %s6593_s24, %s8049_s24   ;;  %s6406_s23 = sphi %s6591_s23, %s8043_s23   ;;  %s6402_s22 = sphi %s6589_s22, %s8042_s22   ;;  %s6398_s1 = sphi %s6587_s1, %s8048_s1  }
  0x2f   : > { %7936 = sst [smem:[#allocation49_spill]] %s6406_s23  ;;  %p158_p0 = scmp.ne.s32.totalorder %s6402_s22, %s6398_s1 }
  0x30   : > { %7937 = sst [smem:[#allocation50_spill]] %s6410_s24  ;;  %p7871_p1 = scmp.eq.s32.totalorder %s6641_s29, 0 }
  0x31   : > { %7938 = sst [smem:[#allocation51_spill]] %s6414_s2  ;;  %p4594_p2 = scmp.ge.s32.totalorder %s6438_s4, 1 }
  0x32   : > { %7939 = sst [smem:[#allocation52_spill]] %s6418_s25  ;;  %p586_p3 = scmp.lt.s32.totalorder %s6438_s4, 5 }
  0x33   : > { %7940 = sst [smem:[#allocation53_spill]] %s6422_s3  ;;  %p6649_p4 = por %p158_p0, %p7871_p1 }
  0x34   : > { %7941 = sst [smem:[#allocation54_spill]] %s6426_s26  ;;  %p6653_p5 = pnand %p4594_p2, %p586_p3 }
  0x35   : > { %7942 = sst [smem:[#allocation55_spill]] %s6434_s28  ;;  %s6440_s21 = smov [#allocation6]  }
  0x36   : > { %7943 = sst [smem:[#allocation56_spill]] %s6641_s29  ;;  %s598_s20 = sshll.u32 %s6440_s21, 4  ;;  %s6657_s20 = int_to_ptr.vmem [resolvable:$true] %s598_s20 }
  0x37   : > { %s7944_s30 = scalar_select %p6649_p4, 1, 0 }
  0x38   : > { %s7946_s0 = scalar_select %p6653_p5, 1, 0 }
  0x39   : > { %7945 = sst [smem:[#allocation57_spill]] %s7944_s30  ;;  %p5348_p6 = pneg %p6653_p5 }
  0x3a   : > { %7947 = sst [smem:[#allocation58_spill]] %s7946_s0  ;;  %s6441_s26 = smov [#allocation27]  }
  0x3b   : > { %p6663_p7 = pnand %p5348_p6, %p7871_p1  ;;  %s622_s3 = sshll.u32 %s6441_s26, 4  ;;  %s6667_s3 = int_to_ptr.vmem [resolvable:$true] %s622_s3 }
  0x3c   : > { %s6442_s30 = smov [#allocation30]   ;;  %s7949_s21 = sld [smem:[#allocation60_spill]] }
  0x3d   : > { %s7948_s1 = scalar_select %p6663_p7, 1, 0 }
  0x3e   : > { %s6669_s14 = sshll.u32 %s6442_s30, 4  ;;  %p6679_p9 = pneg %p6663_p7  ;;  %s650_s14 = int_to_ptr.vmem [resolvable:$true] %s6669_s14 }
  0x40   : > { %s7950_s29 = scalar_select %p6679_p9, 1, 0 }
  0x42   : > { %s5690_s8 = scalar_lea.hbm %s7949_s21, 256 }
  0x43   : > { %p5691_p8 = scmp.ne.s32.totalorder %s7949_s21, %s5690_s8  ;;  %p5697_p12 = scmp.lt.u32.totalorder %s5690_s8, %s7949_s21 }
  0x45   : > { %p5693_p10 = pnand %p6679_p9, %p5691_p8 }
  0x47   : > { %p5694_p11 = pneg %p5693_p10 }
  0x49   : > { %p5699_p13 = pnand %p5697_p12, %p5694_p11 }
  0x4b   : > { %5702 = shalt.err (!%p5699_p13)
}
  0x4c   : > { %s5703_s6 = scalar_lea.vmem %s6657_s20, 256  ;;  %p5711_p6 = scmp.lt.s32.totalorder %s6657_s20, %s6657_s20 }
  0x4d   : > { %p5704_p0 = scmp.ne.s32.totalorder %s6657_s20, %s5703_s6  ;;  %p5712_p1 = scmp.lt.s32.totalorder %s5703_s6, %s5703_s6 }
  0x4f   : > { %p5706_p2 = pnand %p5704_p0, %p6679_p9  ;;  %p5713_p8 = por %p5712_p1, %p5711_p6 }
  0x51   : > { %p5707_p3 = pneg %p5706_p2 }
  0x53   : > { %p5714_p10 = pnand %p5713_p8, %p5707_p3 }
  0x55   : > { %5717 = shalt.err (!%p5714_p10)
}
  0x56   : > { %s7878_s10 = smov 128   ;;  %s7882_s8 = smov 8  }
  0x57   : > { %5351 = dma.hbm_to_vmem [thread:$0]  (!%p6663_p7), %s7949_s21, 256, %s6657_s20, [#allocation7], %s7878_s10, %s7878_s10, %s7882_s8  }
  0x58   : > { %s7951_s15 = sld [smem:[#allocation74_spill]] }
  0x5e   : > { %s5718_s6 = scalar_lea.hbm %s7951_s15, 256 }
  0x5f   : > { %p5719_p1 = scmp.ne.s32.totalorder %s7951_s15, %s5718_s6  ;;  %p5725_p13 = scmp.lt.u32.totalorder %s5718_s6, %s7951_s15 }
  0x61   : > { %p5721_p11 = pnand %p5719_p1, %p6679_p9 }
  0x63   : > { %p5722_p12 = pneg %p5721_p11 }
  0x65   : > { %p5727_p0 = pnand %p5725_p13, %p5722_p12 }
  0x67   : > { %5730 = shalt.err (!%p5727_p0)
}
  0x68   : > { %s5731_s20 = scalar_lea.vmem %s6667_s3, 256  ;;  %p5739_p8 = scmp.lt.s32.totalorder %s6667_s3, %s6667_s3 }
  0x69   : > { %p5732_p2 = scmp.ne.s32.totalorder %s6667_s3, %s5731_s20  ;;  %p5740_p10 = scmp.lt.s32.totalorder %s5731_s20, %s5731_s20 }
  0x6b   : > { %p5734_p3 = pnand %p5732_p2, %p6679_p9  ;;  %p5741_p1 = por %p5740_p10, %p5739_p8 }
  0x6d   : > { %p5735_p6 = pneg %p5734_p3 }
  0x6f   : > { %p5742_p11 = pnand %p5741_p1, %p5735_p6 }
  0x71   : > { %5745 = shalt.err (!%p5742_p11)
}
  0x72   : > { %5357 = dma.hbm_to_vmem [thread:$0]  (!%p6663_p7), %s7951_s15, 256, %s6667_s3, [#allocation28], %s7878_s10, %s7878_s10, %s7882_s8  }
  0x73   : > { %s7952_s17 = sld [smem:[#allocation76_spill]] }
  0x79   : > { %s5746_s12 = scalar_lea.hbm %s7952_s17, 16 }
  0x7a   : > { %p5747_p12 = scmp.ne.s32.totalorder %s7952_s17, %s5746_s12  ;;  %p5753_p2 = scmp.lt.u32.totalorder %s5746_s12, %s7952_s17 }
  0x7c   : > { %p5749_p13 = pnand %p5747_p12, %p6679_p9 }
  0x7e   : > { %p5750_p0 = pneg %p5749_p13 }
  0x80   : > { %p5755_p3 = pnand %p5753_p2, %p5750_p0 }
  0x82   : > { %5758 = shalt.err (!%p5755_p3)
}
  0x83   : > { %s5759_s20 = scalar_lea.vmem %s650_s14, 16  ;;  %s5766_s3 = scalar_lea.vmem %s650_s14, 32 }
  0x84   : > { %p5760_p6 = scmp.ne.s32.totalorder %s650_s14, %s5759_s20  ;;  %p5767_p1 = scmp.lt.s32.totalorder %s650_s14, %s650_s14 }
  0x85   : > { %p5768_p11 = scmp.lt.s32.totalorder %s5766_s3, %s5759_s20 }
  0x86   : > { %p5762_p8 = pnand %p5760_p6, %p6679_p9 }
  0x87   : > { %p5769_p4 = por %p5768_p11, %p5767_p1 }
  0x88   : > { %p5763_p10 = pneg %p5762_p8 }
  0x8a   : > { %p5770_p5 = pnand %p5769_p4, %p5763_p10 }
  0x8c   : > { %5773 = shalt.err (!%p5770_p5)
}
  0x8d   : > { %5363 = dma.hbm_to_vmem [thread:$0]  (!%p6663_p7), %s7952_s17, 16, %s650_s14, [#allocation31]  }
  0x8e   : > { %p7885_p12 = scmp.eq.s32.totalorder %s6438_s4, 0  ;;  %p152_p13 = scmp.ne.s32.totalorder %s6406_s23, %s6402_s22 }
  0x8f   : > { %p7884_p4 = scmp.lt.s32.totalorder %s6438_s4, 4  ;;  %s6753_s25 = sand.u32 1, %s6438_s4  }
  0x90   : > { %s6756_s28 = sand.u32 1, %s6406_s23   ;;  %p154_p5 = por %p152_p13, %p7885_p12 }
  0x91   : > { %s7880_s12 = sshll.u32 %s6756_s28, 7  ;;  %s7881_s0 = sshll.u32 %s6430_s27, 11 }
  0x92   : > { %s7953_s6 = sld [smem:[#allocation62_spill]]  ;;  %s709_s14 = scalar_lea.vmem [#allocation9], %s7880_s12 }
  0x93   : > { %s716_s3 = sshll.u32 %s709_s14, 4  ;;  %p6773_p0 = pnand %p7884_p4, %p154_p5  ;;  %s6777_s3 = int_to_ptr.vmem [resolvable:$true] %s716_s3 }
  0x95   : > { %s7954_s24 = scalar_select %p6773_p0, 1, 0 }
  0x96   : > { %p6784_p3 = pneg %p6773_p0 }
  0x98   : > { %s6767_s20 = scalar_lea.hbm %s7953_s6, %s7881_s0  ;;  %s5779_s12 = scalar_lea.hbm %s7953_s6, 4096 }
  0x99   : > { %s5774_s10 = scalar_lea.hbm %s6767_s20, 2048  ;;  %p5780_p10 = scmp.lt.u32.totalorder %s6767_s20, %s7953_s6 }
  0x9a   : > { %p5775_p2 = scmp.ne.s32.totalorder %s6767_s20, %s5774_s10  ;;  %p5781_p1 = scmp.lt.u32.totalorder %s5779_s12, %s5774_s10 }
  0x9b   : > { %s7955_s26 = scalar_select %p6784_p3, 1, 0 }
  0x9c   : > { %p5777_p6 = pnand %p6784_p3, %p5775_p2  ;;  %p5782_p11 = por %p5781_p1, %p5780_p10 }
  0x9d   : > { %p5783_p13 = scmp.lt.u32.totalorder %s5774_s10, %s6767_s20 }
  0x9e   : > { %p5778_p8 = pneg %p5777_p6 }
  0x9f   : > { %p5784_p5 = por %p5783_p13, %p5782_p11 }
  0xa1   : > { %p5785_p4 = pnand %p5784_p5, %p5778_p8 }
  0xa3   : > { %5788 = shalt.err (!%p5785_p4)
}
  0xa4   : > { %s5789_s2 = scalar_lea.vmem %s6777_s3, 2048  ;;  %s6445_s30 = smov [#allocation9]  }
  0xa5   : > { %p5790_p2 = scmp.ne.s32.totalorder %s6777_s3, %s5789_s2  ;;  %s5794_s14 = sshll.u32 %s6445_s30, 4  ;;  %s5795_s14 = int_to_ptr.vmem [resolvable:$false] %s5794_s14 }
  0xa6   : > { %s5796_s8 = scalar_lea.vmem %s5795_s14, 4096  ;;  %p5797_p7 = scmp.lt.s32.totalorder %s6777_s3, %s5795_s14 }
  0xa7   : > { %p5792_p6 = pnand %p5790_p2, %p6784_p3  ;;  %p5798_p9 = scmp.lt.s32.totalorder %s5796_s8, %s5789_s2 }
  0xa9   : > { %p5793_p12 = pneg %p5792_p6  ;;  %p5799_p10 = por %p5798_p9, %p5797_p7 }
  0xab   : > { %p5800_p1 = pnand %p5799_p10, %p5793_p12 }
  0xad   : > { %5803 = shalt.err (!%p5800_p1)
}
  0xae   : > { %s7895_s10 = smov 256   ;;  %s7897_s12 = smov 16  }
  0xaf   : > { %s7956_s0 = scalar_lea.sflag [#allocation10], %s6753_s25  ;;  %s4612_s2 = sshll.u32 %s6756_s28, 6 }
  0xb0   : > { %5376 = dma.hbm_to_vmem [thread:$0]  (!%p6773_p0), %s6767_s20, 2048, %s6777_s3, %s7956_s0, %s7895_s10, %s7895_s10, %s7897_s12  }
  0xb1   : > { %s4737_s30 = sshll.u32 %s6430_s27, 10  ;;  %s7957_s5 = sld [smem:[#allocation64_spill]] }
  0xb2   : > { %s749_s15 = scalar_lea.vmem [#allocation12], %s4612_s2  ;;  %s6822_s21 = sshll.u32 %s6430_s27, 4 }
  0xb3   : > { %s756_s17 = sshll.u32 %s749_s15, 4  ;;  %s7896_s22 = scalar_lea.sflag [#allocation13], %s6753_s25  ;;  %s6819_s17 = int_to_ptr.vmem [resolvable:$true] %s756_s17 }
  0xb7   : > { %s6817_s6 = scalar_lea.hbm %s7957_s5, %s4737_s30  ;;  %s5809_s0 = scalar_lea.hbm %s7957_s5, 2048 }
  0xb8   : > { %s5804_s23 = scalar_lea.hbm %s6817_s6, 1024  ;;  %p5810_p4 = scmp.lt.u32.totalorder %s6817_s6, %s7957_s5 }
  0xb9   : > { %p5805_p7 = scmp.ne.s32.totalorder %s6817_s6, %s5804_s23  ;;  %p5811_p8 = scmp.lt.u32.totalorder %s5809_s0, %s5804_s23 }
  0xba   : > { %p5813_p13 = scmp.lt.u32.totalorder %s5804_s23, %s6817_s6 }
  0xbb   : > { %p5807_p9 = pnand %p5805_p7, %p6784_p3  ;;  %p5812_p11 = por %p5811_p8, %p5810_p4 }
  0xbd   : > { %p5808_p12 = pneg %p5807_p9  ;;  %p5814_p5 = por %p5813_p13, %p5812_p11 }
  0xbf   : > { %p5815_p2 = pnand %p5814_p5, %p5808_p12 }
  0xc1   : > { %5818 = shalt.err (!%p5815_p2)
}
  0xc2   : > { %s5819_s15 = scalar_lea.vmem %s6819_s17, 1024  ;;  %s6448_s2 = smov [#allocation12]  }
  0xc3   : > { %p5820_p6 = scmp.ne.s32.totalorder %s6819_s17, %s5819_s15  ;;  %s5824_s8 = sshll.u32 %s6448_s2, 4  ;;  %s5825_s8 = int_to_ptr.vmem [resolvable:$false] %s5824_s8 }
  0xc4   : > { %s5826_s20 = scalar_lea.vmem %s5825_s8, 2048  ;;  %p5827_p7 = scmp.lt.s32.totalorder %s6819_s17, %s5825_s8 }
  0xc5   : > { %p5822_p10 = pnand %p5820_p6, %p6784_p3  ;;  %p5828_p9 = scmp.lt.s32.totalorder %s5826_s20, %s5819_s15 }
  0xc7   : > { %p5823_p1 = pneg %p5822_p10  ;;  %p5829_p4 = por %p5828_p9, %p5827_p7 }
  0xc9   : > { %p5830_p8 = pnand %p5829_p4, %p5823_p1 }
  0xcb   : > { %5833 = shalt.err (!%p5830_p8)
}
  0xcc   : > { %s7958_s23 = smov 8   ;;  %s7959_s3 = smov 128  }
  0xcd   : > { %5382 = dma.hbm_to_vmem [thread:$0]  (!%p6773_p0), %s6817_s6, 1024, %s6819_s17, %s7896_s22, %s7959_s3, %s7959_s3, %s7958_s23  }
  0xce   : > { %s7960_s7 = sld [smem:[#allocation66_spill]]  ;;  %s786_s15 = scalar_lea.vmem [#allocation15], %s6756_s28 }
  0xcf   : > { %s793_s2 = sshll.u32 %s786_s15, 4  ;;  %s7900_s8 = scalar_lea.sflag [#allocation16], %s6753_s25  ;;  %s794_s2 = int_to_ptr.vmem [resolvable:$true] %s793_s2 }
  0xd4   : > { %s6855_s14 = scalar_lea.hbm %s7960_s7, %s6822_s21  ;;  %s5839_s6 = scalar_lea.hbm %s7960_s7, 32 }
  0xd5   : > { %s5834_s20 = scalar_lea.hbm %s6855_s14, 16  ;;  %p5840_p5 = scmp.lt.u32.totalorder %s6855_s14, %s7960_s7 }
  0xd6   : > { %p5835_p12 = scmp.ne.s32.totalorder %s6855_s14, %s5834_s20  ;;  %p5841_p2 = scmp.lt.u32.totalorder %s5839_s6, %s5834_s20 }
  0xd7   : > { %p5843_p10 = scmp.lt.u32.totalorder %s5834_s20, %s6855_s14 }
  0xd8   : > { %p5837_p11 = pnand %p5835_p12, %p6784_p3  ;;  %p5842_p6 = por %p5841_p2, %p5840_p5 }
  0xda   : > { %p5838_p13 = pneg %p5837_p11  ;;  %p5844_p1 = por %p5843_p10, %p5842_p6 }
  0xdc   : > { %p5845_p7 = pnand %p5844_p1, %p5838_p13 }
  0xde   : > { %5848 = shalt.err (!%p5845_p7)
}
  0xdf   : > { %s5849_s15 = scalar_lea.vmem %s794_s2, 16  ;;  %s6449_s22 = smov [#allocation15]  }
  0xe0   : > { %p5850_p9 = scmp.ne.s32.totalorder %s794_s2, %s5849_s15  ;;  %s5854_s12 = sshll.u32 %s6449_s22, 4  ;;  %s5855_s12 = int_to_ptr.vmem [resolvable:$false] %s5854_s12 }
  0xe1   : > { %s5856_s10 = scalar_lea.vmem %s5855_s12, 32  ;;  %p5857_p12 = scmp.lt.s32.totalorder %s794_s2, %s5855_s12 }
  0xe2   : > { %p5852_p4 = pnand %p5850_p9, %p6784_p3  ;;  %p5858_p11 = scmp.lt.s32.totalorder %s5856_s10, %s5849_s15 }
  0xe4   : > { %p5853_p8 = pneg %p5852_p4  ;;  %p5859_p0 = por %p5858_p11, %p5857_p12 }
  0xe6   : > { %p5860_p2 = pnand %p5859_p0, %p5853_p8 }
  0xe8   : > { %5863 = shalt.err (!%p5860_p2)
}
  0xe9   : > { %p7961_p5 = scmp.ne.s32.totalorder %s7954_s24, 0  ;;  %s7962_s20 = sshll.u32 %s6430_s27, 11 }
  0xea   : > { %s7963_s9 = sld [smem:[#allocation68_spill]]  ;;  %s7964_s6 = sshll.u32 %s6756_s28, 7 }
  0xeb   : > { %5388 = dma.hbm_to_vmem [thread:$0]  (!%p7961_p5), %s6855_s14, 16, %s794_s2, %s7900_s8  }
  0xec   : > { %s821_s0 = scalar_lea.vmem [#allocation18], %s7964_s6  ;;  %s4624_s15 = sshll.u32 %s6756_s28, 8 }
  0xed   : > { %s828_s30 = sshll.u32 %s821_s0, 4  ;;  %s7904_s10 = scalar_lea.sflag [#allocation19], %s6753_s25  ;;  %s6887_s30 = int_to_ptr.vmem [resolvable:$true] %s828_s30 }
  0xf0   : > { %s6883_s12 = scalar_lea.hbm %s7963_s9, %s7962_s20  ;;  %s5869_s20 = scalar_lea.hbm %s7963_s9, 4096 }
  0xf1   : > { %s5864_s5 = scalar_lea.hbm %s6883_s12, 2048  ;;  %p5870_p10 = scmp.lt.u32.totalorder %s6883_s12, %s7963_s9 }
  0xf2   : > { %p5865_p0 = scmp.ne.s32.totalorder %s6883_s12, %s5864_s5  ;;  %p5871_p1 = scmp.lt.u32.totalorder %s5869_s20, %s5864_s5 }
  0xf3   : > { %p5873_p9 = scmp.lt.u32.totalorder %s5864_s5, %s6883_s12 }
  0xf4   : > { %p5867_p13 = pnand %p5865_p0, %p6784_p3  ;;  %p5872_p7 = por %p5871_p1, %p5870_p10 }
  0xf6   : > { %p5868_p6 = pneg %p5867_p13  ;;  %p5874_p4 = por %p5873_p9, %p5872_p7 }
  0xf8   : > { %p5875_p8 = pnand %p5874_p4, %p5868_p6 }
  0xfa   : > { %5878 = shalt.err (!%p5875_p8)
}
  0xfb   : > { %s5879_s6 = scalar_lea.vmem %s6887_s30, 2048  ;;  %s6450_s0 = smov [#allocation18]  }
  0xfc   : > { %p5880_p12 = scmp.ne.s32.totalorder %s6887_s30, %s5879_s6  ;;  %s5884_s14 = sshll.u32 %s6450_s0, 4  ;;  %s5885_s14 = int_to_ptr.vmem [resolvable:$false] %s5884_s14 }
  0xfd   : > { %s5886_s2 = scalar_lea.vmem %s5885_s14, 4096  ;;  %p5887_p0 = scmp.lt.s32.totalorder %s6887_s30, %s5885_s14 }
  0xfe   : > { %p5882_p11 = pnand %p5880_p12, %p6784_p3  ;;  %p5888_p13 = scmp.lt.s32.totalorder %s5886_s2, %s5879_s6 }
 0x100   : > { %p5883_p2 = pneg %p5882_p11  ;;  %p5889_p10 = por %p5888_p13, %p5887_p0 }
 0x102   : > { %p5890_p1 = pnand %p5889_p10, %p5883_p2 }
 0x104   : > { %5893 = shalt.err (!%p5890_p1)
}
 0x105   : > { %s7965_s5 = smov 16   ;;  %s7966_s20 = smov 256  }
 0x106   : > { %5394 = dma.hbm_to_vmem [thread:$0]  (!%p7961_p5), %s6883_s12, 2048, %s6887_s30, %s7904_s10, %s7966_s20, %s7966_s20, %s7965_s5  }
 0x107   : > { %s4740_s22 = sshll.u32 %s6430_s27, 12  ;;  %s7967_s11 = sld [smem:[#allocation70_spill]] }
 0x108   : > { %s861_s14 = scalar_lea.vmem [#allocation21], %s4624_s15  ;;  %s7901_s8 = scalar_lea.sflag [#allocation22], %s6753_s25 }
 0x109   : > { %s868_s2 = sshll.u32 %s861_s14, 4  ;;  %s6925_s2 = int_to_ptr.vmem [resolvable:$true] %s868_s2 }
 0x10d   : > { %s6921_s0 = scalar_lea.hbm %s7967_s11, %s4740_s22  ;;  %s5899_s5 = scalar_lea.hbm %s7967_s11, 8192 }
 0x10e   : > { %s5894_s7 = scalar_lea.hbm %s6921_s0, 4096  ;;  %p5900_p4 = scmp.lt.u32.totalorder %s6921_s0, %s7967_s11 }
 0x10f   : > { %p5895_p6 = scmp.ne.s32.totalorder %s6921_s0, %s5894_s7  ;;  %p5901_p8 = scmp.lt.u32.totalorder %s5899_s5, %s5894_s7 }
 0x110   : > { %p5903_p11 = scmp.lt.u32.totalorder %s5894_s7, %s6921_s0 }
 0x111   : > { %p5897_p7 = pnand %p5895_p6, %p6784_p3  ;;  %p5902_p12 = por %p5901_p8, %p5900_p4 }
 0x113   : > { %p5898_p9 = pneg %p5897_p7  ;;  %p5904_p2 = por %p5903_p11, %p5902_p12 }
 0x115   : > { %p5905_p0 = pnand %p5904_p2, %p5898_p9 }
 0x117   : > { %5908 = shalt.err (!%p5905_p0)
}
 0x118   : > { %s5909_s15 = scalar_lea.vmem %s6925_s2, 4096  ;;  %s6451_s17 = smov [#allocation21]  }
 0x119   : > { %p5910_p13 = scmp.ne.s32.totalorder %s6925_s2, %s5909_s15  ;;  %s5914_s6 = sshll.u32 %s6451_s17, 4  ;;  %s5915_s6 = int_to_ptr.vmem [resolvable:$false] %s5914_s6 }
 0x11a   : > { %s5916_s14 = scalar_lea.vmem %s5915_s6, 8192  ;;  %p5917_p6 = scmp.lt.s32.totalorder %s6925_s2, %s5915_s6 }
 0x11b   : > { %p5912_p10 = pnand %p5910_p13, %p6784_p3  ;;  %p5918_p7 = scmp.lt.s32.totalorder %s5916_s14, %s5909_s15 }
 0x11d   : > { %p5913_p1 = pneg %p5912_p10  ;;  %p5919_p4 = por %p5918_p7, %p5917_p6 }
 0x11f   : > { %p5920_p8 = pnand %p5919_p4, %p5913_p1 }
 0x121   : > { %5923 = shalt.err (!%p5920_p8)
}
 0x122   : > { %5400 = dma.hbm_to_vmem [thread:$0]  (!%p7961_p5), %s6921_s0, 4096, %s6925_s2, %s7901_s8, %s7959_s3, %s7959_s3, %s7958_s23  }
 0x123   : > { %s7968_s13 = sld [smem:[#allocation72_spill]]  ;;  %s898_s5 = scalar_lea.vmem [#allocation24], %s6756_s28 }
 0x124   : > { %s905_s20 = sshll.u32 %s898_s5, 4  ;;  %s6452_s22 = smov [#allocation8]   ;;  %s6961_s20 = int_to_ptr.vmem [resolvable:$true] %s905_s20 }
 0x125   : > { %s6963_s15 = sshll.u32 %s6452_s22, 4  ;;  %s7903_s17 = scalar_lea.sflag [#allocation25], %s6753_s25  ;;  %s613_s15 = int_to_ptr.vmem [resolvable:$true] %s6963_s15 }
 0x129   : > { %s6958_s30 = scalar_lea.hbm %s7968_s13, %s6822_s21  ;;  %s5929_s14 = scalar_lea.hbm %s7968_s13, 32 }
 0x12a   : > { %s5924_s6 = scalar_lea.hbm %s6958_s30, 16  ;;  %p5930_p2 = scmp.lt.u32.totalorder %s6958_s30, %s7968_s13 }
 0x12b   : > { %p5925_p9 = scmp.ne.s32.totalorder %s6958_s30, %s5924_s6  ;;  %p5931_p0 = scmp.lt.u32.totalorder %s5929_s14, %s5924_s6 }
 0x12c   : > { %p5933_p10 = scmp.lt.u32.totalorder %s5924_s6, %s6958_s30 }
 0x12d   : > { %p5927_p12 = pnand %p5925_p9, %p6784_p3  ;;  %p5932_p13 = por %p5931_p0, %p5930_p2 }
 0x12f   : > { %p5928_p11 = pneg %p5927_p12  ;;  %p5934_p1 = por %p5933_p10, %p5932_p13 }
 0x131   : > { %p5935_p6 = pnand %p5934_p1, %p5928_p11 }
 0x133   : > { %5938 = shalt.err (!%p5935_p6)
}
 0x134   : > { %s5939_s5 = scalar_lea.vmem %s6961_s20, 16  ;;  %s6453_s22 = smov [#allocation24]  }
 0x135   : > { %p5940_p7 = scmp.ne.s32.totalorder %s6961_s20, %s5939_s5  ;;  %s5944_s0 = sshll.u32 %s6453_s22, 4  ;;  %s5945_s0 = int_to_ptr.vmem [resolvable:$false] %s5944_s0 }
 0x136   : > { %s5946_s2 = scalar_lea.vmem %s5945_s0, 32  ;;  %p5947_p9 = scmp.lt.s32.totalorder %s6961_s20, %s5945_s0 }
 0x137   : > { %p5942_p4 = pnand %p5940_p7, %p6784_p3  ;;  %p5948_p12 = scmp.lt.s32.totalorder %s5946_s2, %s5939_s5 }
 0x139   : > { %p5943_p8 = pneg %p5942_p4  ;;  %p5949_p2 = por %p5948_p12, %p5947_p9 }
 0x13b   : > { %p5950_p0 = pnand %p5949_p2, %p5943_p8 }
 0x13d   : > { %5953 = shalt.err (!%p5950_p0)
}
 0x13e   : > { %5406 = dma.hbm_to_vmem [thread:$0]  (!%p7961_p5), %s6958_s30, 16, %s6961_s20, %s7903_s17  }
 0x13f   : > { %s7969_s7 = sld [smem:[#allocation61_spill]]  ;;  %p7970_p13 = scmp.ne.s32.totalorder %s7950_s29, 0 }
 0x145   : > { %s5954_s12 = scalar_lea.hbm %s7969_s7, 16 }
 0x146   : > { %p5955_p11 = scmp.ne.s32.totalorder %s7969_s7, %s5954_s12  ;;  %p5961_p6 = scmp.lt.u32.totalorder %s5954_s12, %s7969_s7 }
 0x148   : > { %p5957_p10 = pnand %p5955_p11, %p7970_p13 }
 0x14a   : > { %p5958_p1 = pneg %p5957_p10 }
 0x14c   : > { %p5963_p7 = pnand %p5961_p6, %p5958_p1 }
 0x14e   : > { %5966 = shalt.err (!%p5963_p7)
}
 0x14f   : > { %s5967_s8 = scalar_lea.vmem %s613_s15, 16  ;;  %s5974_s30 = scalar_lea.vmem %s613_s15, 32 }
 0x150   : > { %p5968_p4 = scmp.ne.s32.totalorder %s613_s15, %s5967_s8  ;;  %p5975_p12 = scmp.lt.s32.totalorder %s613_s15, %s613_s15 }
 0x151   : > { %p5976_p2 = scmp.lt.s32.totalorder %s5974_s30, %s5967_s8 }
 0x152   : > { %p5970_p8 = pnand %p5968_p4, %p7970_p13 }
 0x153   : > { %p5977_p0 = por %p5976_p2, %p5975_p12 }
 0x154   : > { %p5971_p9 = pneg %p5970_p8 }
 0x156   : > { %p5978_p5 = pnand %p5977_p0, %p5971_p9 }
 0x158   : > { %5981 = shalt.err (!%p5978_p5)
}
 0x159   : > { %p7971_p11 = scmp.ne.s32.totalorder %s7948_s1, 0  ;;  %s6454_s14 = smov [#allocation29]  }
 0x15a   : > { %s635_s12 = sshll.u32 %s6454_s14, 4  ;;  %s6455_s22 = smov [#allocation32]   ;;  %s636_s12 = int_to_ptr.vmem [resolvable:$true] %s635_s12 }
 0x15b   : > { %5354 = dma.hbm_to_vmem [thread:$0]  (!%p7971_p11), %s7969_s7, 16, %s613_s15, [#allocation7]  }
 0x15c   : > { %s659_s0 = sshll.u32 %s6455_s22, 4  ;;  %s7972_s16 = sld [smem:[#allocation75_spill]]  ;;  %s660_s0 = int_to_ptr.vmem [resolvable:$true] %s659_s0 }
 0x162   : > { %s5982_s17 = scalar_lea.hbm %s7972_s16, 1024 }
 0x163   : > { %p5983_p5 = scmp.ne.s32.totalorder %s7972_s16, %s5982_s17  ;;  %p5989_p6 = scmp.lt.u32.totalorder %s5982_s17, %s7972_s16 }
 0x165   : > { %p5985_p10 = pnand %p5983_p5, %p7970_p13 }
 0x167   : > { %p5986_p1 = pneg %p5985_p10 }
 0x169   : > { %p5991_p7 = pnand %p5989_p6, %p5986_p1 }
 0x16b   : > { %5994 = shalt.err (!%p5991_p7)
}
 0x16c   : > { %s5995_s15 = scalar_lea.vmem %s636_s12, 1024  ;;  %p6003_p12 = scmp.lt.s32.totalorder %s636_s12, %s636_s12 }
 0x16d   : > { %p5996_p4 = scmp.ne.s32.totalorder %s636_s12, %s5995_s15  ;;  %p6004_p2 = scmp.lt.s32.totalorder %s5995_s15, %s5995_s15 }
 0x16f   : > { %p5998_p8 = pnand %p5996_p4, %p7970_p13  ;;  %p6005_p0 = por %p6004_p2, %p6003_p12 }
 0x171   : > { %p5999_p9 = pneg %p5998_p8 }
 0x173   : > { %p6006_p3 = pnand %p6005_p0, %p5999_p9 }
 0x175   : > { %6009 = shalt.err (!%p6006_p3)
}
 0x176   : > { %5360 = dma.hbm_to_vmem [thread:$0]  (!%p7971_p11), %s7972_s16, 1024, %s636_s12, [#allocation28], %s7959_s3, %s7959_s3, %s7958_s23  }
 0x177   : > { %s7973_s18 = sld [smem:[#allocation77_spill]] }
 0x17d   : > { %s6010_s22 = scalar_lea.hbm %s7973_s18, 1024 }
 0x17e   : > { %p6011_p5 = scmp.ne.s32.totalorder %s7973_s18, %s6010_s22  ;;  %p6017_p1 = scmp.lt.u32.totalorder %s6010_s22, %s7973_s18 }
 0x180   : > { %p6013_p3 = pnand %p6011_p5, %p7970_p13 }
 0x182   : > { %p6014_p10 = pneg %p6013_p3 }
 0x184   : > { %p6019_p6 = pnand %p6017_p1, %p6014_p10 }
 0x186   : > { %6022 = shalt.err (!%p6019_p6)
}
 0x187   : > { %s6023_s20 = scalar_lea.vmem %s660_s0, 1024  ;;  %p6031_p9 = scmp.lt.s32.totalorder %s660_s0, %s660_s0 }
 0x188   : > { %p6024_p7 = scmp.ne.s32.totalorder %s660_s0, %s6023_s20  ;;  %p6032_p12 = scmp.lt.s32.totalorder %s6023_s20, %s6023_s20 }
 0x18a   : > { %p6026_p4 = pnand %p6024_p7, %p7970_p13  ;;  %p6033_p2 = por %p6032_p12, %p6031_p9 }
 0x18c   : > { %p6027_p8 = pneg %p6026_p4 }
 0x18e   : > { %p6034_p0 = pnand %p6033_p2, %p6027_p8 }
 0x190   : > { %6037 = shalt.err (!%p6034_p0)
}
 0x191   : > { %5366 = dma.hbm_to_vmem [thread:$0]  (!%p7971_p11), %s7973_s18, 1024, %s660_s0, [#allocation31], %s7959_s3, %s7959_s3, %s7958_s23  }
 0x192   : > { %s6456_s10 = smov [#allocation33]   ;;  %s6038_s22 = scalar_lea.hbm %s7852_s19, 16 }
 0x193   : > { %s673_s17 = sshll.u32 %s6456_s10, 4  ;;  %p6039_p5 = scmp.ne.s32.totalorder %s7852_s19, %s6038_s22  ;;  %s674_s17 = int_to_ptr.vmem [resolvable:$true] %s673_s17 }
 0x194   : > { %p6045_p1 = scmp.lt.u32.totalorder %s6038_s22, %s7852_s19 }
 0x195   : > { %p6041_p3 = pnand %p6039_p5, %p7970_p13 }
 0x197   : > { %p6042_p10 = pneg %p6041_p3 }
 0x199   : > { %p6047_p6 = pnand %p6045_p1, %p6042_p10 }
 0x19b   : > { %6050 = shalt.err (!%p6047_p6)
}
 0x19c   : > { %s6051_s0 = scalar_lea.vmem %s674_s17, 16  ;;  %s6058_s20 = scalar_lea.vmem %s674_s17, 32 }
 0x19d   : > { %p6052_p7 = scmp.ne.s32.totalorder %s674_s17, %s6051_s0  ;;  %p6059_p9 = scmp.lt.s32.totalorder %s674_s17, %s674_s17 }
 0x19e   : > { %p6060_p12 = scmp.lt.s32.totalorder %s6058_s20, %s6051_s0 }
 0x19f   : > { %p6054_p4 = pnand %p6052_p7, %p7970_p13 }
 0x1a0   : > { %p6061_p2 = por %p6060_p12, %p6059_p9 }
 0x1a1   : > { %p6055_p8 = pneg %p6054_p4 }
 0x1a3   : > { %p6062_p0 = pnand %p6061_p2, %p6055_p8 }
 0x1a5   : > { %6065 = shalt.err (!%p6062_p0)
}
 0x1a6   : > { %s7974_s10 = sld [smem:[#allocation55_spill]]  ;;  %s7975_s6 = sld [smem:[#allocation52_spill]] }
 0x1a7   : > { %s7976_s14 = sld [smem:[#allocation51_spill]]  ;;  %s7977_s29 = sld [smem:[#allocation50_spill]] }
 0x1a8   : > { %s7978_s22 = sld [smem:[#allocation56_spill]]  ;;  %s7979_s1 = sld [smem:[#allocation49_spill]] }
 0x1a9   : > { %5369 = dma.hbm_to_vmem [thread:$0]  (!%p7971_p11), %s7852_s19, 16, %s674_s17, [#allocation34]  }
 0x1aa   : > { %s4593_s5 = sadd.s32 4294967294, %s6438_s4   ;;  %s67_s2 = sadd.s32 1, %s6430_s27 }
 0x1ab   : > { %p68_p13 = scmp.ge.s32.totalorder %s67_s2, 2  ;;  %p7980_p3 = scmp.eq.s32.totalorder %s6438_s4, 0 }
 0x1ac   : > { %s70_s8 = sadd.s32 1, %s7974_s10  ;;  %s77_s30 = sadd.s32 1, %s7975_s6 }
 0x1ad   : > { %p84_p5 = scmp.ne.s32.totalorder %s7975_s6, %s7976_s14  ;;  %s8056_s2 = smov (%p68_p13, %s67_s2), 0 }
 0x1ae   : > { %s8058_s8 = smov (!%p68_p13, %s70_s8), %s7974_s10  ;;  %p90_p10 = scmp.ne.s32.totalorder %s7976_s14, %s7977_s29 }
 0x1af   : > { %p7082_p11 = por %p7980_p3, %p84_p5  ;;  %p72_p1 = scmp.ge.s32.totalorder %s8058_s8, 2 }
 0x1b0   : > { %s142_s0 = ssub.s32 %s6430_s27, %s8056_s2  ;;  %p7982_p6 = scmp.eq.s32.totalorder %s7978_s22, 0 }
 0x1b1   : > { %p143_p4 = scmp.eq.s32.totalorder %s142_s0, 0  ;;  %s8060_s8 = smov (%p72_p1, %s8058_s8), 0 }
 0x1b2   : > { %p7095_p7 = por %p7982_p6, %p90_p10  ;;  %s145_s12 = sadd.s32 1, %s7979_s1 }
 0x1b3   : > { %p573_p8 = scmp.eq.s32.totalorder %s7978_s22, 3  ;;  %s74_s15 = ssub.s32 %s7974_s10, %s8060_s8 }
 0x1b4   : > { %s7983_s20 = scalar_select %p7095_p7, 1, 0 }
 0x1b5   : > { %p579_p9 = scmp.eq.s32.totalorder %s4593_s5, 3  ;;  %p75_p12 = scmp.eq.s32.totalorder %s74_s15, 0 }
 0x1b6   : > { %p7108_p2 = por %p573_p8, %p84_p5  ;;  %s8062_s1 = smov (!%p143_p4, %s7979_s1), %s145_s12 }
 0x1b7   : > { %s7116_s0 = scalar_select %p75_p12, %s7975_s6, %s77_s30  }
 0x1b8   : > { %s7984_s7 = scalar_select %p7108_p2, 1, 0 }
 0x1b9   : > { %p7121_p0 = por %p579_p9, %p90_p10  ;;  %s684_s22 = sand.u32 1, %s7975_s6  }
 0x1ba   : > { %s4603_s11 = sshll.u32 %s684_s22, 4  ;;  %s4734_s13 = sshll.u32 %s7974_s10, 8 }
 0x1bb   : > { %s7985_s9 = scalar_select %p7121_p0, 1, 0 }
 0x1bc   : > { %s7986_s15 = sld [smem:[#allocation59_spill]]  ;;  %s688_s12 = scalar_lea.vmem [#allocation3], %s4603_s11 }
 0x1bd   : > { %s695_s30 = sshll.u32 %s688_s12, 4  ;;  %p7987_p13 = scmp.lt.s32.totalorder %s6438_s4, 4  ;;  %s7132_s30 = int_to_ptr.vmem [resolvable:$true] %s695_s30 }
 0x1be   : > { %s7910_s10 = sshll.u32 %s6756_s28, 1  ;;  %s7911_s16 = sshll.u32 %s6430_s27, 5 }
 0x1bf   : > { %p7138_p5 = pnand %p7987_p13, %p7082_p11 }
 0x1c1   : > { %p6068_p10 = pneg %p7138_p5 }
 0x1c2   : > { %s7130_s18 = scalar_lea.hbm %s7986_s15, %s4734_s13  ;;  %s7144_s13 = scalar_lea.sflag [#allocation4], %s684_s22 }
 0x1c3   : > { %s6066_s6 = scalar_lea.hbm %s7130_s18, 256  ;;  %s6071_s17 = scalar_lea.hbm %s7986_s15, 512 }
 0x1c4   : > { %p6067_p3 = scmp.ne.s32.totalorder %s7130_s18, %s6066_s6  ;;  %p6072_p11 = scmp.lt.u32.totalorder %s7130_s18, %s7986_s15 }
 0x1c5   : > { %p6073_p4 = scmp.lt.u32.totalorder %s6071_s17, %s6066_s6  ;;  %p6075_p9 = scmp.lt.u32.totalorder %s6066_s6, %s7130_s18 }
 0x1c6   : > { %p6069_p1 = pnand %p6068_p10, %p6067_p3 }
 0x1c7   : > { %p6074_p8 = por %p6073_p4, %p6072_p11 }
 0x1c8   : > { %p6070_p6 = pneg %p6069_p1 }
 0x1c9   : > { %p6076_p12 = por %p6075_p9, %p6074_p8 }
 0x1cb   : > { %p6077_p13 = pnand %p6076_p12, %p6070_p6 }
 0x1cd   : > { %6080 = shalt.err (!%p6077_p13)
}
 0x1ce   : > { %s6081_s22 = scalar_lea.vmem %s7132_s30, 256  ;;  %s6457_s11 = smov [#allocation3]  }
 0x1cf   : > { %p6082_p3 = scmp.ne.s32.totalorder %s7132_s30, %s6081_s22  ;;  %s6086_s29 = sshll.u32 %s6457_s11, 4  ;;  %s6087_s29 = int_to_ptr.vmem [resolvable:$false] %s6086_s29 }
 0x1d0   : > { %s6088_s5 = scalar_lea.vmem %s6087_s29, 512  ;;  %p6089_p2 = scmp.lt.s32.totalorder %s7132_s30, %s6087_s29 }
 0x1d1   : > { %p6084_p1 = pnand %p6082_p3, %p6068_p10  ;;  %p6090_p11 = scmp.lt.s32.totalorder %s6088_s5, %s6081_s22 }
 0x1d3   : > { %p6085_p0 = pneg %p6084_p1  ;;  %p6091_p4 = por %p6090_p11, %p6089_p2 }
 0x1d5   : > { %p6092_p8 = pnand %p6091_p4, %p6085_p0 }
 0x1d7   : > { %6095 = shalt.err (!%p6092_p8)
}
 0x1d8   : > { %5373 = dma.hbm_to_vmem [thread:$0]  (!%p7138_p5), %s7130_s18, 256, %s7132_s30, %s7144_s13, %s7959_s3, %s7959_s3, %s7958_s23  }
 0x1d9   : > { %s7989_s12 = sld [smem:[#allocation63_spill]]  ;;  %s730_s14 = scalar_lea.vmem [#allocation11], %s7910_s10 }
 0x1da   : > { %s738_s11 = sshll.u32 %s730_s14, 4  ;;  %p7990_p0 = scmp.ne.s32.totalorder %s7955_s26, 0  ;;  %s739_s11 = int_to_ptr.vmem [resolvable:$true] %s738_s11 }
 0x1df   : > { %s7180_s22 = scalar_lea.hbm %s7989_s12, %s7911_s16  ;;  %s6101_s3 = scalar_lea.hbm %s7989_s12, 64 }
 0x1e0   : > { %s6096_s29 = scalar_lea.hbm %s7180_s22, 32  ;;  %p6102_p5 = scmp.lt.u32.totalorder %s7180_s22, %s7989_s12 }
 0x1e1   : > { %p6097_p2 = scmp.ne.s32.totalorder %s7180_s22, %s6096_s29  ;;  %p6103_p9 = scmp.lt.u32.totalorder %s6101_s3, %s6096_s29 }
 0x1e2   : > { %p6105_p13 = scmp.lt.u32.totalorder %s6096_s29, %s7180_s22 }
 0x1e3   : > { %p6099_p10 = pnand %p6097_p2, %p7990_p0  ;;  %p6104_p12 = por %p6103_p9, %p6102_p5 }
 0x1e5   : > { %p6100_p6 = pneg %p6099_p10  ;;  %p6106_p3 = por %p6105_p13, %p6104_p12 }
 0x1e7   : > { %p6107_p1 = pnand %p6106_p3, %p6100_p6 }
 0x1e9   : > { %6110 = shalt.err (!%p6107_p1)
}
 0x1ea   : > { %s6111_s5 = scalar_lea.vmem %s739_s11, 32  ;;  %s6458_s6 = smov [#allocation11]  }
 0x1eb   : > { %p6112_p11 = scmp.ne.s32.totalorder %s739_s11, %s6111_s5  ;;  %s6116_s17 = sshll.u32 %s6458_s6, 4  ;;  %s6117_s17 = int_to_ptr.vmem [resolvable:$false] %s6116_s17 }
 0x1ec   : > { %s6118_s14 = scalar_lea.vmem %s6117_s17, 64  ;;  %p6119_p2 = scmp.lt.s32.totalorder %s739_s11, %s6117_s17 }
 0x1ed   : > { %p6114_p4 = pnand %p6112_p11, %p7990_p0  ;;  %p6120_p10 = scmp.lt.s32.totalorder %s6118_s14, %s6111_s5 }
 0x1ef   : > { %p6115_p8 = pneg %p6114_p4  ;;  %p6121_p7 = por %p6120_p10, %p6119_p2 }
 0x1f1   : > { %p6122_p5 = pnand %p6121_p7, %p6115_p8 }
 0x1f3   : > { %6125 = shalt.err (!%p6122_p5)
}
 0x1f4   : > { %p7991_p9 = scmp.ne.s32.totalorder %s7954_s24, 0  ;;  %s7992_s29 = scalar_lea.sflag [#allocation10], %s6753_s25 }
 0x1f5   : > { %s7993_s3 = sld [smem:[#allocation65_spill]]  ;;  %s769_s5 = scalar_lea.vmem [#allocation14], %s6756_s28 }
 0x1f6   : > { %5379 = dma.hbm_to_vmem [thread:$0]  (!%p7991_p9), %s7180_s22, 32, %s739_s11, %s7992_s29  }
 0x1f7   : > { %s776_s6 = sshll.u32 %s769_s5, 4  ;;  %s777_s6 = int_to_ptr.vmem [resolvable:$true] %s776_s6 }
 0x1fb   : > { %s7994_s30 = smov %s7993_s3  ;;  %s7207_s13 = scalar_lea.hbm %s7993_s3, %s6822_s21 }
 0x1fc   : > { %s6126_s17 = scalar_lea.hbm %s7207_s13, 16  ;;  %s6131_s22 = scalar_lea.hbm %s7994_s30, 32 }
 0x1fd   : > { %p6127_p7 = scmp.ne.s32.totalorder %s7207_s13, %s6126_s17  ;;  %p6132_p13 = scmp.lt.u32.totalorder %s7207_s13, %s7994_s30 }
 0x1fe   : > { %p6133_p3 = scmp.lt.u32.totalorder %s6131_s22, %s6126_s17  ;;  %p6135_p11 = scmp.lt.u32.totalorder %s6126_s17, %s7207_s13 }
 0x1ff   : > { %p6129_p6 = pnand %p6127_p7, %p7990_p0 }
 0x200   : > { %p6134_p1 = por %p6133_p3, %p6132_p13 }
 0x201   : > { %p6130_p12 = pneg %p6129_p6 }
 0x202   : > { %p6136_p4 = por %p6135_p11, %p6134_p1 }
 0x204   : > { %p6137_p8 = pnand %p6136_p4, %p6130_p12 }
 0x206   : > { %6140 = shalt.err (!%p6137_p8)
}
 0x207   : > { %s6141_s18 = scalar_lea.vmem %s777_s6, 16  ;;  %s6459_s23 = smov [#allocation14]  }
 0x208   : > { %p6142_p2 = scmp.ne.s32.totalorder %s777_s6, %s6141_s18  ;;  %s6146_s3 = sshll.u32 %s6459_s23, 4  ;;  %s6147_s3 = int_to_ptr.vmem [resolvable:$false] %s6146_s3 }
 0x209   : > { %s6148_s10 = scalar_lea.vmem %s6147_s3, 32  ;;  %p6149_p7 = scmp.lt.s32.totalorder %s777_s6, %s6147_s3 }
 0x20a   : > { %p6144_p10 = pnand %p6142_p2, %p7990_p0  ;;  %p6150_p6 = scmp.lt.s32.totalorder %s6148_s10, %s6141_s18 }
 0x20c   : > { %p6145_p5 = pneg %p6144_p10  ;;  %p6151_p9 = por %p6150_p6, %p6149_p7 }
 0x20e   : > { %p6152_p3 = pnand %p6151_p9, %p6145_p5 }
 0x210   : > { %6155 = shalt.err (!%p6152_p3)
}
 0x211   : > { %p7995_p13 = scmp.ne.s32.totalorder %s7954_s24, 0  ;;  %s7996_s5 = scalar_lea.sflag [#allocation13], %s6753_s25 }
 0x212   : > { %s7997_s22 = sld [smem:[#allocation67_spill]]  ;;  %s803_s18 = scalar_lea.vmem [#allocation17], %s6756_s28 }
 0x213   : > { %5385 = dma.hbm_to_vmem [thread:$0]  (!%p7995_p13), %s7207_s13, 16, %s777_s6, %s7996_s5  }
 0x214   : > { %s810_s23 = sshll.u32 %s803_s18, 4  ;;  %s811_s23 = int_to_ptr.vmem [resolvable:$true] %s810_s23 }
 0x218   : > { %s7998_s11 = smov %s7997_s22  ;;  %s7233_s29 = scalar_lea.hbm %s7997_s22, %s6822_s21 }
 0x219   : > { %s6156_s3 = scalar_lea.hbm %s7233_s29, 16  ;;  %s6161_s13 = scalar_lea.hbm %s7998_s11, 32 }
 0x21a   : > { %p6157_p9 = scmp.ne.s32.totalorder %s7233_s29, %s6156_s3  ;;  %p6162_p11 = scmp.lt.u32.totalorder %s7233_s29, %s7998_s11 }
 0x21b   : > { %p6163_p4 = scmp.lt.u32.totalorder %s6161_s13, %s6156_s3  ;;  %p6165_p2 = scmp.lt.u32.totalorder %s6156_s3, %s7233_s29 }
 0x21c   : > { %p6159_p12 = pnand %p6157_p9, %p7990_p0 }
 0x21d   : > { %p6164_p8 = por %p6163_p4, %p6162_p11 }
 0x21e   : > { %p6160_p1 = pneg %p6159_p12 }
 0x21f   : > { %p6166_p10 = por %p6165_p2, %p6164_p8 }
 0x221   : > { %p6167_p5 = pnand %p6166_p10, %p6160_p1 }
 0x223   : > { %6170 = shalt.err (!%p6167_p5)
}
 0x224   : > { %s6171_s17 = scalar_lea.vmem %s811_s23, 16  ;;  %s6460_s14 = smov [#allocation17]  }
 0x225   : > { %p6172_p7 = scmp.ne.s32.totalorder %s811_s23, %s6171_s17  ;;  %s6176_s22 = sshll.u32 %s6460_s14, 4  ;;  %s6177_s22 = int_to_ptr.vmem [resolvable:$false] %s6176_s22 }
 0x226   : > { %s6178_s16 = scalar_lea.vmem %s6177_s22, 32  ;;  %p6179_p9 = scmp.lt.s32.totalorder %s811_s23, %s6177_s22 }
 0x227   : > { %p6174_p6 = pnand %p6172_p7, %p7990_p0  ;;  %p6180_p12 = scmp.lt.s32.totalorder %s6178_s16, %s6171_s17 }
 0x229   : > { %p6175_p3 = pneg %p6174_p6  ;;  %p6181_p13 = por %p6180_p12, %p6179_p9 }
 0x22b   : > { %p6182_p4 = pnand %p6181_p13, %p6175_p3 }
 0x22d   : > { %6185 = shalt.err (!%p6182_p4)
}
 0x22e   : > { %p7999_p11 = scmp.ne.s32.totalorder %s7954_s24, 0  ;;  %s8000_s18 = scalar_lea.sflag [#allocation16], %s6753_s25 }
 0x22f   : > { %s8001_s3 = sshll.u32 %s6430_s27, 5  ;;  %s8002_s6 = sld [smem:[#allocation69_spill]] }
 0x230   : > { %5391 = dma.hbm_to_vmem [thread:$0]  (!%p7999_p11), %s7233_s29, 16, %s811_s23, %s8000_s18  }
 0x231   : > { %s8003_s14 = sshll.u32 %s6756_s28, 1 }
 0x232   : > { %s842_s17 = scalar_lea.vmem [#allocation20], %s8003_s14 }
 0x233   : > { %s850_s22 = sshll.u32 %s842_s17, 4  ;;  %s851_s22 = int_to_ptr.vmem [resolvable:$true] %s850_s22 }
 0x235   : > { %s7260_s5 = scalar_lea.hbm %s8002_s6, %s8001_s3  ;;  %s6191_s18 = scalar_lea.hbm %s8002_s6, 64 }
 0x236   : > { %s6186_s16 = scalar_lea.hbm %s7260_s5, 32  ;;  %p6192_p2 = scmp.lt.u32.totalorder %s7260_s5, %s8002_s6 }
 0x237   : > { %p6187_p13 = scmp.ne.s32.totalorder %s7260_s5, %s6186_s16  ;;  %p6193_p10 = scmp.lt.u32.totalorder %s6191_s18, %s6186_s16 }
 0x238   : > { %p6195_p7 = scmp.lt.u32.totalorder %s6186_s16, %s7260_s5 }
 0x239   : > { %p6189_p1 = pnand %p6187_p13, %p7990_p0  ;;  %p6194_p5 = por %p6193_p10, %p6192_p2 }
 0x23b   : > { %p6190_p8 = pneg %p6189_p1  ;;  %p6196_p6 = por %p6195_p7, %p6194_p5 }
 0x23d   : > { %p6197_p3 = pnand %p6196_p6, %p6190_p8 }
 0x23f   : > { %6200 = shalt.err (!%p6197_p3)
}
 0x240   : > { %s6201_s13 = scalar_lea.vmem %s851_s22, 32  ;;  %s6461_s14 = smov [#allocation20]  }
 0x241   : > { %p6202_p9 = scmp.ne.s32.totalorder %s851_s22, %s6201_s13  ;;  %s6206_s17 = sshll.u32 %s6461_s14, 4  ;;  %s6207_s17 = int_to_ptr.vmem [resolvable:$false] %s6206_s17 }
 0x242   : > { %s6208_s29 = scalar_lea.vmem %s6207_s17, 64  ;;  %p6209_p13 = scmp.lt.s32.totalorder %s851_s22, %s6207_s17 }
 0x243   : > { %p6204_p12 = pnand %p6202_p9, %p7990_p0  ;;  %p6210_p1 = scmp.lt.s32.totalorder %s6208_s29, %s6201_s13 }
 0x245   : > { %p6205_p4 = pneg %p6204_p12  ;;  %p6211_p11 = por %p6210_p1, %p6209_p13 }
 0x247   : > { %p6212_p2 = pnand %p6211_p11, %p6205_p4 }
 0x249   : > { %6215 = shalt.err (!%p6212_p2)
}
 0x24a   : > { %p8004_p10 = scmp.ne.s32.totalorder %s7954_s24, 0  ;;  %s8005_s16 = scalar_lea.sflag [#allocation19], %s6753_s25 }
 0x24b   : > { %s8006_s10 = sld [smem:[#allocation71_spill]]  ;;  %s881_s13 = scalar_lea.vmem [#allocation23], %s6756_s28 }
 0x24c   : > { %5397 = dma.hbm_to_vmem [thread:$0]  (!%p8004_p10), %s7260_s5, 32, %s851_s22, %s8005_s16  }
 0x24d   : > { %s888_s14 = sshll.u32 %s881_s13, 4  ;;  %s889_s14 = int_to_ptr.vmem [resolvable:$true] %s888_s14 }
 0x251   : > { %s7287_s3 = scalar_lea.hbm %s8006_s10, %s6822_s21  ;;  %s6221_s5 = scalar_lea.hbm %s8006_s10, 32 }
 0x252   : > { %s6216_s17 = scalar_lea.hbm %s7287_s3, 16  ;;  %p6222_p7 = scmp.lt.u32.totalorder %s7287_s3, %s8006_s10 }
 0x253   : > { %p6217_p11 = scmp.ne.s32.totalorder %s7287_s3, %s6216_s17  ;;  %p6223_p6 = scmp.lt.u32.totalorder %s6221_s5, %s6216_s17 }
 0x254   : > { %p6225_p9 = scmp.lt.u32.totalorder %s6216_s17, %s7287_s3 }
 0x255   : > { %p6219_p8 = pnand %p6217_p11, %p7990_p0  ;;  %p6224_p3 = por %p6223_p6, %p6222_p7 }
 0x257   : > { %p6220_p5 = pneg %p6219_p8  ;;  %p6226_p12 = por %p6225_p9, %p6224_p3 }
 0x259   : > { %p6227_p4 = pnand %p6226_p12, %p6220_p5 }
 0x25b   : > { %6230 = shalt.err (!%p6227_p4)
}
 0x25c   : > { %s6231_s23 = scalar_lea.vmem %s889_s14, 16  ;;  %s6462_s18 = smov [#allocation23]  }
 0x25d   : > { %p6232_p13 = scmp.ne.s32.totalorder %s889_s14, %s6231_s23  ;;  %s6236_s13 = sshll.u32 %s6462_s18, 4  ;;  %s6237_s13 = int_to_ptr.vmem [resolvable:$false] %s6236_s13 }
 0x25e   : > { %s6238_s6 = scalar_lea.vmem %s6237_s13, 32  ;;  %p6239_p11 = scmp.lt.s32.totalorder %s889_s14, %s6237_s13 }
 0x25f   : > { %p6234_p1 = pnand %p6232_p13, %p7990_p0  ;;  %p6240_p8 = scmp.lt.s32.totalorder %s6238_s6, %s6231_s23 }
 0x261   : > { %p6235_p2 = pneg %p6234_p1  ;;  %p6241_p10 = por %p6240_p8, %p6239_p11 }
 0x263   : > { %p6242_p6 = pnand %p6241_p10, %p6235_p2 }
 0x265   : > { %6245 = shalt.err (!%p6242_p6)
}
 0x266   : > { %p8007_p7 = scmp.ne.s32.totalorder %s7954_s24, 0  ;;  %s8008_s17 = scalar_lea.sflag [#allocation22], %s6753_s25 }
 0x267   : > { %s8009_s22 = sld [smem:[#allocation73_spill]]  ;;  %s915_s23 = scalar_lea.vmem [#allocation26], %s6756_s28 }
 0x268   : > { %5403 = dma.hbm_to_vmem [thread:$0]  (!%p8007_p7), %s7287_s3, 16, %s889_s14, %s8008_s17  }
 0x269   : > { %s922_s13 = sshll.u32 %s915_s23, 4  ;;  %s923_s13 = int_to_ptr.vmem [resolvable:$true] %s922_s13 }
 0x26d   : > { %s8010_s16 = smov %s8009_s22  ;;  %s7313_s18 = scalar_lea.hbm %s8009_s22, %s6822_s21 }
 0x26e   : > { %s6246_s6 = scalar_lea.hbm %s7313_s18, 16  ;;  %s6251_s3 = scalar_lea.hbm %s8010_s16, 32 }
 0x26f   : > { %p6247_p10 = scmp.ne.s32.totalorder %s7313_s18, %s6246_s6  ;;  %p6252_p9 = scmp.lt.u32.totalorder %s7313_s18, %s8010_s16 }
 0x270   : > { %p6253_p12 = scmp.lt.u32.totalorder %s6251_s3, %s6246_s6  ;;  %p6255_p13 = scmp.lt.u32.totalorder %s6246_s6, %s7313_s18 }
 0x271   : > { %p6249_p5 = pnand %p6247_p10, %p7990_p0 }
 0x272   : > { %p6254_p4 = por %p6253_p12, %p6252_p9 }
 0x273   : > { %p6250_p3 = pneg %p6249_p5 }
 0x274   : > { %p6256_p1 = por %p6255_p13, %p6254_p4 }
 0x276   : > { %p6257_p2 = pnand %p6256_p1, %p6250_p3 }
 0x278   : > { %6260 = shalt.err (!%p6257_p2)
}
 0x279   : > { %s6261_s21 = scalar_lea.vmem %s923_s13, 16  ;;  %s6463_s28 = smov [#allocation26]  }
 0x27a   : > { %p6262_p11 = scmp.ne.s32.totalorder %s923_s13, %s6261_s21  ;;  %s6266_s29 = sshll.u32 %s6463_s28, 4  ;;  %s6267_s29 = int_to_ptr.vmem [resolvable:$false] %s6266_s29 }
 0x27b   : > { %s6268_s11 = scalar_lea.vmem %s6267_s29, 32  ;;  %p6269_p10 = scmp.lt.s32.totalorder %s923_s13, %s6267_s29 }
 0x27c   : > { %p6264_p8 = pnand %p6262_p11, %p7990_p0  ;;  %p6270_p5 = scmp.lt.s32.totalorder %s6268_s11, %s6261_s21 }
 0x27e   : > { %p6265_p6 = pneg %p6264_p8  ;;  %p6271_p7 = por %p6270_p5, %p6269_p10 }
 0x280   : > { %p6272_p9 = pnand %p6271_p7, %p6265_p6 }
 0x282   : > { %6275 = shalt.err (!%p6272_p9)
}
 0x283   : > { %p8011_p12 = scmp.ne.s32.totalorder %s7954_s24, 0  ;;  %s8012_s10 = scalar_lea.sflag [#allocation25], %s6753_s25 }
 0x284   : > { %s8013_s5 = sld [smem:[#allocation58_spill]] }
 0x285   : > { %5409 = dma.hbm_to_vmem [thread:$0]  (!%p8011_p12), %s7313_s18, 16, %s923_s13, %s8012_s10  }
 0x28a   : > { %p8014_p3 = scmp.ne.s32.totalorder %s8013_s5, 0 }
 0x28b   : > { %s8015_s26 = sld [smem:[#allocation51_spill]] (!%p8014_p3)  ;;  %p8016_p0 = scmp.ne.s32.totalorder (!%p8014_p3), %s7983_s20, 0 }
 0x28c   : > { %931 = sbr.rel (%p8014_p3) target bundleno = 6935 (0x1b17), region = 100 }
 0x291   : > { %s7338_s22 = sand.u32 (!%p8014_p3), 1, %s8015_s26  }
 0x292   : > { %s4631_s23 = sshll.u32 (!%p8014_p3), %s7338_s22, 4  ;;  %s934_s6 = scalar_lea.sflag (!%p8014_p3), [#allocation4], %s7338_s22 }
 0x293   : > { %s7342_s3 = scalar_lea.vmem [#allocation3], %s4631_s23 }
 0x294   : > { %6349 = dma.done.wait (%p8016_p0), %s934_s6, 256  }
 0x295   : > { %6351 = vsyncadd (%p8016_p0), %s934_s6, 4294967040  ;;  %s8017_s25 = sld [smem:[#allocation56_spill]] }
 0x29b   : > { %p8018_p7 = scmp.eq.s32.totalorder %s8017_s25, 0 }
 0x29d   : > { %6353 = dma.done.wait (%p8018_p7), [#allocation7], 272   ;;  %p8019_p4 = pmov %p8018_p7 }
 0x29e   : > { %s8020_s24 = sld [smem:[#allocation48_spill]]  ;;  %s8021_s18 = sld [smem:[#allocation57_spill]] }
 0x29f   : > { %6355 = vsyncadd (%p8019_p4), [#allocation7], 4294967024  ;;  %s7353_s13 = sand.u32 1, %s8017_s25  }
 0x2a0   : > { %s951_s21 = scalar_lea.sflag [#allocation10], %s7353_s13 }
 0x2a4   : > { %s7356_s14 = sand.u32 1, %s8020_s24   ;;  %p8022_p13 = scmp.ne.s32.totalorder %s8021_s18, 0 }
 0x2a5   : > { %s4634_s17 = sshll.u32 %s7356_s14, 7 }
 0x2a6   : > { %s7360_s28 = scalar_lea.vmem [#allocation9], %s4634_s17 }
 0x2a7   : > { %6357 = dma.done.wait (%p8022_p13), %s951_s21, 2080  }
 0x2a8   : > { %6359 = vsyncadd (%p8022_p13), %s951_s21, 4294965216  ;;  %s4635_s20 = sshll.u32 %s7356_s14, 1  ;;  %s4636_s29 = sshll.u32 %s7356_s14, 6 }
 0x2a9   : > { %s7368_s11 = scalar_lea.vmem [#allocation11], %s4635_s20  ;;  %s969_s10 = scalar_lea.sflag [#allocation13], %s7353_s13 }
 0x2aa   : > { %s7371_s5 = scalar_lea.vmem [#allocation12], %s4636_s29 }
 0x2ab   : > { %6361 = dma.done.wait (%p8022_p13), %s969_s10, 1040  }
 0x2ac   : > { %6363 = vsyncadd (%p8022_p13), %s969_s10, 4294966256  ;;  %s986_s23 = scalar_lea.sflag [#allocation16], %s7353_s13 }
 0x2ad   : > { %6365 = dma.done.wait (%p8022_p13), %s986_s23, 32  }
 0x2ae   : > { %6367 = vsyncadd (%p8022_p13), %s986_s23, 4294967264  ;;  %s1002_s21 = scalar_lea.sflag [#allocation19], %s7353_s13  ;;  %s7386_s29 = scalar_lea.vmem [#allocation18], %s4634_s17 }
 0x2af   : > { %6369 = dma.done.wait (%p8022_p13), %s1002_s21, 2080  }
 0x2b0   : > { %6371 = vsyncadd (%p8022_p13), %s1002_s21, 4294965216  ;;  %s4639_s10 = sshll.u32 %s7356_s14, 8  ;;  %s7393_s6 = scalar_lea.vmem [#allocation20], %s4635_s20 }
 0x2b1   : > { %s1020_s26 = scalar_lea.sflag [#allocation22], %s7353_s13  ;;  %s7396_s23 = scalar_lea.vmem [#allocation21], %s4639_s10 }
 0x2b2   : > { %6373 = dma.done.wait (%p8022_p13), %s1020_s26, 4112  }
 0x2b3   : > { %6375 = vsyncadd (%p8022_p13), %s1020_s26, 4294963184  ;;  %s1031_s17 = scalar_lea.vmem [#allocation23], %s7356_s14  ;;  %s1037_s21 = scalar_lea.sflag [#allocation25], %s7353_s13 }
 0x2b4   : > { %s1039_s24 = scalar_lea.vmem [#allocation24], %s7356_s14 }
 0x2b5   : > { %6377 = dma.done.wait (%p8022_p13), %s1037_s21, 32  }
 0x2b6   : > { %6379 = vsyncadd (%p8022_p13), %s1037_s21, 4294967264  ;;  %s1047_s20 = scalar_lea.vmem [#allocation26], %s7356_s14  ;;  %p8023_p1 = pmov %p8019_p4 }
 0x2b8   : > { %6381 = dma.done.wait (%p8023_p1), [#allocation28], 1280   ;;  %p8024_p2 = pmov %p8023_p1 }
 0x2b9   : > { %p8025_p11 = pmov %p8023_p1 }
 0x2ba   : > { %6383 = vsyncadd (%p8024_p2), [#allocation28], 4294966016 }
 0x2bb   : > { %6385 = dma.done.wait (%p8025_p11), [#allocation31], 1040   ;;  %p8026_p8 = pmov %p8023_p1 }
 0x2bc   : > { %p8027_p6 = pmov %p8023_p1 }
 0x2bd   : > { %6387 = vsyncadd (%p8026_p8), [#allocation31], 4294966256 }
 0x2be   : > { %6389 = dma.done.wait (%p8027_p6), [#allocation34], 16   ;;  %p8028_p10 = pmov %p8023_p1 }
 0x2bf   : > { %s4645_s18 = sshll.u32 %s7338_s22, 6  ;;  %s8029_s26 = sld [smem:[#allocation53_spill]] }
 0x2c0   : > { %6391 = vsyncadd (%p8028_p10), [#allocation34], 4294967280  ;;  %s7423_s13 = scalar_lea.vmem [#allocation35], %s4645_s18 }
 0x2c5   : > { %p4646_p5 = scmp.ne.s32.totalorder %s8029_s26, 0 }
 0x2c6   : > { %v1182_v0 = vld [vmem:[%s7342_s3] sm:$0xff] (!%p4646_p5)  ;;  %v1217_v2 = vld [vmem:[#allocation6 + $0x8] sm:$0xff] (!%p4646_p5)  ;;  %vm1225_vm0 = vcmask (!%p4646_p5), 130048   ;;  %vm1307_vm1 = vcmask (!%p4646_p5), 523264  }
 0x2c7   : > { %1181 = sbr.rel (%p4646_p5) target bundleno = 1060 (0x424), region = 184  ;;  %v1216_v1 = vld [vmem:[#allocation6] sm:$0xff] (!%p4646_p5)  ;;  %1184 = vxpose.xlu0.b32.start [1/2] (short) (narrow) (!%p4646_p5), %v1182_v0, 16  ;;  %v1183_v3 = vld [vmem:[%s7342_s3 + $0x8] sm:$0xff] (!%p4646_p5)  ;;  %v4647_v7 = vld [vmem:[#allocation8] ss:$0 sm:$0xff] (!%p4646_p5) }
 0x2c8   : > { %v5084_v4 = vpack.c.bf16 (!%p4646_p5), %v1217_v2, %v1216_v1 }
 0x2ca   : > { %5085 = vmatprep.subr.bf16.mxu0 (!%p4646_p5), %v5084_v4 }
 0x2cb   : > { %1185 = vxpose.xlu0.b32.end [2/2] (short) (narrow) (!%p4646_p5), %v1183_v3, 16  ;;  %5087 = vmatpush3.bf16.msra.mxu0 (!%p4646_p5), %v5084_v4 }
 0x347   : > { %v1200_v5 = vpop.trf.xlu0 }
 0x348   : > { %4894 = vmatprep.mubr.msk.f32.mxu0 %vm1225_vm0, %v1200_v5 }
 0x34b   : > { %v1201_v6 = vpop.trf.xlu0 }
 0x34c   : > { %4895 = vmatmul.mubr.msk.f32.vlgmr.msra.gmra.mrb[0].mxu0 %vm1225_vm0, %v1201_v6 }
 0x41f   : > { %v4896_v8 = vpop.f32.mrb[0].mxu0 }
 0x420   : > { %v1304_v9 = vadd.f32 %v4896_v8, %v4647_v7  ;;  %v1298_v10 = vpop.f32.mrb[1].mxu0 }
 0x421   : > { %v1299_v11 = vadd.f32 %v4647_v7, %v1298_v10 }
 0x422   : > { %1309 = vst.msk [vmem:[#allocation2 + $0x8] sm:$0xff] %vm1307_vm1, %v1304_v9 }
 0x423   : > { %1308 = vst.msk [vmem:[#allocation2] sm:$0xff] %vm1307_vm1, %v1299_v11 }
 0x424 PF: > { %v1313_v12 = vld [vmem:[%s7360_s28 + $0x8] sm:$0xff]  ;;  %v1315_v13 = vld [vmem:[%s7360_s28 + $0x18] sm:$0xff]  ;;  %v1312_v14 = vld [vmem:[%s7360_s28] sm:$0xff]  ;;  %v6464_v19 = vmov 0.0   ;;  %vm1340_vm2 = vcmask 523264   ;;  %v1330_v39 = vlaneseq  ;;  %vm1439_vm3 = vcmask 130048  }
 0x425   : > { %v5088_v15 = vpack.c.bf16 %v1315_v13, %v1313_v12  ;;  %v1314_v16 = vld [vmem:[%s7360_s28 + $0x10] sm:$0xff]  ;;  %v1317_v17 = vld [vmem:[%s7360_s28 + $0x28] sm:$0xff]  ;;  %v1319_v18 = vld [vmem:[%s7360_s28 + $0x38] sm:$0xff]  ;;  %1411 = vmatprep.mubr.f32.mxu0 %v6464_v19  ;;  %s6465_s3 = smov 112   ;;  %s6466_s25 = smov 64  }
 0x426   : > { %v5090_v20 = vpack.c.bf16 %v1314_v16, %v1312_v14  ;;  %v5092_v21 = vpack.c.bf16 %v1319_v18, %v1317_v17  ;;  %v1316_v22 = vld [vmem:[%s7360_s28 + $0x20] sm:$0xff]  ;;  %v1318_v23 = vld [vmem:[%s7360_s28 + $0x30] sm:$0xff]  ;;  %v1321_v24 = vld [vmem:[%s7360_s28 + $0x48] sm:$0xff]  ;;  %v7454_v40 = vshrl.u32 %v1330_v39, 7  ;;  %s6469_s10 = smov 32   ;;  %s6470_s21 = smov 16  }
 0x427   : > { %5089 = vmatprep.subr.bf16.mxu0 %v5088_v15  ;;  %v1323_v25 = vld [vmem:[%s7360_s28 + $0x58] sm:$0xff]  ;;  %v5094_v26 = vpack.c.bf16 %v1318_v23, %v1316_v22  ;;  %v1320_v28 = vld [vmem:[%s7360_s28 + $0x40] sm:$0xff]  ;;  %v1322_v29 = vld [vmem:[%s7360_s28 + $0x50] sm:$0xff]  ;;  %s6471_s18 = smov 80   ;;  %s8034_s26 = scalar_lea.vmem [#allocation17], %s7356_s14 }
 0x428   : > { %5091 = vmatpush1.bf16.msra.mxu0 %v5090_v20  ;;  %v5096_v27 = vpack.c.bf16 %v1323_v25, %v1321_v24  ;;  %v1325_v30 = vld [vmem:[%s7360_s28 + $0x68] sm:$0xff]  ;;  %v1327_v31 = vld [vmem:[%s7360_s28 + $0x78] sm:$0xff]  ;;  %v5098_v32 = vpack.c.bf16 %v1322_v29, %v1320_v28  ;;  %v1324_v34 = vld [vmem:[%s7360_s28 + $0x60] sm:$0xff]  ;;  %v1332_v41 = vsub.s32 0, %v7454_v40  ;;  %v1336_v44 = vsub.s32 1, %v7454_v40 }
 0x429   : > { %5093 = vmatprep.subr.bf16.mxu0 %v5092_v21  ;;  %v5100_v33 = vpack.c.bf16 %v1327_v31, %v1325_v30  ;;  %v1326_v35 = vld [vmem:[%s7360_s28 + $0x70] sm:$0xff]  ;;  %v7450_v38 = vld [vmem:[#allocation2 + $0x8] sm:$0xff]  ;;  %v1328_v42 = vld [vmem:[%s7368_s11] sm:$0x3]  ;;  %s6467_s28 = smov 48   ;;  %s6468_s11 = smov 96  }
 0x42a   : > { %v5102_v36 = vpack.c.bf16 %v1326_v35, %v1324_v34  ;;  %v7445_v37 = vld [vmem:[#allocation2] sm:$0xff]  ;;  %v1333_v43 = vrot.slane %v1328_v42, %v1332_v41  ;;  %v1337_v48 = vrot.slane %v1328_v42, %v1336_v44  ;;  %vm7484_vm4 = vmpackc.low %vm1439_vm3, %vm1439_vm3 }
 0x42b   : > { %v4689_v40 = vld [vmem:[%s1031_s17] ss:$0 sm:$0xff] }
 0x42c   : > { %5095 = vmatpush1.bf16.msra.mxu0 %v5094_v26 }
 0x42d   : > { %5097 = vmatprep.subr.bf16.mxu0 %v5096_v27 }
 0x430   : > { %5099 = vmatpush1.bf16.msra.mxu0 %v5098_v32 }
 0x431   : > { %5101 = vmatprep.subr.bf16.mxu0 %v5100_v33 }
 0x434   : > { %5103 = vmatpush1.bf16.msra.mxu0 %v5102_v36 }
 0x437   : > { %4650 = vmatmul.mubr.msk.f32.vlgmr.msra.gmra.mrb[0].mxu0 %vm1340_vm2, %v7445_v37 }
 0x438   : > { %1417 = vmatprep.mubr.f32.mxu0 %v6464_v19 }
 0x43b   : > { %4651 = vmatmul.mubr.msk.f32.gmra.mrb[2].mxu0 %vm1340_vm2, %v7450_v38 }
 0x50a   : > { %v1413_v45 = vpop.f32.mrb[0].mxu0 }
 0x50b   : > { %v7461_v46 = vadd.f32 %v1413_v45, %v1333_v43  ;;  %v1415_v47 = vpop.f32.mrb[1].mxu0 }
 0x50c   : > { %v1416_v52 = vadd.f32 %v1415_v47, %v1337_v48 }
 0x50d   : > { %1628 = vrot.lane.b32.xlu1 %v7461_v46, %s6465_s3  ;;  %4901 = vmatprep.mubr.msk.f32.mxu0 %vm1439_vm3, %v7461_v46 }
 0x50e   : > { %v1419_v49 = vpop.f32.mrb[2].mxu0 }
 0x50f   : > { %v7469_v50 = vadd.f32 %v1419_v49, %v1333_v43  ;;  %v1421_v51 = vpop.f32.mrb[3].mxu0 }
 0x510   : > { %v1422_v53 = vadd.f32 %v1421_v51, %v1337_v48 }
 0x511   : > { %1630 = vrot.lane.b32.xlu1 %v7469_v50, %s6465_s3  ;;  %v7475_v54 = vpack.i.bf16 %v7469_v50, %v7461_v46 }
 0x512   : > { %v5110_v55 = vpack.c.bf16 %v1422_v53, %v1416_v52  ;;  %v7477_v56 = vpack.i.bf16 %v1422_v53, %v1416_v52 }
 0x513   : > { %5549 = vrot.lane.b32.xlu0 %v7475_v54, %s6466_s25 }
 0x517   : > { %5554 = vrot.lane.b32.xlu0 %v7475_v54, %s6467_s28 }
 0x57f   : > { %v1629_v57 = vpop.permute.xlu1 %1628 }
 0x580   : > { %4915 = vmatprep.mubr.msk.f32.mxu1 %vm1439_vm3, %v1629_v57 }
 0x583   : > { %v1631_v3 = vpop.permute.xlu1 %1630 }
 0x585   : > { %v5550_v58 = vpop.permute.xlu0 %5549 }
 0x586   : > { %v5552_v59 = vunpack.i.h.bf16 %v5550_v58  ;;  %v5551_v60 = vunpack.i.l.bf16 %v5550_v58 }
 0x588   : > { %v5104_v62 = vpack.c.bf16 %v5552_v59, %v5551_v60 }
 0x589   : > { %v5555_v63 = vpop.permute.xlu0 %5554 }
 0x58a   : > { %v5557_v0 = vunpack.i.h.bf16 %v5555_v63  ;;  %v5556_v1 = vunpack.i.l.bf16 %v5555_v63  ;;  %5106 = vmatprep.subr.msk.bf16.mxu0 %vm7484_vm4, %v5104_v62 }
 0x58b   : > { %5109 = vmatpush3.bf16.xpose.msk.msra.mxu0 %vm7484_vm4, %v5104_v62 }
 0x58c   : > { %5111 = vmatprep.subr.bf16.mxu0 %v5110_v55  ;;  %v5114_v2 = vpack.c.bf16 %v5557_v0, %v5556_v1 }
 0x58e   : > { %5116 = vmatprep.subr.msk.bf16.mxu1 %vm7484_vm4, %v5114_v2 }
 0x58f   : > { %5119 = vmatpush3.bf16.xpose.msk.msra.mxu1 %vm7484_vm4, %v5114_v2 }
 0x592   : > { %4902 = vmatmul.mubr.msk.f32.vlgmr.msra.gmra.mrb[4].mxu0 %vm1439_vm3, %v7469_v50 }
 0x593   : > { %5113 = vmatpush3.bf16.msra.mxu0 %v5110_v55 }
 0x596   : > { %4916 = vmatmul.mubr.msk.f32.vlgmr.msra.gmra.mrb[0].mxu1 %vm1439_vm3, %v1631_v3 }
 0x665   : > { %v4903_v4 = vpop.f32.mrb[4].mxu0 }
 0x666   : > { %v1524_v5 = vmul.f32 0.25, %v4903_v4  ;;  %v1514_v6 = vpop.f32.mrb[5].mxu0 }
 0x667   : > { %v1523_v7 = vmul.f32 0.25, %v1514_v6 }
 0x668   : > { %v1528_v8 = vsel %vm1439_vm3, %v1524_v5, -inf }
 0x669   : > { %v4917_v9 = vpop.f32.mrb[0].mxu1  ;;  %1529 = vmax.xlane.f32.xlu1 %v1528_v8  ;;  %v1525_v10 = vsel %vm1439_vm3, %v1523_v7, -inf  ;;  %v1426_v8 = vld [vmem:[%s7371_s5 + $0x10] sm:$0xff] }
 0x66a   : > { %v1710_v11 = vpop.f32.mrb[1].mxu1  ;;  %1526 = vmax.xlane.f32.xlu0 %v1525_v10  ;;  %v1720_v13 = vmul.f32 0.25, %v4917_v9  ;;  %v1427_v9 = vld [vmem:[%s7371_s5 + $0x18] sm:$0xff] }
 0x66b   : > { %v1719_v12 = vmul.f32 0.25, %v1710_v11  ;;  %v5124_v10 = vpack.c.bf16 %v1427_v9, %v1426_v8  ;;  %v1424_v11 = vld [vmem:[%s7371_s5] sm:$0xff] }
 0x66c   : > { %v1724_v15 = vsel %vm1439_vm3, %v1720_v13, -inf }
 0x66d   : > { %v1721_v14 = vsel %vm1439_vm3, %v1719_v12, -inf  ;;  %5125 = vmatprep.subr.bf16.mxu1 %v5124_v10 }
 0x66e   : > { %1722 = vmax.xlane.f32.xlu0 %v1721_v14  ;;  %5127 = vmatpush3.bf16.msra.mxu1 %v5124_v10 }
 0x672   : > { %1725 = vmax.xlane.f32.xlu0 %v1724_v15 }
 0x67a   : > { %5559 = vrot.lane.b32.xlu1 %v7477_v56, %s6465_s3 }
 0x6f6   : > { %v1530_v16 = vpop.xlane.xlu1 %1529 }
 0x6f7   : > { %v1532_v17 = vsub.f32 %v1524_v5, %v1530_v16  ;;  %v1527_v18 = vpop.xlane.xlu0 %1526 }
 0x6f8   : > { %v1531_v20 = vsub.f32 %v1523_v7, %v1527_v18 }
 0x6f9   : > { %v1535_v21 = vmul.f32 1.442695, %v1532_v17 }
 0x6fa   : > { %v1533_v22 = vmul.f32 1.442695, %v1531_v20  ;;  %v5560_v23 = vpop.permute.xlu1 %5559 }
 0x6fb   : > { %5583 = vpow2.f32 %v1535_v21  ;;  %v5562_v24 = vunpack.i.h.bf16 %v5560_v23  ;;  %v5561_v25 = vunpack.i.l.bf16 %v5560_v23  ;;  %v1723_v26 = vpop.xlane.xlu0 %1722 }
 0x6fc   : > { %5585 = vpow2.f32 %v1533_v22  ;;  %v1727_v39 = vsub.f32 %v1719_v12, %v1723_v26  ;;  %v1425_v12 = vld [vmem:[%s7371_s5 + $0x8] sm:$0xff] }
 0x6fd   : > { %v5120_v27 = vpack.c.bf16 %v5562_v24, %v5561_v25 }
 0x6fe   : > { %v1729_v42 = vmul.f32 1.442695, %v1727_v39 }
 0x6ff   : > { %5121 = vmatprep.subr.bf16.mxu0 %v5120_v27  ;;  %v1726_v28 = vpop.xlane.xlu0 %1725 }
 0x700   : > { %v1728_v29 = vsub.f32 %v1720_v13, %v1726_v28  ;;  %v5128_v13 = vpack.c.bf16 %v1425_v12, %v1424_v11 }
 0x702   : > { %v1731_v30 = vmul.f32 1.442695, %v1728_v29  ;;  %5129 = vmatprep.subr.bf16.mxu1 %v5128_v13 }
 0x704   : > { %5587 = vpow2.f32 %v1731_v30 }
 0x705   : > { %v5584_v31 = vpop.eup %5583  ;;  %5589 = vpow2.f32 %v1729_v42 }
 0x706   : > { %v5586_v32 = vpop.eup %5585  ;;  %v1540_v33 = vsel %vm1439_vm3, %v5584_v31, 0.0 }
 0x707   : > { %1541 = vadd.xlane.f32.xlu0 %v1540_v33  ;;  %v1537_v34 = vsel %vm1439_vm3, %v5586_v32, 0.0 }
 0x708   : > { %1538 = vadd.xlane.f32.xlu1 %v1537_v34 }
 0x70e   : > { %v5588_v35 = vpop.eup %5587 }
 0x70f   : > { %v1736_v36 = vsel %vm1439_vm3, %v5588_v35, 0.0  ;;  %v5590_v43 = vpop.eup %5589 }
 0x710   : > { %1737 = vadd.xlane.f32.xlu0 %v1736_v36  ;;  %v1733_v45 = vsel %vm1439_vm3, %v5590_v43, 0.0 }
 0x719   : > { %1994 = vrot.lane.b32.xlu1 %v7461_v46, %s6468_s11 }
 0x726   : > { %5564 = vrot.lane.b32.xlu0 %v7475_v54, %s6469_s10 }
 0x72a   : > { %5569 = vrot.lane.b32.xlu0 %v7475_v54, %s6470_s21 }
 0x72e   : > { %2281 = vrot.lane.b32.xlu0 %v7469_v50, %s6471_s18 }
 0x73d   : > { %1734 = vadd.xlane.f32.xlu1 %v1733_v45 }
 0x74e   : > { %1996 = vrot.lane.b32.xlu1 %v7469_v50, %s6468_s11 }
 0x752   : > { %2279 = vrot.lane.b32.xlu1 %v7461_v46, %s6471_s18 }
 0x794   : > { %v1542_v47 = vpop.xlane.xlu0 %1541 }
 0x795   : > { %5591 = vrcp.f32 %v1542_v47  ;;  %v1539_v48 = vpop.xlane.xlu1 %1538 }
 0x796   : > { %5593 = vrcp.f32 %v1539_v48 }
 0x799   : > { %v1995_v46 = vpop.permute.xlu1 %1994 }
 0x79d   : > { %v1738_v49 = vpop.xlane.xlu0 %1737 }
 0x79e   : > { %5595 = vrcp.f32 %v1738_v49 }
 0x79f   : > { %v5592_v51 = vpop.eup %5591 }
 0x7a0   : > { %v5594_v52 = vpop.eup %5593  ;;  %v1546_v55 = vmul.f32 %v5592_v51, %v5584_v31 }
 0x7a1   : > { %v5565_v53 = vpop.permute.xlu0 %5564  ;;  %v1545_v54 = vmul.f32 %v5594_v52, %v5586_v32 }
 0x7a2   : > { %v5567_v57 = vunpack.i.h.bf16 %v5565_v53  ;;  %v5566_v58 = vunpack.i.l.bf16 %v5565_v53 }
 0x7a3   : > { %4908 = vmatprep.mubr.msk.f32.mxu0 %vm1439_vm3, %v1545_v54 }
 0x7a4   : > { %v5132_v59 = vpack.c.bf16 %v5567_v57, %v5566_v58  ;;  %4909 = vmatmul.mubr.msk.f32.vlgmr.msra.gmra.mrb[6].mxu0 %vm1439_vm3, %v1546_v55 }
 0x7a5   : > { %5123 = vmatpush3.bf16.msra.mxu0 %v5120_v27  ;;  %v5570_v60 = vpop.permute.xlu0 %5569 }
 0x7a6   : > { %5134 = vmatprep.subr.msk.bf16.mxu0 %vm7484_vm4, %v5132_v59  ;;  %v5572_v0 = vunpack.i.h.bf16 %v5570_v60  ;;  %v5571_v1 = vunpack.i.l.bf16 %v5570_v60 }
 0x7a8   : > { %v5596_v62 = vpop.eup %5595  ;;  %v5146_v4 = vpack.c.bf16 %v5572_v0, %v5571_v1 }
 0x7a9   : > { %v1742_v3 = vmul.f32 %v5596_v62, %v5588_v35  ;;  %v2282_v7 = vpop.permute.xlu0 %2281 }
 0x7ca   : > { %v1735_v50 = vpop.xlane.xlu1 %1734 }
 0x7cb   : > { %5597 = vrcp.f32 %v1735_v50 }
 0x7ce   : > { %v1997_v5 = vpop.permute.xlu1 %1996 }
 0x7d2   : > { %v2280_v6 = vpop.permute.xlu1 %2279 }
 0x7d5   : > { %v5598_v63 = vpop.eup %5597 }
 0x7d6   : > { %v1741_v2 = vmul.f32 %v5598_v63, %v5590_v43 }
 0x7d8   : > { %4922 = vmatprep.mubr.msk.f32.mxu0 %vm1439_vm3, %v1741_v2 }
 0x7d9   : > { %4923 = vmatmul.mubr.msk.f32.vlgmr.msra.gmra.mrb[8].mxu0 %vm1439_vm3, %v1742_v3 }
 0x7da   : > { %5137 = vmatpush3.bf16.xpose.msk.msra.mxu0 %vm7484_vm4, %v5132_v59  ;;  %4943 = vmatprep.mubr.msk.f32.mxu0 %vm1439_vm3, %v1995_v46 }
 0x7db   : > { %5148 = vmatprep.subr.msk.bf16.mxu0 %vm7484_vm4, %v5146_v4 }
 0x7e1   : > { %4944 = vmatmul.mubr.msk.f32.vlgmr.msra.gmra.mrb[10].mxu0 %vm1439_vm3, %v1997_v5  ;;  %v1429_v5 = vld [vmem:[%s7371_s5 + $0x28] sm:$0xff] }
 0x7e2   : > { %5151 = vmatpush3.bf16.xpose.msk.msra.mxu0 %vm7484_vm4, %v5146_v4  ;;  %4964 = vmatprep.mubr.msk.f32.mxu0 %vm1439_vm3, %v2280_v6  ;;  %v1428_v4 = vld [vmem:[%s7371_s5 + $0x20] sm:$0xff] }
 0x7e3   : > { %v5142_v6 = vpack.c.bf16 %v1429_v5, %v1428_v4  ;;  %v2631_v4 = vld [vmem:[%s7386_s29 + $0x60] sm:$0xff] }
 0x7e9   : > { %4965 = vmatmul.mubr.msk.f32.vlgmr.msra.gmra.mrb[12].mxu0 %vm1439_vm3, %v2282_v7 }
 0x7ea   : > { %2717 = vmatprep.mubr.f32.mxu0 %v6464_v19 }
 0x877   : > { %v4910_v14 = vpop.f32.mrb[6].mxu0 }
 0x878   : > { %v1619_v15 = vpop.f32.mrb[7].mxu0 }
 0x8ac   : > { %v4924_v16 = vpop.f32.mrb[8].mxu0 }
 0x8ad   : > { %v1823_v17 = vpop.f32.mrb[9].mxu0 }
 0x8ae   : > { %4929 = vmatprep.mubr.msk.f32.mxu1 %vm1439_vm3, %v1823_v17 }
 0x8af   : > { %4930 = vmatmul.mubr.msk.f32.vlgmr.msra.gmra.mrb[2].mxu1 %vm1439_vm3, %v4924_v16 }
 0x8b0   : > { %4936 = vmatprep.mubr.msk.f32.mxu1 %vm1439_vm3, %v1619_v15  ;;  %5131 = vmatpush3.bf16.msra.mxu1 %v5128_v13  ;;  %v1430_v13 = vld [vmem:[%s7371_s5 + $0x30] sm:$0xff] }
 0x8b4   : > { %v4945_v18 = vpop.f32.mrb[10].mxu0 }
 0x8b5   : > { %v2086_v20 = vmul.f32 0.25, %v4945_v18  ;;  %v2076_v21 = vpop.f32.mrb[11].mxu0 }
 0x8b6   : > { %v2085_v22 = vmul.f32 0.25, %v2076_v21 }
 0x8b7   : > { %4937 = vmatmul.mubr.msk.f32.vlgmr.msra.gmra.mrb[2].mxu1 %vm1439_vm3, %v4910_v14  ;;  %v2090_v23 = vsel %vm1439_vm3, %v2086_v20, -inf  ;;  %v1431_v14 = vld [vmem:[%s7371_s5 + $0x38] sm:$0xff]  ;;  %s8032_s5 = scalar_lea.vmem [#allocation14], %s7356_s14 }
 0x8b8   : > { %2091 = vmax.xlane.f32.xlu0 %v2090_v23  ;;  %v2087_v24 = vsel %vm1439_vm3, %v2085_v22, -inf  ;;  %v5156_v17 = vpack.c.bf16 %v1431_v14, %v1430_v13  ;;  %v2752_v13 = vld [vmem:[%s7396_s23 + $0x90] sm:$0xff]  ;;  %v2753_v14 = vld [vmem:[%s7396_s23 + $0x98] sm:$0xff] }
 0x8b9   : > { %2088 = vmax.xlane.f32.xlu1 %v2087_v24  ;;  %v4684_v24 = vld [vmem:[%s8032_s5] ss:$0 sm:$0xff] }
 0x8bc   : > { %v4966_v25 = vpop.f32.mrb[12].mxu0 }
 0x8bd   : > { %v2361_v26 = vpop.f32.mrb[13].mxu0  ;;  %v2371_v42 = vmul.f32 0.25, %v4966_v25 }
 0x8be   : > { %v2370_v35 = vmul.f32 0.25, %v2361_v26 }
 0x8bf   : > { %v2375_v45 = vsel %vm1439_vm3, %v2371_v42, -inf }
 0x8c0   : > { %v2372_v43 = vsel %vm1439_vm3, %v2370_v35, -inf }
 0x945   : > { %v2092_v27 = vpop.xlane.xlu0 %2091 }
 0x946   : > { %v2094_v28 = vsub.f32 %v2086_v20, %v2092_v27  ;;  %v2089_v29 = vpop.xlane.xlu1 %2088 }
 0x947   : > { %v2093_v30 = vsub.f32 %v2085_v22, %v2089_v29 }
 0x948   : > { %v2097_v31 = vmul.f32 1.442695, %v2094_v28 }
 0x949   : > { %v2095_v32 = vmul.f32 1.442695, %v2093_v30 }
 0x94a   : > { %5599 = vpow2.f32 %v2097_v31 }
 0x94b   : > { %5601 = vpow2.f32 %v2095_v32 }
 0x954   : > { %v5600_v33 = vpop.eup %5599 }
 0x955   : > { %v5602_v34 = vpop.eup %5601  ;;  %v2102_v36 = vsel %vm1439_vm3, %v5600_v33, 0.0 }
 0x956   : > { %2103 = vadd.xlane.f32.xlu1 %v2102_v36  ;;  %v2099_v39 = vsel %vm1439_vm3, %v5602_v34, 0.0 }
 0x957   : > { %2100 = vadd.xlane.f32.xlu0 %v2099_v39 }
 0x95a   : > { %2373 = vmax.xlane.f32.xlu1 %v2372_v43 }
 0x95e   : > { %2376 = vmax.xlane.f32.xlu1 %v2375_v45 }
 0x96d   : > { %5574 = vrot.lane.b32.xlu0 %v7477_v56, %s6468_s11 }
 0x9e3   : > { %v2104_v47 = vpop.xlane.xlu1 %2103 }
 0x9e4   : > { %5603 = vrcp.f32 %v2104_v47  ;;  %v2101_v48 = vpop.xlane.xlu0 %2100  ;;  %v2620_v47 = vld [vmem:[%s7386_s29 + $0x8] sm:$0xff] }
 0x9e5   : > { %5605 = vrcp.f32 %v2101_v48  ;;  %v2622_v48 = vld [vmem:[%s7386_s29 + $0x18] sm:$0xff] }
 0x9e7   : > { %v2374_v49 = vpop.xlane.xlu1 %2373 }
 0x9e8   : > { %v5575_v51 = vpop.permute.xlu0 %5574  ;;  %v2378_v54 = vsub.f32 %v2370_v35, %v2374_v49  ;;  %v5160_v49 = vpack.c.bf16 %v2622_v48, %v2620_v47  ;;  %v2744_v47 = vld [vmem:[%s7396_s23 + $0x50] sm:$0xff]  ;;  %v2745_v48 = vld [vmem:[%s7396_s23 + $0x58] sm:$0xff] }
 0x9e9   : > { %v5577_v52 = vunpack.i.h.bf16 %v5575_v51  ;;  %v5576_v53 = vunpack.i.l.bf16 %v5575_v51  ;;  %v2619_v51 = vld [vmem:[%s7386_s29] sm:$0xff] }
 0x9ea   : > { %v2380_v46 = vmul.f32 1.442695, %v2378_v54  ;;  %5161 = vmatprep.subr.bf16.mxu0 %v5160_v49  ;;  %v2624_v54 = vld [vmem:[%s7386_s29 + $0x28] sm:$0xff] }
 0x9eb   : > { %v5138_v55 = vpack.c.bf16 %v5577_v52, %v5576_v53  ;;  %v2377_v57 = vpop.xlane.xlu1 %2376  ;;  %v2621_v52 = vld [vmem:[%s7386_s29 + $0x10] sm:$0xff]  ;;  %v2762_v49 = vld [vmem:[%s7396_s23 + $0xe0] sm:$0xff] }
 0x9ec   : > { %v2379_v58 = vsub.f32 %v2371_v42, %v2377_v57  ;;  %v5162_v53 = vpack.c.bf16 %v2621_v52, %v2619_v51  ;;  %v2763_v51 = vld [vmem:[%s7396_s23 + $0xe8] sm:$0xff]  ;;  %v5198_v52 = vpack.c.bf16 %v2745_v48, %v2744_v47 }
 0x9ed   : > { %5139 = vmatprep.subr.bf16.mxu1 %v5138_v55 }
 0x9ee   : > { %v5604_v59 = vpop.eup %5603  ;;  %v2382_v50 = vmul.f32 1.442695, %v2379_v58  ;;  %5141 = vmatpush3.bf16.msra.mxu1 %v5138_v55  ;;  %5163 = vmatpush1.bf16.msra.mxu0 %v5162_v53  ;;  %v2626_v55 = vld [vmem:[%s7386_s29 + $0x38] sm:$0xff]  ;;  %v2623_v58 = vld [vmem:[%s7386_s29 + $0x20] sm:$0xff]  ;;  %v5200_v53 = vpack.c.bf16 %v2763_v51, %v2762_v49 }
 0x9ef   : > { %v5606_v60 = vpop.eup %5605  ;;  %v2108_v63 = vmul.f32 %v5604_v59, %v5600_v33  ;;  %5143 = vmatprep.subr.bf16.mxu1 %v5142_v6  ;;  %v5164_v57 = vpack.c.bf16 %v2626_v55, %v2624_v54  ;;  %v2625_v59 = vld [vmem:[%s7386_s29 + $0x30] sm:$0xff] }
 0x9f0   : > { %5607 = vpow2.f32 %v2382_v50  ;;  %v2107_v62 = vmul.f32 %v5606_v60, %v5602_v34  ;;  %v2628_v50 = vld [vmem:[%s7386_s29 + $0x48] sm:$0xff]  ;;  %v2630_v60 = vld [vmem:[%s7386_s29 + $0x58] sm:$0xff] }
 0x9f1   : > { %5609 = vpow2.f32 %v2380_v46  ;;  %v5166_v46 = vpack.c.bf16 %v2625_v59, %v2623_v58  ;;  %5165 = vmatprep.subr.bf16.mxu0 %v5164_v57 }
 0x9f2   : > { %4950 = vmatprep.mubr.msk.f32.mxu1 %vm1439_vm3, %v2107_v62  ;;  %v5168_v62 = vpack.c.bf16 %v2630_v60, %v2628_v50 }
 0x9f3   : > { %4951 = vmatmul.mubr.msk.f32.vlgmr.msra.gmra.mrb[4].mxu1 %vm1439_vm3, %v2108_v63  ;;  %5167 = vmatpush1.bf16.msra.mxu0 %v5166_v46  ;;  %v2627_v63 = vld [vmem:[%s7386_s29 + $0x40] sm:$0xff] }
 0x9f4   : > { %5145 = vmatpush3.bf16.msra.mxu1 %v5142_v6  ;;  %5169 = vmatprep.subr.bf16.mxu0 %v5168_v62  ;;  %v2633_v6 = vld [vmem:[%s7386_s29 + $0x70] sm:$0xff] }
 0x9fa   : > { %v5608_v0 = vpop.eup %5607 }
 0x9fb   : > { %v2387_v1 = vsel %vm1439_vm3, %v5608_v0, 0.0  ;;  %v5610_v2 = vpop.eup %5609 }
 0x9fc   : > { %2388 = vadd.xlane.f32.xlu1 %v2387_v1  ;;  %v2384_v3 = vsel %vm1439_vm3, %v5610_v2, 0.0 }
 0xa00   : > { %2385 = vadd.xlane.f32.xlu1 %v2384_v3  ;;  %v2634_v3 = vld [vmem:[%s7386_s29 + $0x78] sm:$0xff] }
 0xa11   : > { %5579 = vrot.lane.b32.xlu1 %v7477_v56, %s6471_s18 }
 0xa89   : > { %v2389_v7 = vpop.xlane.xlu1 %2388 }
 0xa8d   : > { %v2386_v8 = vpop.xlane.xlu1 %2385 }
 0xa8e   : > { %5611 = vrcp.f32 %v2386_v8  ;;  %v2750_v8 = vld [vmem:[%s7396_s23 + $0x80] sm:$0xff] }
 0xa8f   : > { %5613 = vrcp.f32 %v2389_v7  ;;  %v5174_v7 = vpack.c.bf16 %v2633_v6, %v2631_v4  ;;  %v2747_v6 = vld [vmem:[%s7396_s23 + $0x68] sm:$0xff] }
 0xa91   : > { %v5580_v9 = vpop.permute.xlu1 %5579 }
 0xa92   : > { %v5582_v10 = vunpack.i.h.bf16 %v5580_v9  ;;  %v5581_v11 = vunpack.i.l.bf16 %v5580_v9  ;;  %v2751_v9 = vld [vmem:[%s7396_s23 + $0x88] sm:$0xff] }
 0xa94   : > { %v5152_v12 = vpack.c.bf16 %v5582_v10, %v5581_v11  ;;  %v2734_v10 = vld [vmem:[%s7396_s23] sm:$0xff]  ;;  %v5176_v11 = vpack.c.bf16 %v2751_v9, %v2750_v8  ;;  %v2764_v8 = vld [vmem:[%s7396_s23 + $0xf0] sm:$0xff]  ;;  %v2765_v9 = vld [vmem:[%s7396_s23 + $0xf8] sm:$0xff] }
 0xa96   : > { %5153 = vmatprep.subr.bf16.mxu1 %v5152_v12 }
 0xa98   : > { %v5612_v15 = vpop.eup %5611 }
 0xa99   : > { %v5614_v18 = vpop.eup %5613  ;;  %v2392_v20 = vmul.f32 %v5612_v15, %v5610_v2  ;;  %v2632_v2 = vld [vmem:[%s7386_s29 + $0x68] sm:$0xff] }
 0xa9a   : > { %v2393_v21 = vmul.f32 %v5614_v18, %v5608_v0  ;;  %v2629_v0 = vld [vmem:[%s7386_s29 + $0x50] sm:$0xff]  ;;  %v5172_v5 = vpack.c.bf16 %v2634_v3, %v2632_v2  ;;  %v2754_v18 = vld [vmem:[%s7396_s23 + $0xa0] sm:$0xff]  ;;  %s8033_s29 = scalar_lea.vmem [#allocation15], %s7356_s14 }
 0xa9b   : > { %v5170_v1 = vpack.c.bf16 %v2629_v0, %v2627_v63  ;;  %v4685_v60 = vld [vmem:[%s8033_s29] ss:$0 sm:$0xff] }
 0xa9c   : > { %v4686_v63 = vld [vmem:[%s8034_s26] ss:$0 sm:$0xff] }
 0xa9d   : > { %5171 = vmatpush1.bf16.msra.mxu0 %v5170_v1 }
 0xa9e   : > { %5173 = vmatprep.subr.bf16.mxu0 %v5172_v5 }
 0xaa1   : > { %5175 = vmatpush1.bf16.msra.mxu0 %v5174_v7 }
 0xac6   : > { %v4952_v16 = vpop.f32.mrb[4].mxu1 }
 0xac7   : > { %v2187_v56 = vpop.f32.mrb[5].mxu1 }
 0xac8   : > { %4957 = vmatprep.mubr.msk.f32.mxu1 %vm1439_vm3, %v2187_v56  ;;  %v2736_v56 = vld [vmem:[%s7396_s23 + $0x10] sm:$0xff] }
 0xac9   : > { %4958 = vmatmul.mubr.msk.f32.vlgmr.msra.gmra.mrb[2].mxu1 %vm1439_vm3, %v4952_v16  ;;  %v5180_v16 = vpack.c.bf16 %v2753_v14, %v2752_v13 }
 0xaca   : > { %5155 = vmatpush3.bf16.msra.mxu1 %v5152_v12  ;;  %4971 = vmatprep.mubr.msk.f32.mxu1 %vm1439_vm3, %v2392_v20  ;;  %v2735_v12 = vld [vmem:[%s7396_s23 + $0x8] sm:$0xff] }
 0xacb   : > { %5157 = vmatprep.subr.bf16.mxu1 %v5156_v17  ;;  %v5178_v15 = vpack.c.bf16 %v2735_v12, %v2734_v10  ;;  %v2755_v20 = vld [vmem:[%s7396_s23 + $0xa8] sm:$0xff]  ;;  %v5204_v10 = vpack.c.bf16 %v2765_v9, %v2764_v8  ;;  %v2749_v12 = vld [vmem:[%s7396_s23 + $0x78] sm:$0xff] }
 0xacd   : > { %4972 = vmatmul.mubr.msk.f32.vlgmr.msra.gmra.mrb[6].mxu1 %vm1439_vm3, %v2393_v21 }
 0xace   : > { %5159 = vmatpush3.bf16.msra.mxu1 %v5156_v17  ;;  %v2737_v17 = vld [vmem:[%s7396_s23 + $0x18] sm:$0xff] }
 0xacf   : > { %5177 = vmatprep.subr.bf16.mxu1 %v5176_v11  ;;  %v5182_v21 = vpack.c.bf16 %v2737_v17, %v2736_v56  ;;  %v2748_v11 = vld [vmem:[%s7396_s23 + $0x70] sm:$0xff] }
 0xad0   : > { %v5206_v13 = vpack.c.bf16 %v2749_v12, %v2748_v11 }
 0xba0   : > { %v4973_v22 = vpop.f32.mrb[6].mxu1 }
 0xba1   : > { %v2472_v23 = vpop.f32.mrb[7].mxu1 }
 0xba2   : > { %4978 = vmatprep.mubr.msk.f32.mxu1 %vm1439_vm3, %v2472_v23  ;;  %v2738_v23 = vld [vmem:[%s7396_s23 + $0x20] sm:$0xff] }
 0xba3   : > { %4979 = vmatmul.mubr.msk.f32.vlgmr.msra.gmra.mrb[2].mxu1 %vm1439_vm3, %v4973_v22  ;;  %v5184_v22 = vpack.c.bf16 %v2755_v20, %v2754_v18 }
 0xba4   : > { %5179 = vmatpush3.bf16.msra.mxu1 %v5178_v15 }
 0xba5   : > { %5181 = vmatprep.subr.bf16.mxu1 %v5180_v16 }
 0xba8   : > { %5183 = vmatpush3.bf16.msra.mxu1 %v5182_v21 }
 0xba9   : > { %5185 = vmatprep.subr.bf16.mxu1 %v5184_v22 }
 0xc76   : > { %v4980_v25 = vpop.f32.mrb[2].mxu1 }
 0xc77   : > { %v2571_v26 = vadd.f32 %v4980_v25, %v4684_v24  ;;  %v2553_v27 = vpop.f32.mrb[3].mxu1  ;;  %v2756_v25 = vld [vmem:[%s7396_s23 + $0xb0] sm:$0xff] }
 0xc78   : > { %v2570_v28 = vadd.f32 %v4684_v24, %v2553_v27  ;;  %v2739_v24 = vld [vmem:[%s7396_s23 + $0x28] sm:$0xff] }
 0xc79   : > { %v2573_v29 = vadd.f32 %v2571_v26, %v7450_v38  ;;  %v2757_v26 = vld [vmem:[%s7396_s23 + $0xb8] sm:$0xff]  ;;  %v5186_v27 = vpack.c.bf16 %v2739_v24, %v2738_v23 }
 0xc7a   : > { %v2572_v30 = vadd.f32 %v2570_v28, %v7445_v37  ;;  %v5188_v28 = vpack.c.bf16 %v2757_v26, %v2756_v25 }
 0xc7b   : > { %v2579_v31 = vsel %vm1340_vm2, %v2573_v29, 0.0  ;;  %5187 = vmatpush3.bf16.msra.mxu1 %v5186_v27 }
 0xc7c   : > { %2580 = vadd.xlane.f32.xlu1 %v2579_v31  ;;  %v2576_v32 = vsel %vm1340_vm2, %v2572_v30, 0.0  ;;  %v2758_v31 = vld [vmem:[%s7396_s23 + $0xc0] sm:$0xff]  ;;  %5189 = vmatprep.subr.bf16.mxu1 %v5188_v28 }
 0xc7d   : > { %2577 = vadd.xlane.f32.xlu0 %v2576_v32  ;;  %v2759_v32 = vld [vmem:[%s7396_s23 + $0xc8] sm:$0xff] }
 0xd09   : > { %v2581_v33 = vpop.xlane.xlu1 %2580 }
 0xd0a   : > { %v2584_v34 = vmul.f32 0.015625, %v2581_v33  ;;  %v2578_v35 = vpop.xlane.xlu0 %2577 }
 0xd0b   : > { %v2583_v36 = vmul.f32 0.015625, %v2578_v35  ;;  %v2742_v35 = vld [vmem:[%s7396_s23 + $0x40] sm:$0xff] }
 0xd0c   : > { %v7574_v39 = vsub.f32 %v2573_v29, %v2584_v34  ;;  %v2740_v29 = vld [vmem:[%s7396_s23 + $0x30] sm:$0xff]  ;;  %v5192_v34 = vpack.c.bf16 %v2759_v32, %v2758_v31 }
 0xd0d   : > { %v7576_v38 = vsub.f32 %v2572_v30, %v2583_v36  ;;  %v2741_v30 = vld [vmem:[%s7396_s23 + $0x38] sm:$0xff]  ;;  %v2743_v36 = vld [vmem:[%s7396_s23 + $0x48] sm:$0xff] }
 0xd0e   : > { %v2588_v43 = vmul.f32 %v7574_v39, %v7574_v39  ;;  %v5190_v33 = vpack.c.bf16 %v2741_v30, %v2740_v29 }
 0xd0f   : > { %v2587_v37 = vmul.f32 %v7576_v38, %v7576_v38 }
 0xd10   : > { %v2592_v45 = vsel %vm1340_vm2, %v2588_v43, 0.0  ;;  %5191 = vmatpush3.bf16.msra.mxu1 %v5190_v33  ;;  %v5194_v43 = vpack.c.bf16 %v2743_v36, %v2742_v35 }
 0xd11   : > { %v2589_v42 = vsel %vm1340_vm2, %v2587_v37, 0.0  ;;  %v2760_v37 = vld [vmem:[%s7396_s23 + $0xd0] sm:$0xff]  ;;  %5193 = vmatprep.subr.bf16.mxu1 %v5192_v34 }
 0xd12   : > { %2590 = vadd.xlane.f32.xlu0 %v2589_v42  ;;  %v2761_v42 = vld [vmem:[%s7396_s23 + $0xd8] sm:$0xff] }
 0xd14   : > { %5195 = vmatpush3.bf16.msra.mxu1 %v5194_v43 }
 0xd16   : > { %2593 = vadd.xlane.f32.xlu0 %v2592_v45  ;;  %v5196_v45 = vpack.c.bf16 %v2761_v42, %v2760_v37 }
 0xd18   : > { %5197 = vmatprep.subr.bf16.mxu1 %v5196_v45 }
 0xd19   : > { %5199 = vmatpush3.bf16.msra.mxu1 %v5198_v52 }
 0xd1a   : > { %5201 = vmatprep.subr.bf16.mxu1 %v5200_v53 }
 0xd9f   : > { %v2591_v54 = vpop.xlane.xlu0 %2590 }
 0xda0   : > { %v2595_v55 = vmul.f32 0.015625, %v2591_v54 }
 0xda2   : > { %v2597_v57 = vadd.f32 1e-05, %v2595_v55 }
 0xda3   : > { %v2594_v58 = vpop.xlane.xlu0 %2593 }
 0xda4   : > { %5615 = vrsqrt.f32 %v2597_v57  ;;  %v2596_v59 = vmul.f32 0.015625, %v2594_v58 }
 0xda6   : > { %v2598_v46 = vadd.f32 1e-05, %v2596_v59 }
 0xda8   : > { %5617 = vrsqrt.f32 %v2598_v46 }
 0xdae   : > { %v5616_v50 = vpop.eup %5615 }
 0xdaf   : > { %v2601_v62 = vmul.f32 %v5616_v50, %v7576_v38  ;;  %v2746_v38 = vld [vmem:[%s7396_s23 + $0x60] sm:$0xff] }
 0xdb0   : > { %v5202_v7 = vpack.c.bf16 %v2747_v6, %v2746_v38 }
 0xdb1   : > { %v2609_v0 = vmul.f32 %v4685_v60, %v2601_v62 }
 0xdb2   : > { %v5618_v1 = vpop.eup %5617  ;;  %5203 = vmatpush3.bf16.msra.mxu1 %v5202_v7 }
 0xdb3   : > { %v2617_v2 = vadd.f32 %v4686_v63, %v2609_v0  ;;  %v2602_v3 = vmul.f32 %v5618_v1, %v7574_v39  ;;  %5205 = vmatprep.subr.bf16.mxu1 %v5204_v10  ;;  %v2635_v39 = vld [vmem:[%s7393_s6] sm:$0x3]  ;;  %s8035_s6 = sld [smem:[#allocation53_spill]] }
 0xdb4   : > { %v2640_v14 = vrot.slane %v2635_v39, %v1332_v41 }
 0xdb5   : > { %4687 = vmatmul.mubr.msk.f32.vlgmr.msra.gmra.mrb[14].mxu0 %vm1340_vm2, %v2617_v2  ;;  %v2610_v4 = vmul.f32 %v4685_v60, %v2602_v3  ;;  %v4690_v60 = vld [vmem:[%s1039_s24] ss:$0 sm:$0xff] }
 0xdb6   : > { %2723 = vmatprep.mubr.f32.mxu0 %v6464_v19  ;;  %5207 = vmatpush3.bf16.msra.mxu1 %v5206_v13  ;;  %v2644_v19 = vrot.slane %v2635_v39, %v1336_v44 }
 0xdb7   : > { %v2618_v5 = vadd.f32 %v4686_v63, %v2610_v4  ;;  %v4691_v63 = vld [vmem:[%s1047_s20] ss:$0 sm:$0xff] }
 0xdb9   : > { %4688 = vmatmul.mubr.msk.f32.gmra.mrb[16].mxu0 %vm1340_vm2, %v2618_v5  ;;  %p4692_p9 = scmp.ne.s32.totalorder %s8035_s6, 1 }
 0xdba   : > { %v2900_v38 = vld [vmem:[#allocation29] sm:$0xff] (!%p4692_p9)  ;;  %v2901_v6 = vld [vmem:[#allocation29 + $0x8] sm:$0xff] (!%p4692_p9)  ;;  %v2902_v7 = vld [vmem:[#allocation29 + $0x10] sm:$0xff] (!%p4692_p9)  ;;  %s6472_s14 = smov (!%p4692_p9), 112   ;;  %s6473_s24 = smov (!%p4692_p9), 64  }
 0xdbb   : > { %v5208_v8 = vpack.c.bf16 (!%p4692_p9), %v2901_v6, %v2900_v38  ;;  %v2903_v9 = vld [vmem:[#allocation29 + $0x18] sm:$0xff] (!%p4692_p9)  ;;  %v2904_v11 = vld [vmem:[#allocation29 + $0x20] sm:$0xff] (!%p4692_p9)  ;;  %v2905_v12 = vld [vmem:[#allocation29 + $0x28] sm:$0xff] (!%p4692_p9)  ;;  %s6474_s23 = smov (!%p4692_p9), 96   ;;  %s6475_s17 = smov (!%p4692_p9), 80  }
 0xdbc   : > { %v5212_v10 = vpack.c.bf16 (!%p4692_p9), %v2903_v9, %v2902_v7  ;;  %v2996_v13 = vld [vmem:[#allocation27] sm:$0xff] (!%p4692_p9)  ;;  %v2997_v39 = vld [vmem:[#allocation27 + $0x8] sm:$0xff] (!%p4692_p9)  ;;  %s6476_s20 = smov (!%p4692_p9), 48   ;;  %s6477_s3 = smov (!%p4692_p9), 32  }
 0xdbd   : > { %5209 = vmatprep.subr.bf16.mxu0 (!%p4692_p9), %v5208_v8  ;;  %s6478_s25 = smov (!%p4692_p9), 16  }
 0xdbe   : > { %5211 = vmatpush3.bf16.msra.mxu0 (!%p4692_p9), %v5208_v8 }
 0xdbf   : > { %5213 = vmatprep.subr.bf16.mxu0 (!%p4692_p9), %v5212_v10 }
 0xdc2   : > { %5215 = vmatpush3.bf16.msra.mxu0 (!%p4692_p9), %v5212_v10 }
 0xe88   : > { %v2719_v15 = vpop.f32.mrb[14].mxu0 }
 0xe89   : > { %v2720_v16 = vadd.f32 %v2719_v15, %v2640_v14  ;;  %v2721_v56 = vpop.f32.mrb[15].mxu0  ;;  %v5216_v15 = vpack.c.bf16 (!%p4692_p9), %v2905_v12, %v2904_v11 }
 0xe8a   : > { %v2722_v17 = vadd.f32 %v2721_v56, %v2644_v19  ;;  %v2907_v56 = vld [vmem:[#allocation29 + $0x38] sm:$0xff] (!%p4692_p9) }
 0xe8b   : > { %v2730_v21 = vmax.f32 %v2720_v16, 0.0  ;;  %v2906_v16 = vld [vmem:[#allocation29 + $0x30] sm:$0xff] (!%p4692_p9)  ;;  %5217 = vmatprep.subr.bf16.mxu0 (!%p4692_p9), %v5216_v15 }
 0xe8c   : > { %v2731_v18 = vmax.f32 %v2722_v17, 0.0  ;;  %v2725_v20 = vpop.f32.mrb[16].mxu0  ;;  %v5220_v17 = vpack.c.bf16 (!%p4692_p9), %v2907_v56, %v2906_v16  ;;  %5219 = vmatpush3.bf16.msra.mxu0 (!%p4692_p9), %v5216_v15 }
 0xe8d   : > { %v2726_v22 = vadd.f32 %v2725_v20, %v2640_v14  ;;  %v2727_v23 = vpop.f32.mrb[17].mxu0  ;;  %v5224_v14 = vpack.c.bf16 (!%p4692_p9), %v2997_v39, %v2996_v13 }
 0xe8e   : > { %v2728_v24 = vadd.f32 %v2727_v23, %v2644_v19  ;;  %2837 = vmatprep.mubr.f32.mxu1 %v2731_v18  ;;  %v7660_v19 = vpack.i.bf16 (!%p4692_p9), %v2997_v39, %v2996_v13  ;;  %5221 = vmatprep.subr.bf16.mxu0 (!%p4692_p9), %v5220_v17  ;;  %v4693_v18 = vld [vmem:[#allocation30] ss:$0 sm:$0xff] (!%p4692_p9)  ;;  %v3000_v13 = vld [vmem:[#allocation32 + $0x10] sm:$0xff] (!%p4692_p9) }
 0xe8f   : > { %2838 = vmatmul.mubr.f32.vlgmr.msra.gmra.mrb[8].mxu1 %v2730_v21  ;;  %v2732_v26 = vmax.f32 %v2726_v22, 0.0  ;;  %5226 = vmatprep.subr.msk.bf16.mxu1 (!%p4692_p9), %vm7484_vm4, %v5224_v14  ;;  %v3001_v39 = vld [vmem:[#allocation32 + $0x18] sm:$0xff] (!%p4692_p9) }
 0xe90   : > { %v2733_v25 = vmax.f32 %v2728_v24, 0.0  ;;  %5229 = vmatpush3.bf16.xpose.msk.msra.mxu1 (!%p4692_p9), %vm7484_vm4, %v5224_v14  ;;  %5223 = vmatpush3.bf16.msra.mxu0 (!%p4692_p9), %v5220_v17  ;;  %v5244_v14 = vpack.c.bf16 (!%p4692_p9), %v3001_v39, %v3000_v13 }
 0xe92   : > { %2842 = vmatprep.mubr.f32.mxu1 %v2733_v25  ;;  %5245 = vmatprep.subr.bf16.mxu0 (!%p4692_p9), %v5244_v14 }
 0xe93   : > { %2843 = vmatmul.mubr.f32.gmra.mrb[10].mxu1 %v2732_v26 }
 0xf62   : > { %v4826_v41 = vpop.f32.mrb[8].mxu1 }
 0xf63   : > { %v4827_v44 = vpop.f32.mrb[9].mxu1 }
 0xf64   : > { %v4828_v27 = vadd.f32 %v4827_v44, %v4826_v41 }
 0xf66   : > { %v2840_v28 = vadd.f32 %v4828_v27, %v4689_v40  ;;  %v4829_v29 = vpop.f32.mrb[10].mxu1 }
 0xf67   : > { %v4830_v30 = vpop.f32.mrb[11].mxu1 }
 0xf68   : > { %v4831_v31 = vadd.f32 %v4830_v30, %v4829_v29  ;;  %v2848_v32 = vadd.f32 %v2840_v28, %v2617_v2 }
 0xf6a   : > { %v2845_v33 = vadd.f32 %v4831_v31, %v4689_v40  ;;  %v2852_v34 = vsel %vm1340_vm2, %v2848_v32, 0.0 }
 0xf6b   : > { %2853 = vadd.xlane.f32.xlu0 %v2852_v34 }
 0xf6c   : > { %v2849_v35 = vadd.f32 %v2845_v33, %v2618_v5 }
 0xf6e   : > { %v2855_v36 = vsel %vm1340_vm2, %v2849_v35, 0.0 }
 0xf6f   : > { %2856 = vadd.xlane.f32.xlu0 %v2855_v36 }
 0xff8   : > { %v2854_v37 = vpop.xlane.xlu0 %2853 }
 0xff9   : > { %v2858_v42 = vmul.f32 0.015625, %v2854_v37 }
 0xffb   : > { %v2860_v43 = vsub.f32 %v2848_v32, %v2858_v42 }
 0xffc   : > { %v2857_v45 = vpop.xlane.xlu0 %2856 }
 0xffd   : > { %v2859_v47 = vmul.f32 0.015625, %v2857_v45  ;;  %v2862_v48 = vmul.f32 %v2860_v43, %v2860_v43 }
 0xfff   : > { %v2861_v49 = vsub.f32 %v2849_v35, %v2859_v47  ;;  %v2864_v51 = vsel %vm1340_vm2, %v2862_v48, 0.0 }
0x1000   : > { %2865 = vadd.xlane.f32.xlu0 %v2864_v51 }
0x1001   : > { %v2863_v52 = vmul.f32 %v2861_v49, %v2861_v49 }
0x1003   : > { %v2867_v53 = vsel %vm1340_vm2, %v2863_v52, 0.0 }
0x1004   : > { %2868 = vadd.xlane.f32.xlu1 %v2867_v53 }
0x1015   : > { %5629 = vrot.lane.b32.xlu1 (!%p4692_p9), %v7660_v19, %s6472_s14 }
0x108d   : > { %v2866_v54 = vpop.xlane.xlu0 %2865 }
0x108e   : > { %v2870_v55 = vmul.f32 0.015625, %v2866_v54 }
0x1090   : > { %v2872_v57 = vadd.f32 1e-05, %v2870_v55 }
0x1091   : > { %v2869_v58 = vpop.xlane.xlu1 %2868 }
0x1092   : > { %5619 = vrsqrt.f32 %v2872_v57  ;;  %v2871_v59 = vmul.f32 0.015625, %v2869_v58 }
0x1094   : > { %v2873_v46 = vadd.f32 1e-05, %v2871_v59 }
0x1095   : > { %v5630_v31 = vpop.permute.xlu1 (!%p4692_p9), %5629 }
0x1096   : > { %5621 = vrsqrt.f32 %v2873_v46  ;;  %v5632_v32 = vunpack.i.h.bf16 (!%p4692_p9), %v5630_v31  ;;  %v5631_v33 = vunpack.i.l.bf16 (!%p4692_p9), %v5630_v31 }
0x109c   : > { %v5620_v50 = vpop.eup %5619 }
0x109d   : > { %v2876_v62 = vmul.f32 %v5620_v50, %v2860_v43  ;;  %v5234_v43 = vpack.c.bf16 (!%p4692_p9), %v5632_v32, %v5631_v33 }
0x109f   : > { %v2884_v0 = vmul.f32 %v4690_v60, %v2876_v62 }
0x10a0   : > { %v5622_v1 = vpop.eup %5621 }
0x10a1   : > { %v2892_v2 = vadd.f32 %v4691_v63, %v2884_v0  ;;  %v2877_v3 = vmul.f32 %v5622_v1, %v2861_v49  ;;  %2899 = sbr.rel (%p4692_p9) target bundleno = 6907 (0x1afb), region = 188 }
0x10a3   : > { %2894 = vst.msk [vmem:[#allocation2] sm:$0xff] %vm1340_vm2, %v2892_v2  ;;  %v2885_v4 = vmul.f32 %v4690_v60, %v2877_v3  ;;  %4997 = vmatprep.mubr.msk.f32.mxu0 (!%p4692_p9), %vm1340_vm2, %v2892_v2 }
0x10a5   : > { %v2893_v5 = vadd.f32 %v4691_v63, %v2885_v4 }
0x10a7   : > { %2895 = vst.msk [vmem:[#allocation2 + $0x8] sm:$0xff] %vm1340_vm2, %v2893_v5  ;;  %4998 = vmatmul.mubr.msk.f32.vlgmr.msra.gmra.mrb[0].mxu0 (!%p4692_p9), %vm1340_vm2, %v2893_v5 }
0x10a8   : > { %5247 = vmatpush3.bf16.msra.mxu0 %v5244_v14 }
0x117a   : > { %v4999_v20 = vpop.f32.mrb[0].mxu0 }
0x117b   : > { %v2987_v21 = vpop.f32.mrb[1].mxu0  ;;  %v7671_v23 = vadd.f32 %v4999_v20, %v4693_v18 }
0x117c   : > { %v7669_v22 = vadd.f32 %v4693_v18, %v2987_v21 }
0x117e   : > { %3205 = vrot.lane.b32.xlu1 %v7669_v22, %s6472_s14  ;;  %5004 = vmatprep.mubr.msk.f32.mxu1 %vm1439_vm3, %v7669_v22 }
0x117f   : > { %5005 = vmatmul.mubr.msk.f32.vlgmr.msra.gmra.mrb[0].mxu1 %vm1439_vm3, %v7671_v23 }
0x11f0   : > { %v3206_v52 = vpop.permute.xlu1 %3205 }
0x1252   : > { %v5006_v24 = vpop.f32.mrb[0].mxu1 }
0x1253   : > { %v3085_v25 = vpop.f32.mrb[1].mxu1  ;;  %v3095_v41 = vmul.f32 0.25, %v5006_v24 }
0x1254   : > { %v3094_v26 = vmul.f32 0.25, %v3085_v25 }
0x1255   : > { %v3099_v44 = vsel %vm1439_vm3, %v3095_v41, -inf }
0x1256   : > { %v3096_v40 = vsel %vm1439_vm3, %v3094_v26, -inf }
0x1257   : > { %3097 = vmax.xlane.f32.xlu0 %v3096_v40 }
0x125b   : > { %3100 = vmax.xlane.f32.xlu0 %v3099_v44 }
0x1271   : > { %5624 = vrot.lane.b32.xlu0 %v7660_v19, %s6473_s24 }
0x12e4   : > { %v3098_v27 = vpop.xlane.xlu0 %3097 }
0x12e5   : > { %v3102_v28 = vsub.f32 %v3094_v26, %v3098_v27 }
0x12e7   : > { %v3104_v34 = vmul.f32 1.442695, %v3102_v28 }
0x12e8   : > { %v3101_v29 = vpop.xlane.xlu0 %3100 }
0x12e9   : > { %v3103_v30 = vsub.f32 %v3095_v41, %v3101_v29 }
0x12eb   : > { %v3106_v35 = vmul.f32 1.442695, %v3103_v30 }
0x12ec   : > { %v5625_v36 = vpop.permute.xlu0 %5624 }
0x12ed   : > { %5658 = vpow2.f32 %v3106_v35  ;;  %v5627_v37 = vunpack.i.h.bf16 %v5625_v36  ;;  %v5626_v42 = vunpack.i.l.bf16 %v5625_v36  ;;  %v2999_v35 = vld [vmem:[#allocation32 + $0x8] sm:$0xff] }
0x12ee   : > { %5660 = vpow2.f32 %v3104_v34  ;;  %v2998_v34 = vld [vmem:[#allocation32] sm:$0xff] }
0x12ef   : > { %v5230_v45 = vpack.c.bf16 %v5627_v37, %v5626_v42  ;;  %v5248_v36 = vpack.c.bf16 %v2999_v35, %v2998_v34 }
0x12f1   : > { %5231 = vmatprep.subr.bf16.mxu1 %v5230_v45  ;;  %5249 = vmatprep.subr.bf16.mxu0 %v5248_v36 }
0x12f2   : > { %5233 = vmatpush3.bf16.msra.mxu1 %v5230_v45 }
0x12f3   : > { %5236 = vmatprep.subr.msk.bf16.mxu1 %vm7484_vm4, %v5234_v43 }
0x12f7   : > { %v5659_v47 = vpop.eup %5658 }
0x12f8   : > { %v3111_v48 = vsel %vm1439_vm3, %v5659_v47, 0.0  ;;  %v5661_v49 = vpop.eup %5660 }
0x12f9   : > { %3112 = vadd.xlane.f32.xlu1 %v3111_v48  ;;  %v3108_v51 = vsel %vm1439_vm3, %v5661_v49, 0.0 }
0x12fd   : > { %3109 = vadd.xlane.f32.xlu1 %v3108_v51 }
0x130e   : > { %3207 = vrot.lane.b32.xlu1 %v7671_v23, %s6472_s14 }
0x1386   : > { %v3113_v53 = vpop.xlane.xlu1 %3112 }
0x1387   : > { %5662 = vrcp.f32 %v3113_v53 }
0x138a   : > { %v3110_v54 = vpop.xlane.xlu1 %3109 }
0x138b   : > { %5664 = vrcp.f32 %v3110_v54 }
0x138e   : > { %v3208_v46 = vpop.permute.xlu1 %3207 }
0x1391   : > { %v5663_v55 = vpop.eup %5662 }
0x1392   : > { %v3117_v59 = vmul.f32 %v5663_v55, %v5659_v47 }
0x1395   : > { %v5665_v57 = vpop.eup %5664 }
0x1396   : > { %v3116_v58 = vmul.f32 %v5665_v57, %v5661_v49 }
0x1398   : > { %5011 = vmatprep.mubr.msk.f32.mxu1 %vm1439_vm3, %v3116_v58 }
0x1399   : > { %5012 = vmatmul.mubr.msk.f32.vlgmr.msra.gmra.mrb[2].mxu1 %vm1439_vm3, %v3117_v59 }
0x139a   : > { %5239 = vmatpush3.bf16.xpose.msk.msra.mxu1 %vm7484_vm4, %v5234_v43  ;;  %5018 = vmatprep.mubr.msk.f32.mxu1 %vm1439_vm3, %v3206_v52 }
0x13a1   : > { %5019 = vmatmul.mubr.msk.f32.vlgmr.msra.gmra.mrb[4].mxu1 %vm1439_vm3, %v3208_v46 }
0x146c   : > { %v7694_v50 = vpop.f32.mrb[2].mxu1 }
0x146d   : > { %v7696_v60 = vpop.f32.mrb[3].mxu1 }
0x1474   : > { %v5020_v62 = vpop.f32.mrb[4].mxu1 }
0x1475   : > { %v3297_v63 = vmul.f32 0.25, %v5020_v62  ;;  %v3287_v0 = vpop.f32.mrb[5].mxu1 }
0x1476   : > { %v3296_v1 = vmul.f32 0.25, %v3287_v0 }
0x1477   : > { %v3301_v2 = vsel %vm1439_vm3, %v3297_v63, -inf }
0x1478   : > { %3302 = vmax.xlane.f32.xlu1 %v3301_v2  ;;  %v3298_v3 = vsel %vm1439_vm3, %v3296_v1, -inf }
0x1479   : > { %3299 = vmax.xlane.f32.xlu0 %v3298_v3 }
0x1489   : > { %5639 = vrot.lane.b32.xlu1 %v7660_v19, %s6474_s23 }
0x148d   : > { %3569 = vrot.lane.b32.xlu1 %v7669_v22, %s6474_s23 }
0x1491   : > { %3571 = vrot.lane.b32.xlu1 %v7671_v23, %s6474_s23 }
0x1495   : > { %3854 = vrot.lane.b32.xlu1 %v7669_v22, %s6475_s17 }
0x1505   : > { %v3303_v4 = vpop.xlane.xlu1 %3302 }
0x1506   : > { %v3305_v5 = vsub.f32 %v3297_v63, %v3303_v4  ;;  %v3300_v38 = vpop.xlane.xlu0 %3299 }
0x1507   : > { %v3304_v6 = vsub.f32 %v3296_v1, %v3300_v38 }
0x1508   : > { %v3308_v7 = vmul.f32 1.442695, %v3305_v5 }
0x1509   : > { %v3306_v8 = vmul.f32 1.442695, %v3304_v6  ;;  %v5640_v56 = vpop.permute.xlu1 %5639 }
0x150a   : > { %5666 = vpow2.f32 %v3308_v7  ;;  %v5642_v17 = vunpack.i.h.bf16 %v5640_v56  ;;  %v5641_v18 = vunpack.i.l.bf16 %v5640_v56 }
0x150b   : > { %5668 = vpow2.f32 %v3306_v8 }
0x150c   : > { %v5252_v24 = vpack.c.bf16 %v5642_v17, %v5641_v18 }
0x150d   : > { %v3570_v29 = vpop.permute.xlu1 %3569 }
0x1511   : > { %v3572_v31 = vpop.permute.xlu1 %3571 }
0x1514   : > { %v5667_v9 = vpop.eup %5666 }
0x1515   : > { %v3313_v10 = vsel %vm1439_vm3, %v5667_v9, 0.0  ;;  %v5669_v11 = vpop.eup %5668  ;;  %v3855_v32 = vpop.permute.xlu1 %3854 }
0x1516   : > { %3314 = vadd.xlane.f32.xlu0 %v3313_v10  ;;  %v3310_v12 = vsel %vm1439_vm3, %v5669_v11, 0.0 }
0x151a   : > { %3311 = vadd.xlane.f32.xlu0 %v3310_v12 }
0x1530   : > { %5634 = vrot.lane.b32.xlu0 %v7660_v19, %s6476_s20 }
0x1534   : > { %5644 = vrot.lane.b32.xlu0 %v7660_v19, %s6475_s17 }
0x1538   : > { %3856 = vrot.lane.b32.xlu0 %v7671_v23, %s6475_s17 }
0x15a3   : > { %v3315_v15 = vpop.xlane.xlu0 %3314 }
0x15a4   : > { %5670 = vrcp.f32 %v3315_v15 }
0x15a7   : > { %v3312_v16 = vpop.xlane.xlu0 %3311 }
0x15a8   : > { %5672 = vrcp.f32 %v3312_v16 }
0x15ab   : > { %v5635_v20 = vpop.permute.xlu0 %5634 }
0x15ac   : > { %v5637_v21 = vunpack.i.h.bf16 %v5635_v20  ;;  %v5636_v22 = vunpack.i.l.bf16 %v5635_v20 }
0x15ae   : > { %v5240_v25 = vpack.c.bf16 %v5637_v21, %v5636_v22  ;;  %v5671_v26 = vpop.eup %5670  ;;  %v3002_v21 = vld [vmem:[#allocation32 + $0x20] sm:$0xff]  ;;  %v3003_v22 = vld [vmem:[#allocation32 + $0x28] sm:$0xff] }
0x15af   : > { %v5645_v41 = vpop.permute.xlu0 %5644  ;;  %v3319_v28 = vmul.f32 %v5671_v26, %v5667_v9  ;;  %v5262_v26 = vpack.c.bf16 %v3003_v22, %v3002_v21 }
0x15b0   : > { %5241 = vmatprep.subr.bf16.mxu1 %v5240_v25  ;;  %v5647_v40 = vunpack.i.h.bf16 %v5645_v41  ;;  %v5646_v44 = vunpack.i.l.bf16 %v5645_v41 }
0x15b1   : > { %5243 = vmatpush3.bf16.msra.mxu1 %v5240_v25 }
0x15b2   : > { %v5673_v23 = vpop.eup %5672  ;;  %5254 = vmatprep.subr.msk.bf16.mxu1 %vm7484_vm4, %v5252_v24  ;;  %v5266_v30 = vpack.c.bf16 %v5647_v40, %v5646_v44  ;;  %v3004_v44 = vld [vmem:[#allocation32 + $0x30] sm:$0xff] }
0x15b3   : > { %v3318_v27 = vmul.f32 %v5673_v23, %v5669_v11  ;;  %v3857_v33 = vpop.permute.xlu0 %3856 }
0x15b5   : > { %5025 = vmatprep.mubr.msk.f32.mxu1 %vm1439_vm3, %v3318_v27  ;;  %v3005_v27 = vld [vmem:[#allocation32 + $0x38] sm:$0xff] }
0x15b6   : > { %5026 = vmatmul.mubr.msk.f32.vlgmr.msra.gmra.mrb[6].mxu1 %vm1439_vm3, %v3319_v28 }
0x15b7   : > { %5046 = vmatprep.mubr.msk.f32.mxu1 %vm1439_vm3, %v3570_v29 }
0x15ba   : > { %5257 = vmatpush3.bf16.xpose.msk.msra.mxu1 %vm7484_vm4, %v5252_v24 }
0x15bb   : > { %5268 = vmatprep.subr.msk.bf16.mxu1 %vm7484_vm4, %v5266_v30 }
0x15c1   : > { %5047 = vmatmul.mubr.msk.f32.vlgmr.msra.gmra.mrb[8].mxu1 %vm1439_vm3, %v3572_v31  ;;  %v5276_v31 = vpack.c.bf16 %v3005_v27, %v3004_v44 }
0x15c2   : > { %5271 = vmatpush3.bf16.xpose.msk.msra.mxu1 %vm7484_vm4, %v5266_v30  ;;  %5067 = vmatprep.mubr.msk.f32.mxu1 %vm1439_vm3, %v3855_v32 }
0x15c9   : > { %5068 = vmatmul.mubr.msk.f32.vlgmr.msra.gmra.mrb[10].mxu1 %vm1439_vm3, %v3857_v33 }
0x1689   : > { %v5027_v37 = vpop.f32.mrb[6].mxu1 }
0x168a   : > { %v3398_v42 = vpop.f32.mrb[7].mxu1 }
0x168b   : > { %5032 = vmatprep.mubr.msk.f32.mxu0 %vm1439_vm3, %v3398_v42 }
0x168c   : > { %5033 = vmatmul.mubr.msk.f32.vlgmr.msra.gmra.mrb[2].mxu0 %vm1439_vm3, %v5027_v37  ;;  %v4728_v37 = vld [vmem:[#allocation33] ss:$0 sm:$0xff] }
0x168d   : > { %5039 = vmatprep.mubr.msk.f32.mxu0 %vm1439_vm3, %v7696_v60  ;;  %5251 = vmatpush3.bf16.msra.mxu0 %v5248_v36 }
0x1694   : > { %5040 = vmatmul.mubr.msk.f32.vlgmr.msra.gmra.mrb[2].mxu0 %vm1439_vm3, %v7694_v50  ;;  %v5048_v61 = vpop.f32.mrb[8].mxu1 }
0x1695   : > { %v3661_v43 = vmul.f32 0.25, %v5048_v61  ;;  %v3651_v45 = vpop.f32.mrb[9].mxu1 }
0x1696   : > { %v3660_v47 = vmul.f32 0.25, %v3651_v45 }
0x1697   : > { %v3665_v48 = vsel %vm1439_vm3, %v3661_v43, -inf }
0x1698   : > { %3666 = vmax.xlane.f32.xlu0 %v3665_v48  ;;  %v3662_v49 = vsel %vm1439_vm3, %v3660_v47, -inf }
0x1699   : > { %3663 = vmax.xlane.f32.xlu1 %v3662_v49 }
0x169c   : > { %v5069_v51 = vpop.f32.mrb[10].mxu1 }
0x169d   : > { %v3936_v52 = vpop.f32.mrb[11].mxu1  ;;  %v3946_v0 = vmul.f32 0.25, %v5069_v51 }
0x169e   : > { %v3945_v62 = vmul.f32 0.25, %v3936_v52 }
0x169f   : > { %v3950_v2 = vsel %vm1439_vm3, %v3946_v0, -inf }
0x16a0   : > { %v3947_v1 = vsel %vm1439_vm3, %v3945_v62, -inf }
0x16aa   : > { %5649 = vrot.lane.b32.xlu1 %v7660_v19, %s6477_s3 }
0x16ae   : > { %5654 = vrot.lane.b32.xlu1 %v7660_v19, %s6478_s25 }
0x1725   : > { %v3667_v53 = vpop.xlane.xlu0 %3666 }
0x1726   : > { %v3669_v54 = vsub.f32 %v3661_v43, %v3667_v53  ;;  %v3664_v55 = vpop.xlane.xlu1 %3663 }
0x1727   : > { %v3668_v57 = vsub.f32 %v3660_v47, %v3664_v55 }
0x1728   : > { %v3672_v58 = vmul.f32 1.442695, %v3669_v54 }
0x1729   : > { %v3670_v59 = vmul.f32 1.442695, %v3668_v57 }
0x172a   : > { %v5650_v3 = vpop.permute.xlu1 %5649 }
0x172b   : > { %5674 = vpow2.f32 %v3670_v59  ;;  %v5652_v4 = vunpack.i.h.bf16 %v5650_v3  ;;  %v5651_v5 = vunpack.i.l.bf16 %v5650_v3 }
0x172c   : > { %5676 = vpow2.f32 %v3672_v58 }
0x172d   : > { %v5258_v38 = vpack.c.bf16 %v5652_v4, %v5651_v5 }
0x172e   : > { %v5655_v20 = vpop.permute.xlu1 %5654 }
0x172f   : > { %5259 = vmatprep.subr.bf16.mxu0 %v5258_v38  ;;  %v5657_v24 = vunpack.i.h.bf16 %v5655_v20  ;;  %v5656_v25 = vunpack.i.l.bf16 %v5655_v20 }
0x1730   : > { %5261 = vmatpush3.bf16.msra.mxu0 %v5258_v38 }
0x1731   : > { %v5272_v23 = vpack.c.bf16 %v5657_v24, %v5656_v25  ;;  %5263 = vmatprep.subr.bf16.mxu0 %v5262_v26 }
0x1735   : > { %v5675_v46 = vpop.eup %5674 }
0x1736   : > { %v3674_v50 = vsel %vm1439_vm3, %v5675_v46, 0.0  ;;  %v5677_v60 = vpop.eup %5676 }
0x1737   : > { %3675 = vadd.xlane.f32.xlu0 %v3674_v50  ;;  %v3677_v63 = vsel %vm1439_vm3, %v5677_v60, 0.0 }
0x173b   : > { %3678 = vadd.xlane.f32.xlu0 %v3677_v63 }
0x173f   : > { %3948 = vmax.xlane.f32.xlu0 %v3947_v1 }
0x1743   : > { %3951 = vmax.xlane.f32.xlu0 %v3950_v2 }
0x17c4   : > { %v3676_v6 = vpop.xlane.xlu0 %3675 }
0x17c5   : > { %5678 = vrcp.f32 %v3676_v6 }
0x17c8   : > { %v3679_v7 = vpop.xlane.xlu0 %3678 }
0x17c9   : > { %5680 = vrcp.f32 %v3679_v7 }
0x17cc   : > { %v3949_v8 = vpop.xlane.xlu0 %3948 }
0x17cd   : > { %v3953_v9 = vsub.f32 %v3945_v62, %v3949_v8 }
0x17cf   : > { %v5679_v10 = vpop.eup %5678  ;;  %v3955_v11 = vmul.f32 1.442695, %v3953_v9 }
0x17d0   : > { %v3952_v12 = vpop.xlane.xlu0 %3951  ;;  %v3682_v13 = vmul.f32 %v5679_v10, %v5675_v46 }
0x17d1   : > { %5682 = vpow2.f32 %v3955_v11  ;;  %v3954_v39 = vsub.f32 %v3946_v0, %v3952_v12 }
0x17d2   : > { %5053 = vmatprep.mubr.msk.f32.mxu0 %vm1439_vm3, %v3682_v13 }
0x17d3   : > { %v5681_v14 = vpop.eup %5680  ;;  %v3957_v15 = vmul.f32 1.442695, %v3954_v39 }
0x17d4   : > { %v3683_v16 = vmul.f32 %v5681_v14, %v5677_v60 }
0x17d5   : > { %5684 = vpow2.f32 %v3957_v15 }
0x17d6   : > { %5054 = vmatmul.mubr.msk.f32.vlgmr.msra.gmra.mrb[4].mxu0 %vm1439_vm3, %v3683_v16 }
0x17d7   : > { %5265 = vmatpush3.bf16.msra.mxu0 %v5262_v26 }
0x17d8   : > { %5273 = vmatprep.subr.bf16.mxu0 %v5272_v23 }
0x17db   : > { %v5683_v19 = vpop.eup %5682 }
0x17dc   : > { %v3959_v56 = vsel %vm1439_vm3, %v5683_v19, 0.0 }
0x17dd   : > { %3960 = vadd.xlane.f32.xlu0 %v3959_v56 }
0x17df   : > { %v5685_v17 = vpop.eup %5684 }
0x17e0   : > { %v3962_v18 = vsel %vm1439_vm3, %v5685_v17, 0.0 }
0x17e1   : > { %3963 = vadd.xlane.f32.xlu0 %v3962_v18 }
0x186a   : > { %v3961_v41 = vpop.xlane.xlu0 %3960 }
0x186b   : > { %5686 = vrcp.f32 %v3961_v41 }
0x186e   : > { %v3964_v40 = vpop.xlane.xlu0 %3963 }
0x186f   : > { %5688 = vrcp.f32 %v3964_v40 }
0x1875   : > { %v5687_v28 = vpop.eup %5686 }
0x1876   : > { %v3967_v33 = vmul.f32 %v5687_v28, %v5683_v19 }
0x1879   : > { %v5689_v32 = vpop.eup %5688 }
0x187a   : > { %v3968_v34 = vmul.f32 %v5689_v32, %v5685_v17 }
0x18a9   : > { %v5055_v29 = vpop.f32.mrb[4].mxu0 }
0x18aa   : > { %v3762_v30 = vpop.f32.mrb[5].mxu0 }
0x18ab   : > { %5060 = vmatprep.mubr.msk.f32.mxu0 %vm1439_vm3, %v3762_v30 }
0x18ac   : > { %5061 = vmatmul.mubr.msk.f32.vlgmr.msra.gmra.mrb[2].mxu0 %vm1439_vm3, %v5055_v29 }
0x18ad   : > { %5275 = vmatpush3.bf16.msra.mxu0 %v5272_v23  ;;  %5074 = vmatprep.mubr.msk.f32.mxu0 %vm1439_vm3, %v3967_v33 }
0x18ae   : > { %5277 = vmatprep.subr.bf16.mxu0 %v5276_v31 }
0x18b0   : > { %5075 = vmatmul.mubr.msk.f32.vlgmr.msra.gmra.mrb[6].mxu0 %vm1439_vm3, %v3968_v34 }
0x18b1   : > { %5279 = vmatpush3.bf16.msra.mxu0 %v5276_v31 }
0x1983   : > { %v5076_v35 = vpop.f32.mrb[6].mxu0 }
0x1984   : > { %v4047_v36 = vpop.f32.mrb[7].mxu0 }
0x1985   : > { %5081 = vmatprep.mubr.msk.f32.mxu0 %vm1439_vm3, %v4047_v36 }
0x1986   : > { %5082 = vmatmul.mubr.msk.f32.vlgmr.msra.gmra.mrb[2].mxu0 %vm1439_vm3, %v5076_v35 }
0x1a59   : > { %v5083_v42 = vpop.f32.mrb[2].mxu0 }
0x1a5a   : > { %v4128_v61 = vpop.f32.mrb[3].mxu0  ;;  %v4146_v45 = vadd.f32 %v5083_v42, %v4728_v37 }
0x1a5b   : > { %v4145_v43 = vadd.f32 %v4728_v37, %v4128_v61 }
0x1a5d   : > { %4147 = vxpose.xlu0.b32.start [1/2] (short) (narrow) %v4145_v43, 64 }
0x1a61   : > { %4148 = vxpose.xlu0.b32.end [2/2] (short) (narrow) %v4146_v45, 64 }
0x1add   : > { %v4163_v47 = vpop.trf.xlu0 }
0x1ade   : > { %4179 = vst.msk [vmem:[%s7423_s13] sm:$0xff] %vm1439_vm3, %v4163_v47 }
0x1ae1   : > { %v4164_v48 = vpop.trf.xlu0 }
0x1ae2   : > { %4180 = vst.msk [vmem:[%s7423_s13 + $0x8] sm:$0xff] %vm1439_vm3, %v4164_v48 }
0x1ae5   : > { %v4165_v49 = vpop.trf.xlu0 }
0x1ae6   : > { %4181 = vst.msk [vmem:[%s7423_s13 + $0x10] sm:$0xff] %vm1439_vm3, %v4165_v49 }
0x1ae9   : > { %v4166_v51 = vpop.trf.xlu0 }
0x1aea   : > { %4182 = vst.msk [vmem:[%s7423_s13 + $0x18] sm:$0xff] %vm1439_vm3, %v4166_v51 }
0x1aed   : > { %v4167_v52 = vpop.trf.xlu0 }
0x1aee   : > { %4183 = vst.msk [vmem:[%s7423_s13 + $0x20] sm:$0xff] %vm1439_vm3, %v4167_v52 }
0x1af1   : > { %v4168_v53 = vpop.trf.xlu0 }
0x1af2   : > { %4184 = vst.msk [vmem:[%s7423_s13 + $0x28] sm:$0xff] %vm1439_vm3, %v4168_v53 }
0x1af5   : > { %v4169_v54 = vpop.trf.xlu0 }
0x1af6   : > { %4185 = vst.msk [vmem:[%s7423_s13 + $0x30] sm:$0xff] %vm1439_vm3, %v4169_v54 }
0x1af9   : > { %v4170_v55 = vpop.trf.xlu0 }
0x1afa   : > { %4186 = vst.msk [vmem:[%s7423_s13 + $0x38] sm:$0xff] %vm1439_vm3, %v4170_v55 }
0x1afb PF: > { %s8036_s28 = sld [smem:[#allocation54_spill]]  ;;  %s4201_s29 = sshll.u32 %s7423_s13, 4  ;;  %s7770_s29 = int_to_ptr.vmem [resolvable:$true] %s4201_s29 }
0x1afc   : > { %s8037_s18 = sld [smem:[#allocation78_spill]]  ;;  %s4188_s26 = scalar_lea.sflag [#allocation5], %s7338_s22 }
0x1afd   : > { %s6276_s6 = scalar_lea.vmem %s7770_s29, 1024  ;;  %p8038_p3 = scmp.ne.s32.totalorder %s7984_s7, 0 }
0x1afe   : > { %p6277_p12 = scmp.ne.s32.totalorder %s7770_s29, %s6276_s6  ;;  %s6479_s14 = smov [#allocation35]  }
0x1aff   : > { %s6280_s24 = sshll.u32 %s6479_s14, 4  ;;  %s6281_s24 = int_to_ptr.vmem [resolvable:$false] %s6280_s24 }
0x1b00   : > { %p6278_p0 = pnand %p6277_p12, %p8038_p3  ;;  %s6282_s23 = scalar_lea.vmem %s6281_s24, 2048 }
0x1b01   : > { %s4741_s11 = sshll.u32 %s8036_s28, 10  ;;  %p6283_p4 = scmp.lt.s32.totalorder %s7770_s29, %s6281_s24 }
0x1b02   : > { %s7767_s5 = scalar_lea.hbm %s8037_s18, %s4741_s11  ;;  %p6279_p7 = pneg %p6278_p0 }
0x1b03   : > { %p6284_p13 = scmp.lt.s32.totalorder %s6282_s23, %s6276_s6 }
0x1b05   : > { %p6285_p1 = por %p6284_p13, %p6283_p4 }
0x1b07   : > { %p6286_p2 = pnand %p6285_p1, %p6279_p7 }
0x1b09   : > { %6289 = shalt.err (!%p6286_p2)
}
0x1b0a   : > { %s6290_s13 = scalar_lea.hbm %s7767_s5, 1024  ;;  %s6294_s3 = scalar_lea.hbm %s8037_s18, 2048 }
0x1b0b   : > { %p6291_p11 = scmp.ne.s32.totalorder %s7767_s5, %s6290_s13  ;;  %p6295_p10 = scmp.lt.u32.totalorder %s7767_s5, %s8037_s18 }
0x1b0c   : > { %p6296_p5 = scmp.lt.u32.totalorder %s6294_s3, %s6290_s13  ;;  %p6298_p12 = scmp.lt.u32.totalorder %s6290_s13, %s7767_s5 }
0x1b0d   : > { %p6292_p8 = pnand %p6291_p11, %p8038_p3 }
0x1b0e   : > { %p6297_p9 = por %p6296_p5, %p6295_p10 }
0x1b0f   : > { %p6293_p6 = pneg %p6292_p8 }
0x1b10   : > { %p6299_p0 = por %p6298_p12, %p6297_p9 }
0x1b12   : > { %p6300_p7 = pnand %p6299_p0, %p6293_p6 }
0x1b14   : > { %6303 = shalt.err (!%p6300_p7)
}
0x1b15   : > { %s6480_s11 = smov 128   ;;  %s6481_s10 = smov 8  }
0x1b16   : > { %5346 = dma.vmem_to_hbm [thread:$0]  (%p8038_p3), %s7770_s29, 1024, %s7767_s5, %s4188_s26, %s6480_s11, %s6480_s11, %s6481_s10  }
0x1b17 PF: > { %s8039_s21 = sld [smem:[#allocation50_spill]]  ;;  %p5429_p4 = scmp.ge.s32.totalorder %s6438_s4, 2 }
0x1b18   : > { %p8040_p13 = scmp.ne.s32.totalorder %s7985_s9, 0 }
0x1b1a   : > { %p5411_p1 = pnand %p5429_p4, %p8040_p13 }
0x1b1d   : > { %s4216_s6 = sand.u32 1, %s8039_s21  }
0x1b1e   : > { %s4217_s14 = scalar_lea.sflag [#allocation5], %s4216_s6 }
0x1b1f   : > { %6393 = dma.done.wait (!%p5411_p1), %s4217_s14, 1024  }
0x1b20   : > { %6395 = vsyncadd (!%p5411_p1), %s4217_s14, 4294966272  ;;  %s58_s4 = sadd.s32 1, %s6438_s4   ;;  %s8041_s24 = sld [smem:[#allocation48_spill]] }
0x1b21   : > { %p55_p2 = scmp.ge.s32.totalorder %s58_s4, 6   ;;  %s8042_s22 = sld [smem:[#allocation49_spill]] }
0x1b22   : > { %s8043_s23 = smov %s8062_s1  ;;  %s8044_s7 = sld [smem:[#allocation51_spill]] }
0x1b23   : > { %s8045_s13 = sld [smem:[#allocation52_spill]]  ;;  %s8046_s26 = sld [smem:[#allocation55_spill]] }
0x1b24   : > { %s8047_s5 = smov %s8056_s2  ;;  %s8051_s25 = smov %s7116_s0 }
0x1b25   : > { %s8052_s3 = smov %s6430_s27  ;;  %s8053_s27 = smov %s8047_s5 }
0x1b26   : > { %s8048_s1 = smov %s8041_s24  ;;  %s8054_s28 = smov %s8060_s8 }
0x1b27   :  { %57 = sbr.rel (!%p55_p2) target bundleno = 46 (0x2e), region = 325 }
0x1b28   : > { %s8049_s24 = smov %s8044_s7 }
0x1b29   : > { %s8050_s2 = smov %s8045_s13 }
0x1b2e   :  { %4222 = vsyncpa [#allocation4], 1 }
0x1b2f   :  { %4224 = vsyncpa [#allocation4 + $0x1], 1 }
0x1b30   :  { %4225 = vsyncpa [#allocation7], 1 }
0x1b31   :  { %4226 = vsyncpa [#allocation10], 1 }
0x1b32   :  { %4228 = vsyncpa [#allocation10 + $0x1], 1 }
0x1b33   :  { %4229 = vsyncpa [#allocation13], 1 }
0x1b34   :  { %4231 = vsyncpa [#allocation13 + $0x1], 1 }
0x1b35   :  { %4232 = vsyncpa [#allocation16], 1 }
0x1b36   :  { %4234 = vsyncpa [#allocation16 + $0x1], 1 }
0x1b37   :  { %4235 = vsyncpa [#allocation19], 1 }
0x1b38   :  { %4237 = vsyncpa [#allocation19 + $0x1], 1 }
0x1b39   :  { %4238 = vsyncpa [#allocation22], 1 }
0x1b3a   :  { %4240 = vsyncpa [#allocation22 + $0x1], 1 }
0x1b3b   :  { %4241 = vsyncpa [#allocation25], 1 }
0x1b3c   :  { %4243 = vsyncpa [#allocation25 + $0x1], 1 }
0x1b3d   :  { %4244 = vsyncpa [#allocation28], 1 }
0x1b3e   :  { %4245 = vsyncpa [#allocation31], 1 }
0x1b3f   :  { %4246 = vsyncpa [#allocation34], 1 }
0x1b40   :  { %4247 = vsyncpa [#allocation5], 1 }
0x1b41   :  { %4249 = vsyncpa [#allocation5 + $0x1], 1 }

</bundles_post_ra>
